<compile_context>
chip_gen: v7x
topology: tpu7x:2x2x1
jax: 0.10.0
libtpu: 0.0.40
codegen_flags: <defaults>
</compile_context>

<pallas_src>
import functools

import jax
import jax.numpy as jnp
from jax import lax
from jax.experimental import pallas as pl
from jax.experimental.pallas import tpu as pltpu

KSIZE = 4    # conv kernel size (both layers)
STRIDE = 2
PAD = 1
CPAD = 128   # conv-1 output channels zero-padded 64 -> 128 (full lane width)


# ------------------------------ Pallas kernel ------------------------------ #

def _fused_discriminator_kernel(xs_ref, w1_ref, b1_ref, w2_ref, b2_ref,
                                o_ref, h1_ref, *, oh1, ow1, oh2, ow2):
    """One image per grid step.

    xs_ref : (1, oh1+1, ow1+1, 4*Cin)  space-to-depth of the zero-padded input
    w1_ref : (4, 4*Cin, CPAD)          conv-1 weights [bi*2+bj, (di,dj,cin), o]
    b1_ref : (1, CPAD)                 conv-1 bias (zero padded)
    w2_ref : (KSIZE, KSIZE, CPAD)      conv-2 weights [kh, kw, cin] (zero pad)
    b2_ref : (1,)  (SMEM)              conv-2 bias
    o_ref  : (1, 1, oh2, ow2)          final output tile (NCHW)
    h1_ref : (oh1+2, ow1+2, CPAD)      VMEM scratch: zero-padded conv-1 output
    """
    # Zero scratch: provides the zero padding border for conv-2.
    h1_ref[...] = jnp.zeros_like(h1_ref)

    b1 = b1_ref[...]                                              # (1, CPAD)

    # ---- conv-1 (4x4, s=2, p=1) + LeakyReLU(0.2), one output row at a time.
    # Stride-2 4x4 conv == stride-1 2x2 conv on the space-to-depth input, so
    # every in-kernel slice is static and contiguous.
    for oh in range(oh1):
        acc = jnp.zeros((ow1, CPAD), jnp.float32)
        for bi in range(2):
            for bj in range(2):
                lhs = xs_ref[0, oh + bi, bj:bj + ow1, :]          # (ow1, 4*Cin)
                acc += jnp.dot(lhs, w1_ref[bi * 2 + bj],
                               preferred_element_type=jnp.float32)
        acc += b1
        acc = jnp.where(acc >= 0.0, acc, 0.2 * acc)               # LeakyReLU
        h1_ref[oh + PAD, PAD:PAD + ow1, :] = acc

    # ---- conv-2 (4x4, s=2, p=1, Cout=1) + Sigmoid.
    # Cout == 1: VPU multiply + reduce over each contiguous 4x4xCPAD window of
    # the VMEM-resident h1 (avoids a 1-column MXU matmul / masked stores).
    w2 = w2_ref[...]                                              # (4, 4, CPAD)
    b2 = b2_ref[0]
    for r in range(oh2):
        for c in range(ow2):
            win = h1_ref[STRIDE * r:STRIDE * r + KSIZE,
                         STRIDE * c:STRIDE * c + KSIZE, :]        # (4, 4, CPAD)
            val = jnp.sum(win * w2).reshape(1, 1) + b2
            o_ref[0, 0, r:r + 1, c:c + 1] = jax.nn.sigmoid(val)


# --------------------- XLA-side layout-only preprocessing ------------------- #

def _space_to_depth(x):
    """(N, H, W, C) with even H, W -> (N, H//2, W//2, 4*C). Pure relayout."""
    n, h, w, c = x.shape
    x = x.reshape(n, h // 2, 2, w // 2, 2, c)
    x = jnp.transpose(x, (0, 1, 3, 2, 4, 5))       # (n, i, j, di, dj, c)
    return x.reshape(n, h // 2, w // 2, 4 * c)


def _conv1_weight_s2d(w1):
    """(Cout, Cin, 4, 4) -> (4, 4*Cin, CPAD) with rows [bi*2+bj, (di,dj,cin)]."""
    cout, cin, kh, kw = w1.shape
    assert kh == KSIZE and kw == KSIZE
    w = w1.reshape(cout, cin, 2, 2, 2, 2)          # (o, c, bi, di, bj, dj)
    w = jnp.transpose(w, (2, 4, 3, 5, 1, 0))       # (bi, bj, di, dj, c, o)
    w = w.reshape(4, 4 * cin, cout)
    return jnp.pad(w, ((0, 0), (0, 0), (0, CPAD - cout)))


def _conv2_weight_window(w2):
    """(1, Cin, 4, 4) -> (KSIZE, KSIZE, CPAD) as [kh, kw, cin] (zero padded)."""
    _, cin, kh, kw = w2.shape
    assert kh == KSIZE and kw == KSIZE
    w = jnp.transpose(w2[0], (1, 2, 0))            # (kh, kw, cin)
    return jnp.pad(w, ((0, 0), (0, 0), (0, CPAD - cin)))


@jax.jit
def discriminator_forward(x_nchw, params):
    """Full forward pass; input/output follow the PyTorch NCHW convention."""
    n, _, h, w = x_nchw.shape
    assert h % 2 == 0 and w % 2 == 0
    oh1, ow1 = h // 2, w // 2
    oh2, ow2 = oh1 // 2, ow1 // 2

    x = jnp.transpose(x_nchw, (0, 2, 3, 1))                          # NHWC
    x = jnp.pad(x, ((0, 0), (PAD, PAD), (PAD, PAD), (0, 0)))         # zero pad
    xs2d = _space_to_depth(x)                        # (N, oh1+1, ow1+1, 4*Cin)
    k4c = xs2d.shape[-1]

    w1 = _conv1_weight_s2d(params["w1"].astype(jnp.float32))
    b1 = jnp.pad(params["b1"].astype(jnp.float32),
                 (0, CPAD - params["b1"].shape[0])).reshape(1, CPAD)
    w2 = _conv2_weight_window(params["w2"].astype(jnp.float32))
    b2 = params["b2"].astype(jnp.float32).reshape(1)

    kernel = functools.partial(_fused_discriminator_kernel,
                               oh1=oh1, ow1=ow1, oh2=oh2, ow2=ow2)

    return pl.pallas_call(
        kernel,
        out_shape=jax.ShapeDtypeStruct((n, 1, oh2, ow2), jnp.float32),
        grid=(n,),
        in_specs=[
            pl.BlockSpec((1, oh1 + 1, ow1 + 1, k4c), lambda i: (i, 0, 0, 0)),
            pl.BlockSpec((4, k4c, CPAD), lambda i: (0, 0, 0)),
            pl.BlockSpec((1, CPAD), lambda i: (0, 0)),
            pl.BlockSpec((KSIZE, KSIZE, CPAD), lambda i: (0, 0, 0)),
            pl.BlockSpec(memory_space=pltpu.MemorySpace.SMEM),
        ],
        out_specs=pl.BlockSpec((1, 1, oh2, ow2), lambda i: (i, 0, 0, 0)),
        scratch_shapes=[
            pltpu.VMEM((oh1 + 2 * PAD, ow1 + 2 * PAD, CPAD), jnp.float32),
        ],
        compiler_params=pltpu.CompilerParams(
            dimension_semantics=("parallel",),
            vmem_limit_bytes=32 * 1024 * 1024),
    )(xs2d, w1, b1, w2, b2)


# ------------------------------ JAX reference ------------------------------- #

def reference_forward(x_nchw, params):
    dn = ("NCHW", "OIHW", "NCHW")
    h = lax.conv_general_dilated(x_nchw, params["w1"], (2, 2), ((1, 1), (1, 1)),
                                 dimension_numbers=dn)
    h = h + params["b1"].reshape(1, -1, 1, 1)
    h = jnp.where(h >= 0, h, 0.2 * h)
    o = lax.conv_general_dilated(h, params["w2"], (2, 2), ((1, 1), (1, 1)),
                                 dimension_numbers=dn)
    o = o + params["b2"].reshape(1, -1, 1, 1)
    return jax.nn.sigmoid(o)


# ---------------------------------- main ------------------------------------ #

if __name__ == "__main__":
    key = jax.random.PRNGKey(0)
    k_x, k_w1, k_b1, k_w2, k_b2 = jax.random.split(key, 5)

    # N=2, C=3 (module requires 3 input channels), H=W=16.
    x = jax.random.normal(k_x, (2, 3, 16, 16), dtype=jnp.float32)

    params = {
        # PyTorch Conv2d weight layout: (Cout, Cin, KH, KW)
        "w1": jax.random.normal(k_w1, (64, 3, 4, 4), dtype=jnp.float32) * 0.05,
        "b1": jax.random.normal(k_b1, (64,), dtype=jnp.float32) * 0.05,
        "w2": jax.random.normal(k_w2, (1, 64, 4, 4), dtype=jnp.float32) * 0.05,
        "b2": jax.random.normal(k_b2, (1,), dtype=jnp.float32) * 0.05,
    }

    out = jax.block_until_ready(discriminator_forward(x, params))
    assert out.shape == (2, 1, 4, 4), out.shape

    ref = jax.block_until_ready(reference_forward(x, params))
    assert jnp.allclose(out, ref, atol=1e-4, rtol=1e-4), float(
        jnp.max(jnp.abs(out - ref)))

    print("KERNEL_OK")
</pallas_src>

<mosaic_0001>
module attributes {stable_mosaic.version = 11 : i64} {
  func.func @_fused_discriminator_kernel(%arg0: i32, %arg1: memref<1x9x9x12xf32, #tpu.memory_space<vmem>>, %arg2: memref<4x12x128xf32, #tpu.memory_space<vmem>>, %arg3: memref<1x128xf32, #tpu.memory_space<vmem>>, %arg4: memref<4x4x128xf32, #tpu.memory_space<vmem>>, %arg5: memref<1xf32, #tpu.memory_space<smem>>, %arg6: memref<1x1x4x4xf32, #tpu.memory_space<vmem>>, %arg7: memref<10x10x128xf32, #tpu.memory_space<vmem>>) attributes {dimension_semantics = [#tpu.dimension_semantics<parallel>], iteration_bounds = array<i64: 2>, scalar_prefetch = 0 : i64, scratch_operands = 1 : i64, tpu.core_type = #tpu.core_type<tc>, window_params = [{transform_indices = @transform_0, window_bounds = array<i64: 1, 9, 9, 12>}, {pipeline_mode = #tpu.pipeline_mode<synchronous>, transform_indices = @transform_1, window_bounds = array<i64: 4, 12, 128>}, {pipeline_mode = #tpu.pipeline_mode<synchronous>, transform_indices = @transform_2, window_bounds = array<i64: 1, 128>}, {pipeline_mode = #tpu.pipeline_mode<synchronous>, transform_indices = @transform_3, window_bounds = array<i64: 4, 4, 128>}, {transform_indices = @transform_4, window_bounds = array<i64: 1>}, {transform_indices = @transform_5, window_bounds = array<i64: 1, 1, 4, 4>}]} {
    %cst = arith.constant 0.000000e+00 : f32
    %0 = vector.broadcast %cst : f32 to vector<10x10x128xf32>
    %c0 = arith.constant 0 : index
    %c0_0 = arith.constant 0 : index
    %c0_1 = arith.constant 0 : index
    %1 = vector.load %arg7[%c0, %c0_0, %c0_1] : memref<10x10x128xf32, #tpu.memory_space<vmem>>, vector<10x10x128xf32>
    tpu.vector_store %arg7[%c0, %c0_0, %c0_1], %0 {strides = array<i32>} : memref<10x10x128xf32, #tpu.memory_space<vmem>>, vector<10x10x128xf32>,
    %c0_2 = arith.constant 0 : index
    %c0_3 = arith.constant 0 : index
    %2 = vector.load %arg3[%c0_2, %c0_3] : memref<1x128xf32, #tpu.memory_space<vmem>>, vector<1x128xf32>
    %cst_4 = arith.constant 0.000000e+00 : f32
    %3 = vector.broadcast %cst_4 : f32 to vector<8x128xf32>
    %c0_5 = arith.constant 0 : index
    %c0_6 = arith.constant 0 : index
    %c0_7 = arith.constant 0 : index
    %c0_8 = arith.constant 0 : index
    %4 = vector.load %arg1[%c0_5, %c0_6, %c0_7, %c0_8] : memref<1x9x9x12xf32, #tpu.memory_space<vmem>>, vector<1x1x8x12xf32>
    %5 = vector.shape_cast %4 : vector<1x1x8x12xf32> to vector<8x12xf32>
    %c0_9 = arith.constant 0 : index
    %c0_10 = arith.constant 0 : index
    %c0_11 = arith.constant 0 : index
    %6 = vector.load %arg2[%c0_9, %c0_10, %c0_11] : memref<4x12x128xf32, #tpu.memory_space<vmem>>, vector<1x12x128xf32>
    %7 = vector.shape_cast %6 : vector<1x12x128xf32> to vector<12x128xf32>
    %cst_12 = arith.constant dense<0.000000e+00> : vector<8x128xf32>
    %8 = tpu.matmul %5, %7, %cst_12 {dimension_numbers = #tpu.dot_dimension_numbers<[1], [0], [0], [1], [0, 0, 1, 1], [], []>} : vector<8x12xf32>, vector<12x128xf32>, vector<8x128xf32> -> vector<8x128xf32>
    %9 = arith.addf %3, %8 : vector<8x128xf32>
    %c0_13 = arith.constant 0 : index
    %c0_14 = arith.constant 0 : index
    %c1 = arith.constant 1 : index
    %c0_15 = arith.constant 0 : index
    %10 = vector.load %arg1[%c0_13, %c0_14, %c1, %c0_15] : memref<1x9x9x12xf32, #tpu.memory_space<vmem>>, vector<1x1x8x12xf32>
    %11 = vector.shape_cast %10 : vector<1x1x8x12xf32> to vector<8x12xf32>
    %c1_16 = arith.constant 1 : index
    %c0_17 = arith.constant 0 : index
    %c0_18 = arith.constant 0 : index
    %12 = vector.load %arg2[%c1_16, %c0_17, %c0_18] : memref<4x12x128xf32, #tpu.memory_space<vmem>>, vector<1x12x128xf32>
    %13 = vector.shape_cast %12 : vector<1x12x128xf32> to vector<12x128xf32>
    %cst_19 = arith.constant dense<0.000000e+00> : vector<8x128xf32>
    %14 = tpu.matmul %11, %13, %cst_19 {dimension_numbers = #tpu.dot_dimension_numbers<[1], [0], [0], [1], [0, 0, 1, 1], [], []>} : vector<8x12xf32>, vector<12x128xf32>, vector<8x128xf32> -> vector<8x128xf32>
    %15 = arith.addf %9, %14 : vector<8x128xf32>
    %c0_20 = arith.constant 0 : index
    %c1_21 = arith.constant 1 : index
    %c0_22 = arith.constant 0 : index
    %c0_23 = arith.constant 0 : index
    %16 = vector.load %arg1[%c0_20, %c1_21, %c0_22, %c0_23] : memref<1x9x9x12xf32, #tpu.memory_space<vmem>>, vector<1x1x8x12xf32>
    %17 = vector.shape_cast %16 : vector<1x1x8x12xf32> to vector<8x12xf32>
    %c2 = arith.constant 2 : index
    %c0_24 = arith.constant 0 : index
    %c0_25 = arith.constant 0 : index
    %18 = vector.load %arg2[%c2, %c0_24, %c0_25] : memref<4x12x128xf32, #tpu.memory_space<vmem>>, vector<1x12x128xf32>
    %19 = vector.shape_cast %18 : vector<1x12x128xf32> to vector<12x128xf32>
    %cst_26 = arith.constant dense<0.000000e+00> : vector<8x128xf32>
    %20 = tpu.matmul %17, %19, %cst_26 {dimension_numbers = #tpu.dot_dimension_numbers<[1], [0], [0], [1], [0, 0, 1, 1], [], []>} : vector<8x12xf32>, vector<12x128xf32>, vector<8x128xf32> -> vector<8x128xf32>
    %21 = arith.addf %15, %20 : vector<8x128xf32>
    %c0_27 = arith.constant 0 : index
    %c1_28 = arith.constant 1 : index
    %c1_29 = arith.constant 1 : index
    %c0_30 = arith.constant 0 : index
    %22 = vector.load %arg1[%c0_27, %c1_28, %c1_29, %c0_30] : memref<1x9x9x12xf32, #tpu.memory_space<vmem>>, vector<1x1x8x12xf32>
    %23 = vector.shape_cast %22 : vector<1x1x8x12xf32> to vector<8x12xf32>
    %c3 = arith.constant 3 : index
    %c0_31 = arith.constant 0 : index
    %c0_32 = arith.constant 0 : index
    %24 = vector.load %arg2[%c3, %c0_31, %c0_32] : memref<4x12x128xf32, #tpu.memory_space<vmem>>, vector<1x12x128xf32>
    %25 = vector.shape_cast %24 : vector<1x12x128xf32> to vector<12x128xf32>
    %cst_33 = arith.constant dense<0.000000e+00> : vector<8x128xf32>
    %26 = tpu.matmul %23, %25, %cst_33 {dimension_numbers = #tpu.dot_dimension_numbers<[1], [0], [0], [1], [0, 0, 1, 1], [], []>} : vector<8x12xf32>, vector<12x128xf32>, vector<8x128xf32> -> vector<8x128xf32>
    %27 = arith.addf %21, %26 : vector<8x128xf32>
    %28 = vector.broadcast %2 : vector<1x128xf32> to vector<8x128xf32>
    %29 = arith.addf %27, %28 : vector<8x128xf32>
    %cst_34 = arith.constant 0.000000e+00 : f32
    %30 = vector.broadcast %cst_34 : f32 to vector<8x128xf32>
    %31 = arith.cmpf oge, %29, %30 : vector<8x128xf32>
    %cst_35 = arith.constant 2.000000e-01 : f32
    %32 = vector.broadcast %cst_35 : f32 to vector<8x128xf32>
    %33 = arith.mulf %32, %29 : vector<8x128xf32>
    %34 = arith.select %31, %29, %33 : vector<8x128xi1>, vector<8x128xf32>
    %c1_36 = arith.constant 1 : index
    %c1_37 = arith.constant 1 : index
    %c0_38 = arith.constant 0 : index
    %35 = vector.load %arg7[%c1_36, %c1_37, %c0_38] : memref<10x10x128xf32, #tpu.memory_space<vmem>>, vector<1x8x128xf32>
    %36 = vector.shape_cast %35 : vector<1x8x128xf32> to vector<8x128xf32>
    %37 = vector.shape_cast %34 : vector<8x128xf32> to vector<1x8x128xf32>
    tpu.vector_store %arg7[%c1_36, %c1_37, %c0_38], %37 {strides = array<i32>} : memref<10x10x128xf32, #tpu.memory_space<vmem>>, vector<1x8x128xf32>,
    %cst_39 = arith.constant 0.000000e+00 : f32
    %38 = vector.broadcast %cst_39 : f32 to vector<8x128xf32>
    %c0_40 = arith.constant 0 : index
    %c1_41 = arith.constant 1 : index
    %c0_42 = arith.constant 0 : index
    %c0_43 = arith.constant 0 : index
    %39 = vector.load %arg1[%c0_40, %c1_41, %c0_42, %c0_43] : memref<1x9x9x12xf32, #tpu.memory_space<vmem>>, vector<1x1x8x12xf32>
    %40 = vector.shape_cast %39 : vector<1x1x8x12xf32> to vector<8x12xf32>
    %c0_44 = arith.constant 0 : index
    %c0_45 = arith.constant 0 : index
    %c0_46 = arith.constant 0 : index
    %41 = vector.load %arg2[%c0_44, %c0_45, %c0_46] : memref<4x12x128xf32, #tpu.memory_space<vmem>>, vector<1x12x128xf32>
    %42 = vector.shape_cast %41 : vector<1x12x128xf32> to vector<12x128xf32>
    %cst_47 = arith.constant dense<0.000000e+00> : vector<8x128xf32>
    %43 = tpu.matmul %40, %42, %cst_47 {dimension_numbers = #tpu.dot_dimension_numbers<[1], [0], [0], [1], [0, 0, 1, 1], [], []>} : vector<8x12xf32>, vector<12x128xf32>, vector<8x128xf32> -> vector<8x128xf32>
    %44 = arith.addf %38, %43 : vector<8x128xf32>
    %c0_48 = arith.constant 0 : index
    %c1_49 = arith.constant 1 : index
    %c1_50 = arith.constant 1 : index
    %c0_51 = arith.constant 0 : index
    %45 = vector.load %arg1[%c0_48, %c1_49, %c1_50, %c0_51] : memref<1x9x9x12xf32, #tpu.memory_space<vmem>>, vector<1x1x8x12xf32>
    %46 = vector.shape_cast %45 : vector<1x1x8x12xf32> to vector<8x12xf32>
    %c1_52 = arith.constant 1 : index
    %c0_53 = arith.constant 0 : index
    %c0_54 = arith.constant 0 : index
    %47 = vector.load %arg2[%c1_52, %c0_53, %c0_54] : memref<4x12x128xf32, #tpu.memory_space<vmem>>, vector<1x12x128xf32>
    %48 = vector.shape_cast %47 : vector<1x12x128xf32> to vector<12x128xf32>
    %cst_55 = arith.constant dense<0.000000e+00> : vector<8x128xf32>
    %49 = tpu.matmul %46, %48, %cst_55 {dimension_numbers = #tpu.dot_dimension_numbers<[1], [0], [0], [1], [0, 0, 1, 1], [], []>} : vector<8x12xf32>, vector<12x128xf32>, vector<8x128xf32> -> vector<8x128xf32>
    %50 = arith.addf %44, %49 : vector<8x128xf32>
    %c0_56 = arith.constant 0 : index
    %c2_57 = arith.constant 2 : index
    %c0_58 = arith.constant 0 : index
    %c0_59 = arith.constant 0 : index
    %51 = vector.load %arg1[%c0_56, %c2_57, %c0_58, %c0_59] : memref<1x9x9x12xf32, #tpu.memory_space<vmem>>, vector<1x1x8x12xf32>
    %52 = vector.shape_cast %51 : vector<1x1x8x12xf32> to vector<8x12xf32>
    %c2_60 = arith.constant 2 : index
    %c0_61 = arith.constant 0 : index
    %c0_62 = arith.constant 0 : index
    %53 = vector.load %arg2[%c2_60, %c0_61, %c0_62] : memref<4x12x128xf32, #tpu.memory_space<vmem>>, vector<1x12x128xf32>
    %54 = vector.shape_cast %53 : vector<1x12x128xf32> to vector<12x128xf32>
    %cst_63 = arith.constant dense<0.000000e+00> : vector<8x128xf32>
    %55 = tpu.matmul %52, %54, %cst_63 {dimension_numbers = #tpu.dot_dimension_numbers<[1], [0], [0], [1], [0, 0, 1, 1], [], []>} : vector<8x12xf32>, vector<12x128xf32>, vector<8x128xf32> -> vector<8x128xf32>
    %56 = arith.addf %50, %55 : vector<8x128xf32>
    %c0_64 = arith.constant 0 : index
    %c2_65 = arith.constant 2 : index
    %c1_66 = arith.constant 1 : index
    %c0_67 = arith.constant 0 : index
    %57 = vector.load %arg1[%c0_64, %c2_65, %c1_66, %c0_67] : memref<1x9x9x12xf32, #tpu.memory_space<vmem>>, vector<1x1x8x12xf32>
    %58 = vector.shape_cast %57 : vector<1x1x8x12xf32> to vector<8x12xf32>
    %c3_68 = arith.constant 3 : index
    %c0_69 = arith.constant 0 : index
    %c0_70 = arith.constant 0 : index
    %59 = vector.load %arg2[%c3_68, %c0_69, %c0_70] : memref<4x12x128xf32, #tpu.memory_space<vmem>>, vector<1x12x128xf32>
    %60 = vector.shape_cast %59 : vector<1x12x128xf32> to vector<12x128xf32>
    %cst_71 = arith.constant dense<0.000000e+00> : vector<8x128xf32>
    %61 = tpu.matmul %58, %60, %cst_71 {dimension_numbers = #tpu.dot_dimension_numbers<[1], [0], [0], [1], [0, 0, 1, 1], [], []>} : vector<8x12xf32>, vector<12x128xf32>, vector<8x128xf32> -> vector<8x128xf32>
    %62 = arith.addf %56, %61 : vector<8x128xf32>
    %63 = vector.broadcast %2 : vector<1x128xf32> to vector<8x128xf32>
    %64 = arith.addf %62, %63 : vector<8x128xf32>
    %cst_72 = arith.constant 0.000000e+00 : f32
    %65 = vector.broadcast %cst_72 : f32 to vector<8x128xf32>
    %66 = arith.cmpf oge, %64, %65 : vector<8x128xf32>
    %cst_73 = arith.constant 2.000000e-01 : f32
    %67 = vector.broadcast %cst_73 : f32 to vector<8x128xf32>
    %68 = arith.mulf %67, %64 : vector<8x128xf32>
    %69 = arith.select %66, %64, %68 : vector<8x128xi1>, vector<8x128xf32>
    %c2_74 = arith.constant 2 : index
    %c1_75 = arith.constant 1 : index
    %c0_76 = arith.constant 0 : index
    %70 = vector.load %arg7[%c2_74, %c1_75, %c0_76] : memref<10x10x128xf32, #tpu.memory_space<vmem>>, vector<1x8x128xf32>
    %71 = vector.shape_cast %70 : vector<1x8x128xf32> to vector<8x128xf32>
    %72 = vector.shape_cast %69 : vector<8x128xf32> to vector<1x8x128xf32>
    tpu.vector_store %arg7[%c2_74, %c1_75, %c0_76], %72 {strides = array<i32>} : memref<10x10x128xf32, #tpu.memory_space<vmem>>, vector<1x8x128xf32>,
    %cst_77 = arith.constant 0.000000e+00 : f32
    %73 = vector.broadcast %cst_77 : f32 to vector<8x128xf32>
    %c0_78 = arith.constant 0 : index
    %c2_79 = arith.constant 2 : index
    %c0_80 = arith.constant 0 : index
    %c0_81 = arith.constant 0 : index
    %74 = vector.load %arg1[%c0_78, %c2_79, %c0_80, %c0_81] : memref<1x9x9x12xf32, #tpu.memory_space<vmem>>, vector<1x1x8x12xf32>
    %75 = vector.shape_cast %74 : vector<1x1x8x12xf32> to vector<8x12xf32>
    %c0_82 = arith.constant 0 : index
    %c0_83 = arith.constant 0 : index
    %c0_84 = arith.constant 0 : index
    %76 = vector.load %arg2[%c0_82, %c0_83, %c0_84] : memref<4x12x128xf32, #tpu.memory_space<vmem>>, vector<1x12x128xf32>
    %77 = vector.shape_cast %76 : vector<1x12x128xf32> to vector<12x128xf32>
    %cst_85 = arith.constant dense<0.000000e+00> : vector<8x128xf32>
    %78 = tpu.matmul %75, %77, %cst_85 {dimension_numbers = #tpu.dot_dimension_numbers<[1], [0], [0], [1], [0, 0, 1, 1], [], []>} : vector<8x12xf32>, vector<12x128xf32>, vector<8x128xf32> -> vector<8x128xf32>
    %79 = arith.addf %73, %78 : vector<8x128xf32>
    %c0_86 = arith.constant 0 : index
    %c2_87 = arith.constant 2 : index
    %c1_88 = arith.constant 1 : index
    %c0_89 = arith.constant 0 : index
    %80 = vector.load %arg1[%c0_86, %c2_87, %c1_88, %c0_89] : memref<1x9x9x12xf32, #tpu.memory_space<vmem>>, vector<1x1x8x12xf32>
    %81 = vector.shape_cast %80 : vector<1x1x8x12xf32> to vector<8x12xf32>
    %c1_90 = arith.constant 1 : index
    %c0_91 = arith.constant 0 : index
    %c0_92 = arith.constant 0 : index
    %82 = vector.load %arg2[%c1_90, %c0_91, %c0_92] : memref<4x12x128xf32, #tpu.memory_space<vmem>>, vector<1x12x128xf32>
    %83 = vector.shape_cast %82 : vector<1x12x128xf32> to vector<12x128xf32>
    %cst_93 = arith.constant dense<0.000000e+00> : vector<8x128xf32>
    %84 = tpu.matmul %81, %83, %cst_93 {dimension_numbers = #tpu.dot_dimension_numbers<[1], [0], [0], [1], [0, 0, 1, 1], [], []>} : vector<8x12xf32>, vector<12x128xf32>, vector<8x128xf32> -> vector<8x128xf32>
    %85 = arith.addf %79, %84 : vector<8x128xf32>
    %c0_94 = arith.constant 0 : index
    %c3_95 = arith.constant 3 : index
    %c0_96 = arith.constant 0 : index
    %c0_97 = arith.constant 0 : index
    %86 = vector.load %arg1[%c0_94, %c3_95, %c0_96, %c0_97] : memref<1x9x9x12xf32, #tpu.memory_space<vmem>>, vector<1x1x8x12xf32>
    %87 = vector.shape_cast %86 : vector<1x1x8x12xf32> to vector<8x12xf32>
    %c2_98 = arith.constant 2 : index
    %c0_99 = arith.constant 0 : index
    %c0_100 = arith.constant 0 : index
    %88 = vector.load %arg2[%c2_98, %c0_99, %c0_100] : memref<4x12x128xf32, #tpu.memory_space<vmem>>, vector<1x12x128xf32>
    %89 = vector.shape_cast %88 : vector<1x12x128xf32> to vector<12x128xf32>
    %cst_101 = arith.constant dense<0.000000e+00> : vector<8x128xf32>
    %90 = tpu.matmul %87, %89, %cst_101 {dimension_numbers = #tpu.dot_dimension_numbers<[1], [0], [0], [1], [0, 0, 1, 1], [], []>} : vector<8x12xf32>, vector<12x128xf32>, vector<8x128xf32> -> vector<8x128xf32>
    %91 = arith.addf %85, %90 : vector<8x128xf32>
    %c0_102 = arith.constant 0 : index
    %c3_103 = arith.constant 3 : index
    %c1_104 = arith.constant 1 : index
    %c0_105 = arith.constant 0 : index
    %92 = vector.load %arg1[%c0_102, %c3_103, %c1_104, %c0_105] : memref<1x9x9x12xf32, #tpu.memory_space<vmem>>, vector<1x1x8x12xf32>
    %93 = vector.shape_cast %92 : vector<1x1x8x12xf32> to vector<8x12xf32>
    %c3_106 = arith.constant 3 : index
    %c0_107 = arith.constant 0 : index
    %c0_108 = arith.constant 0 : index
    %94 = vector.load %arg2[%c3_106, %c0_107, %c0_108] : memref<4x12x128xf32, #tpu.memory_space<vmem>>, vector<1x12x128xf32>
    %95 = vector.shape_cast %94 : vector<1x12x128xf32> to vector<12x128xf32>
    %cst_109 = arith.constant dense<0.000000e+00> : vector<8x128xf32>
    %96 = tpu.matmul %93, %95, %cst_109 {dimension_numbers = #tpu.dot_dimension_numbers<[1], [0], [0], [1], [0, 0, 1, 1], [], []>} : vector<8x12xf32>, vector<12x128xf32>, vector<8x128xf32> -> vector<8x128xf32>
    %97 = arith.addf %91, %96 : vector<8x128xf32>
    %98 = vector.broadcast %2 : vector<1x128xf32> to vector<8x128xf32>
    %99 = arith.addf %97, %98 : vector<8x128xf32>
    %cst_110 = arith.constant 0.000000e+00 : f32
    %100 = vector.broadcast %cst_110 : f32 to vector<8x128xf32>
    %101 = arith.cmpf oge, %99, %100 : vector<8x128xf32>
    %cst_111 = arith.constant 2.000000e-01 : f32
    %102 = vector.broadcast %cst_111 : f32 to vector<8x128xf32>
    %103 = arith.mulf %102, %99 : vector<8x128xf32>
    %104 = arith.select %101, %99, %103 : vector<8x128xi1>, vector<8x128xf32>
    %c3_112 = arith.constant 3 : index
    %c1_113 = arith.constant 1 : index
    %c0_114 = arith.constant 0 : index
    %105 = vector.load %arg7[%c3_112, %c1_113, %c0_114] : memref<10x10x128xf32, #tpu.memory_space<vmem>>, vector<1x8x128xf32>
    %106 = vector.shape_cast %105 : vector<1x8x128xf32> to vector<8x128xf32>
    %107 = vector.shape_cast %104 : vector<8x128xf32> to vector<1x8x128xf32>
    tpu.vector_store %arg7[%c3_112, %c1_113, %c0_114], %107 {strides = array<i32>} : memref<10x10x128xf32, #tpu.memory_space<vmem>>, vector<1x8x128xf32>,
    %cst_115 = arith.constant 0.000000e+00 : f32
    %108 = vector.broadcast %cst_115 : f32 to vector<8x128xf32>
    %c0_116 = arith.constant 0 : index
    %c3_117 = arith.constant 3 : index
    %c0_118 = arith.constant 0 : index
    %c0_119 = arith.constant 0 : index
    %109 = vector.load %arg1[%c0_116, %c3_117, %c0_118, %c0_119] : memref<1x9x9x12xf32, #tpu.memory_space<vmem>>, vector<1x1x8x12xf32>
    %110 = vector.shape_cast %109 : vector<1x1x8x12xf32> to vector<8x12xf32>
    %c0_120 = arith.constant 0 : index
    %c0_121 = arith.constant 0 : index
    %c0_122 = arith.constant 0 : index
    %111 = vector.load %arg2[%c0_120, %c0_121, %c0_122] : memref<4x12x128xf32, #tpu.memory_space<vmem>>, vector<1x12x128xf32>
    %112 = vector.shape_cast %111 : vector<1x12x128xf32> to vector<12x128xf32>
    %cst_123 = arith.constant dense<0.000000e+00> : vector<8x128xf32>
    %113 = tpu.matmul %110, %112, %cst_123 {dimension_numbers = #tpu.dot_dimension_numbers<[1], [0], [0], [1], [0, 0, 1, 1], [], []>} : vector<8x12xf32>, vector<12x128xf32>, vector<8x128xf32> -> vector<8x128xf32>
    %114 = arith.addf %108, %113 : vector<8x128xf32>
    %c0_124 = arith.constant 0 : index
    %c3_125 = arith.constant 3 : index
    %c1_126 = arith.constant 1 : index
    %c0_127 = arith.constant 0 : index
    %115 = vector.load %arg1[%c0_124, %c3_125, %c1_126, %c0_127] : memref<1x9x9x12xf32, #tpu.memory_space<vmem>>, vector<1x1x8x12xf32>
    %116 = vector.shape_cast %115 : vector<1x1x8x12xf32> to vector<8x12xf32>
    %c1_128 = arith.constant 1 : index
    %c0_129 = arith.constant 0 : index
    %c0_130 = arith.constant 0 : index
    %117 = vector.load %arg2[%c1_128, %c0_129, %c0_130] : memref<4x12x128xf32, #tpu.memory_space<vmem>>, vector<1x12x128xf32>
    %118 = vector.shape_cast %117 : vector<1x12x128xf32> to vector<12x128xf32>
    %cst_131 = arith.constant dense<0.000000e+00> : vector<8x128xf32>
    %119 = tpu.matmul %116, %118, %cst_131 {dimension_numbers = #tpu.dot_dimension_numbers<[1], [0], [0], [1], [0, 0, 1, 1], [], []>} : vector<8x12xf32>, vector<12x128xf32>, vector<8x128xf32> -> vector<8x128xf32>
    %120 = arith.addf %114, %119 : vector<8x128xf32>
    %c0_132 = arith.constant 0 : index
    %c4 = arith.constant 4 : index
    %c0_133 = arith.constant 0 : index
    %c0_134 = arith.constant 0 : index
    %121 = vector.load %arg1[%c0_132, %c4, %c0_133, %c0_134] : memref<1x9x9x12xf32, #tpu.memory_space<vmem>>, vector<1x1x8x12xf32>
    %122 = vector.shape_cast %121 : vector<1x1x8x12xf32> to vector<8x12xf32>
    %c2_135 = arith.constant 2 : index
    %c0_136 = arith.constant 0 : index
    %c0_137 = arith.constant 0 : index
    %123 = vector.load %arg2[%c2_135, %c0_136, %c0_137] : memref<4x12x128xf32, #tpu.memory_space<vmem>>, vector<1x12x128xf32>
    %124 = vector.shape_cast %123 : vector<1x12x128xf32> to vector<12x128xf32>
    %cst_138 = arith.constant dense<0.000000e+00> : vector<8x128xf32>
    %125 = tpu.matmul %122, %124, %cst_138 {dimension_numbers = #tpu.dot_dimension_numbers<[1], [0], [0], [1], [0, 0, 1, 1], [], []>} : vector<8x12xf32>, vector<12x128xf32>, vector<8x128xf32> -> vector<8x128xf32>
    %126 = arith.addf %120, %125 : vector<8x128xf32>
    %c0_139 = arith.constant 0 : index
    %c4_140 = arith.constant 4 : index
    %c1_141 = arith.constant 1 : index
    %c0_142 = arith.constant 0 : index
    %127 = vector.load %arg1[%c0_139, %c4_140, %c1_141, %c0_142] : memref<1x9x9x12xf32, #tpu.memory_space<vmem>>, vector<1x1x8x12xf32>
    %128 = vector.shape_cast %127 : vector<1x1x8x12xf32> to vector<8x12xf32>
    %c3_143 = arith.constant 3 : index
    %c0_144 = arith.constant 0 : index
    %c0_145 = arith.constant 0 : index
    %129 = vector.load %arg2[%c3_143, %c0_144, %c0_145] : memref<4x12x128xf32, #tpu.memory_space<vmem>>, vector<1x12x128xf32>
    %130 = vector.shape_cast %129 : vector<1x12x128xf32> to vector<12x128xf32>
    %cst_146 = arith.constant dense<0.000000e+00> : vector<8x128xf32>
    %131 = tpu.matmul %128, %130, %cst_146 {dimension_numbers = #tpu.dot_dimension_numbers<[1], [0], [0], [1], [0, 0, 1, 1], [], []>} : vector<8x12xf32>, vector<12x128xf32>, vector<8x128xf32> -> vector<8x128xf32>
    %132 = arith.addf %126, %131 : vector<8x128xf32>
    %133 = vector.broadcast %2 : vector<1x128xf32> to vector<8x128xf32>
    %134 = arith.addf %132, %133 : vector<8x128xf32>
    %cst_147 = arith.constant 0.000000e+00 : f32
    %135 = vector.broadcast %cst_147 : f32 to vector<8x128xf32>
    %136 = arith.cmpf oge, %134, %135 : vector<8x128xf32>
    %cst_148 = arith.constant 2.000000e-01 : f32
    %137 = vector.broadcast %cst_148 : f32 to vector<8x128xf32>
    %138 = arith.mulf %137, %134 : vector<8x128xf32>
    %139 = arith.select %136, %134, %138 : vector<8x128xi1>, vector<8x128xf32>
    %c4_149 = arith.constant 4 : index
    %c1_150 = arith.constant 1 : index
    %c0_151 = arith.constant 0 : index
    %140 = vector.load %arg7[%c4_149, %c1_150, %c0_151] : memref<10x10x128xf32, #tpu.memory_space<vmem>>, vector<1x8x128xf32>
    %141 = vector.shape_cast %140 : vector<1x8x128xf32> to vector<8x128xf32>
    %142 = vector.shape_cast %139 : vector<8x128xf32> to vector<1x8x128xf32>
    tpu.vector_store %arg7[%c4_149, %c1_150, %c0_151], %142 {strides = array<i32>} : memref<10x10x128xf32, #tpu.memory_space<vmem>>, vector<1x8x128xf32>,
    %cst_152 = arith.constant 0.000000e+00 : f32
    %143 = vector.broadcast %cst_152 : f32 to vector<8x128xf32>
    %c0_153 = arith.constant 0 : index
    %c4_154 = arith.constant 4 : index
    %c0_155 = arith.constant 0 : index
    %c0_156 = arith.constant 0 : index
    %144 = vector.load %arg1[%c0_153, %c4_154, %c0_155, %c0_156] : memref<1x9x9x12xf32, #tpu.memory_space<vmem>>, vector<1x1x8x12xf32>
    %145 = vector.shape_cast %144 : vector<1x1x8x12xf32> to vector<8x12xf32>
    %c0_157 = arith.constant 0 : index
    %c0_158 = arith.constant 0 : index
    %c0_159 = arith.constant 0 : index
    %146 = vector.load %arg2[%c0_157, %c0_158, %c0_159] : memref<4x12x128xf32, #tpu.memory_space<vmem>>, vector<1x12x128xf32>
    %147 = vector.shape_cast %146 : vector<1x12x128xf32> to vector<12x128xf32>
    %cst_160 = arith.constant dense<0.000000e+00> : vector<8x128xf32>
    %148 = tpu.matmul %145, %147, %cst_160 {dimension_numbers = #tpu.dot_dimension_numbers<[1], [0], [0], [1], [0, 0, 1, 1], [], []>} : vector<8x12xf32>, vector<12x128xf32>, vector<8x128xf32> -> vector<8x128xf32>
    %149 = arith.addf %143, %148 : vector<8x128xf32>
    %c0_161 = arith.constant 0 : index
    %c4_162 = arith.constant 4 : index
    %c1_163 = arith.constant 1 : index
    %c0_164 = arith.constant 0 : index
    %150 = vector.load %arg1[%c0_161, %c4_162, %c1_163, %c0_164] : memref<1x9x9x12xf32, #tpu.memory_space<vmem>>, vector<1x1x8x12xf32>
    %151 = vector.shape_cast %150 : vector<1x1x8x12xf32> to vector<8x12xf32>
    %c1_165 = arith.constant 1 : index
    %c0_166 = arith.constant 0 : index
    %c0_167 = arith.constant 0 : index
    %152 = vector.load %arg2[%c1_165, %c0_166, %c0_167] : memref<4x12x128xf32, #tpu.memory_space<vmem>>, vector<1x12x128xf32>
    %153 = vector.shape_cast %152 : vector<1x12x128xf32> to vector<12x128xf32>
    %cst_168 = arith.constant dense<0.000000e+00> : vector<8x128xf32>
    %154 = tpu.matmul %151, %153, %cst_168 {dimension_numbers = #tpu.dot_dimension_numbers<[1], [0], [0], [1], [0, 0, 1, 1], [], []>} : vector<8x12xf32>, vector<12x128xf32>, vector<8x128xf32> -> vector<8x128xf32>
    %155 = arith.addf %149, %154 : vector<8x128xf32>
    %c0_169 = arith.constant 0 : index
    %c5 = arith.constant 5 : index
    %c0_170 = arith.constant 0 : index
    %c0_171 = arith.constant 0 : index
    %156 = vector.load %arg1[%c0_169, %c5, %c0_170, %c0_171] : memref<1x9x9x12xf32, #tpu.memory_space<vmem>>, vector<1x1x8x12xf32>
    %157 = vector.shape_cast %156 : vector<1x1x8x12xf32> to vector<8x12xf32>
    %c2_172 = arith.constant 2 : index
    %c0_173 = arith.constant 0 : index
    %c0_174 = arith.constant 0 : index
    %158 = vector.load %arg2[%c2_172, %c0_173, %c0_174] : memref<4x12x128xf32, #tpu.memory_space<vmem>>, vector<1x12x128xf32>
    %159 = vector.shape_cast %158 : vector<1x12x128xf32> to vector<12x128xf32>
    %cst_175 = arith.constant dense<0.000000e+00> : vector<8x128xf32>
    %160 = tpu.matmul %157, %159, %cst_175 {dimension_numbers = #tpu.dot_dimension_numbers<[1], [0], [0], [1], [0, 0, 1, 1], [], []>} : vector<8x12xf32>, vector<12x128xf32>, vector<8x128xf32> -> vector<8x128xf32>
    %161 = arith.addf %155, %160 : vector<8x128xf32>
    %c0_176 = arith.constant 0 : index
    %c5_177 = arith.constant 5 : index
    %c1_178 = arith.constant 1 : index
    %c0_179 = arith.constant 0 : index
    %162 = vector.load %arg1[%c0_176, %c5_177, %c1_178, %c0_179] : memref<1x9x9x12xf32, #tpu.memory_space<vmem>>, vector<1x1x8x12xf32>
    %163 = vector.shape_cast %162 : vector<1x1x8x12xf32> to vector<8x12xf32>
    %c3_180 = arith.constant 3 : index
    %c0_181 = arith.constant 0 : index
    %c0_182 = arith.constant 0 : index
    %164 = vector.load %arg2[%c3_180, %c0_181, %c0_182] : memref<4x12x128xf32, #tpu.memory_space<vmem>>, vector<1x12x128xf32>
    %165 = vector.shape_cast %164 : vector<1x12x128xf32> to vector<12x128xf32>
    %cst_183 = arith.constant dense<0.000000e+00> : vector<8x128xf32>
    %166 = tpu.matmul %163, %165, %cst_183 {dimension_numbers = #tpu.dot_dimension_numbers<[1], [0], [0], [1], [0, 0, 1, 1], [], []>} : vector<8x12xf32>, vector<12x128xf32>, vector<8x128xf32> -> vector<8x128xf32>
    %167 = arith.addf %161, %166 : vector<8x128xf32>
    %168 = vector.broadcast %2 : vector<1x128xf32> to vector<8x128xf32>
    %169 = arith.addf %167, %168 : vector<8x128xf32>
    %cst_184 = arith.constant 0.000000e+00 : f32
    %170 = vector.broadcast %cst_184 : f32 to vector<8x128xf32>
    %171 = arith.cmpf oge, %169, %170 : vector<8x128xf32>
    %cst_185 = arith.constant 2.000000e-01 : f32
    %172 = vector.broadcast %cst_185 : f32 to vector<8x128xf32>
    %173 = arith.mulf %172, %169 : vector<8x128xf32>
    %174 = arith.select %171, %169, %173 : vector<8x128xi1>, vector<8x128xf32>
    %c5_186 = arith.constant 5 : index
    %c1_187 = arith.constant 1 : index
    %c0_188 = arith.constant 0 : index
    %175 = vector.load %arg7[%c5_186, %c1_187, %c0_188] : memref<10x10x128xf32, #tpu.memory_space<vmem>>, vector<1x8x128xf32>
    %176 = vector.shape_cast %175 : vector<1x8x128xf32> to vector<8x128xf32>
    %177 = vector.shape_cast %174 : vector<8x128xf32> to vector<1x8x128xf32>
    tpu.vector_store %arg7[%c5_186, %c1_187, %c0_188], %177 {strides = array<i32>} : memref<10x10x128xf32, #tpu.memory_space<vmem>>, vector<1x8x128xf32>,
    %cst_189 = arith.constant 0.000000e+00 : f32
    %178 = vector.broadcast %cst_189 : f32 to vector<8x128xf32>
    %c0_190 = arith.constant 0 : index
    %c5_191 = arith.constant 5 : index
    %c0_192 = arith.constant 0 : index
    %c0_193 = arith.constant 0 : index
    %179 = vector.load %arg1[%c0_190, %c5_191, %c0_192, %c0_193] : memref<1x9x9x12xf32, #tpu.memory_space<vmem>>, vector<1x1x8x12xf32>
    %180 = vector.shape_cast %179 : vector<1x1x8x12xf32> to vector<8x12xf32>
    %c0_194 = arith.constant 0 : index
    %c0_195 = arith.constant 0 : index
    %c0_196 = arith.constant 0 : index
    %181 = vector.load %arg2[%c0_194, %c0_195, %c0_196] : memref<4x12x128xf32, #tpu.memory_space<vmem>>, vector<1x12x128xf32>
    %182 = vector.shape_cast %181 : vector<1x12x128xf32> to vector<12x128xf32>
    %cst_197 = arith.constant dense<0.000000e+00> : vector<8x128xf32>
    %183 = tpu.matmul %180, %182, %cst_197 {dimension_numbers = #tpu.dot_dimension_numbers<[1], [0], [0], [1], [0, 0, 1, 1], [], []>} : vector<8x12xf32>, vector<12x128xf32>, vector<8x128xf32> -> vector<8x128xf32>
    %184 = arith.addf %178, %183 : vector<8x128xf32>
    %c0_198 = arith.constant 0 : index
    %c5_199 = arith.constant 5 : index
    %c1_200 = arith.constant 1 : index
    %c0_201 = arith.constant 0 : index
    %185 = vector.load %arg1[%c0_198, %c5_199, %c1_200, %c0_201] : memref<1x9x9x12xf32, #tpu.memory_space<vmem>>, vector<1x1x8x12xf32>
    %186 = vector.shape_cast %185 : vector<1x1x8x12xf32> to vector<8x12xf32>
    %c1_202 = arith.constant 1 : index
    %c0_203 = arith.constant 0 : index
    %c0_204 = arith.constant 0 : index
    %187 = vector.load %arg2[%c1_202, %c0_203, %c0_204] : memref<4x12x128xf32, #tpu.memory_space<vmem>>, vector<1x12x128xf32>
    %188 = vector.shape_cast %187 : vector<1x12x128xf32> to vector<12x128xf32>
    %cst_205 = arith.constant dense<0.000000e+00> : vector<8x128xf32>
    %189 = tpu.matmul %186, %188, %cst_205 {dimension_numbers = #tpu.dot_dimension_numbers<[1], [0], [0], [1], [0, 0, 1, 1], [], []>} : vector<8x12xf32>, vector<12x128xf32>, vector<8x128xf32> -> vector<8x128xf32>
    %190 = arith.addf %184, %189 : vector<8x128xf32>
    %c0_206 = arith.constant 0 : index
    %c6 = arith.constant 6 : index
    %c0_207 = arith.constant 0 : index
    %c0_208 = arith.constant 0 : index
    %191 = vector.load %arg1[%c0_206, %c6, %c0_207, %c0_208] : memref<1x9x9x12xf32, #tpu.memory_space<vmem>>, vector<1x1x8x12xf32>
    %192 = vector.shape_cast %191 : vector<1x1x8x12xf32> to vector<8x12xf32>
    %c2_209 = arith.constant 2 : index
    %c0_210 = arith.constant 0 : index
    %c0_211 = arith.constant 0 : index
    %193 = vector.load %arg2[%c2_209, %c0_210, %c0_211] : memref<4x12x128xf32, #tpu.memory_space<vmem>>, vector<1x12x128xf32>
    %194 = vector.shape_cast %193 : vector<1x12x128xf32> to vector<12x128xf32>
    %cst_212 = arith.constant dense<0.000000e+00> : vector<8x128xf32>
    %195 = tpu.matmul %192, %194, %cst_212 {dimension_numbers = #tpu.dot_dimension_numbers<[1], [0], [0], [1], [0, 0, 1, 1], [], []>} : vector<8x12xf32>, vector<12x128xf32>, vector<8x128xf32> -> vector<8x128xf32>
    %196 = arith.addf %190, %195 : vector<8x128xf32>
    %c0_213 = arith.constant 0 : index
    %c6_214 = arith.constant 6 : index
    %c1_215 = arith.constant 1 : index
    %c0_216 = arith.constant 0 : index
    %197 = vector.load %arg1[%c0_213, %c6_214, %c1_215, %c0_216] : memref<1x9x9x12xf32, #tpu.memory_space<vmem>>, vector<1x1x8x12xf32>
    %198 = vector.shape_cast %197 : vector<1x1x8x12xf32> to vector<8x12xf32>
    %c3_217 = arith.constant 3 : index
    %c0_218 = arith.constant 0 : index
    %c0_219 = arith.constant 0 : index
    %199 = vector.load %arg2[%c3_217, %c0_218, %c0_219] : memref<4x12x128xf32, #tpu.memory_space<vmem>>, vector<1x12x128xf32>
    %200 = vector.shape_cast %199 : vector<1x12x128xf32> to vector<12x128xf32>
    %cst_220 = arith.constant dense<0.000000e+00> : vector<8x128xf32>
    %201 = tpu.matmul %198, %200, %cst_220 {dimension_numbers = #tpu.dot_dimension_numbers<[1], [0], [0], [1], [0, 0, 1, 1], [], []>} : vector<8x12xf32>, vector<12x128xf32>, vector<8x128xf32> -> vector<8x128xf32>
    %202 = arith.addf %196, %201 : vector<8x128xf32>
    %203 = vector.broadcast %2 : vector<1x128xf32> to vector<8x128xf32>
    %204 = arith.addf %202, %203 : vector<8x128xf32>
    %cst_221 = arith.constant 0.000000e+00 : f32
    %205 = vector.broadcast %cst_221 : f32 to vector<8x128xf32>
    %206 = arith.cmpf oge, %204, %205 : vector<8x128xf32>
    %cst_222 = arith.constant 2.000000e-01 : f32
    %207 = vector.broadcast %cst_222 : f32 to vector<8x128xf32>
    %208 = arith.mulf %207, %204 : vector<8x128xf32>
    %209 = arith.select %206, %204, %208 : vector<8x128xi1>, vector<8x128xf32>
    %c6_223 = arith.constant 6 : index
    %c1_224 = arith.constant 1 : index
    %c0_225 = arith.constant 0 : index
    %210 = vector.load %arg7[%c6_223, %c1_224, %c0_225] : memref<10x10x128xf32, #tpu.memory_space<vmem>>, vector<1x8x128xf32>
    %211 = vector.shape_cast %210 : vector<1x8x128xf32> to vector<8x128xf32>
    %212 = vector.shape_cast %209 : vector<8x128xf32> to vector<1x8x128xf32>
    tpu.vector_store %arg7[%c6_223, %c1_224, %c0_225], %212 {strides = array<i32>} : memref<10x10x128xf32, #tpu.memory_space<vmem>>, vector<1x8x128xf32>,
    %cst_226 = arith.constant 0.000000e+00 : f32
    %213 = vector.broadcast %cst_226 : f32 to vector<8x128xf32>
    %c0_227 = arith.constant 0 : index
    %c6_228 = arith.constant 6 : index
    %c0_229 = arith.constant 0 : index
    %c0_230 = arith.constant 0 : index
    %214 = vector.load %arg1[%c0_227, %c6_228, %c0_229, %c0_230] : memref<1x9x9x12xf32, #tpu.memory_space<vmem>>, vector<1x1x8x12xf32>
    %215 = vector.shape_cast %214 : vector<1x1x8x12xf32> to vector<8x12xf32>
    %c0_231 = arith.constant 0 : index
    %c0_232 = arith.constant 0 : index
    %c0_233 = arith.constant 0 : index
    %216 = vector.load %arg2[%c0_231, %c0_232, %c0_233] : memref<4x12x128xf32, #tpu.memory_space<vmem>>, vector<1x12x128xf32>
    %217 = vector.shape_cast %216 : vector<1x12x128xf32> to vector<12x128xf32>
    %cst_234 = arith.constant dense<0.000000e+00> : vector<8x128xf32>
    %218 = tpu.matmul %215, %217, %cst_234 {dimension_numbers = #tpu.dot_dimension_numbers<[1], [0], [0], [1], [0, 0, 1, 1], [], []>} : vector<8x12xf32>, vector<12x128xf32>, vector<8x128xf32> -> vector<8x128xf32>
    %219 = arith.addf %213, %218 : vector<8x128xf32>
    %c0_235 = arith.constant 0 : index
    %c6_236 = arith.constant 6 : index
    %c1_237 = arith.constant 1 : index
    %c0_238 = arith.constant 0 : index
    %220 = vector.load %arg1[%c0_235, %c6_236, %c1_237, %c0_238] : memref<1x9x9x12xf32, #tpu.memory_space<vmem>>, vector<1x1x8x12xf32>
    %221 = vector.shape_cast %220 : vector<1x1x8x12xf32> to vector<8x12xf32>
    %c1_239 = arith.constant 1 : index
    %c0_240 = arith.constant 0 : index
    %c0_241 = arith.constant 0 : index
    %222 = vector.load %arg2[%c1_239, %c0_240, %c0_241] : memref<4x12x128xf32, #tpu.memory_space<vmem>>, vector<1x12x128xf32>
    %223 = vector.shape_cast %222 : vector<1x12x128xf32> to vector<12x128xf32>
    %cst_242 = arith.constant dense<0.000000e+00> : vector<8x128xf32>
    %224 = tpu.matmul %221, %223, %cst_242 {dimension_numbers = #tpu.dot_dimension_numbers<[1], [0], [0], [1], [0, 0, 1, 1], [], []>} : vector<8x12xf32>, vector<12x128xf32>, vector<8x128xf32> -> vector<8x128xf32>
    %225 = arith.addf %219, %224 : vector<8x128xf32>
    %c0_243 = arith.constant 0 : index
    %c7 = arith.constant 7 : index
    %c0_244 = arith.constant 0 : index
    %c0_245 = arith.constant 0 : index
    %226 = vector.load %arg1[%c0_243, %c7, %c0_244, %c0_245] : memref<1x9x9x12xf32, #tpu.memory_space<vmem>>, vector<1x1x8x12xf32>
    %227 = vector.shape_cast %226 : vector<1x1x8x12xf32> to vector<8x12xf32>
    %c2_246 = arith.constant 2 : index
    %c0_247 = arith.constant 0 : index
    %c0_248 = arith.constant 0 : index
    %228 = vector.load %arg2[%c2_246, %c0_247, %c0_248] : memref<4x12x128xf32, #tpu.memory_space<vmem>>, vector<1x12x128xf32>
    %229 = vector.shape_cast %228 : vector<1x12x128xf32> to vector<12x128xf32>
    %cst_249 = arith.constant dense<0.000000e+00> : vector<8x128xf32>
    %230 = tpu.matmul %227, %229, %cst_249 {dimension_numbers = #tpu.dot_dimension_numbers<[1], [0], [0], [1], [0, 0, 1, 1], [], []>} : vector<8x12xf32>, vector<12x128xf32>, vector<8x128xf32> -> vector<8x128xf32>
    %231 = arith.addf %225, %230 : vector<8x128xf32>
    %c0_250 = arith.constant 0 : index
    %c7_251 = arith.constant 7 : index
    %c1_252 = arith.constant 1 : index
    %c0_253 = arith.constant 0 : index
    %232 = vector.load %arg1[%c0_250, %c7_251, %c1_252, %c0_253] : memref<1x9x9x12xf32, #tpu.memory_space<vmem>>, vector<1x1x8x12xf32>
    %233 = vector.shape_cast %232 : vector<1x1x8x12xf32> to vector<8x12xf32>
    %c3_254 = arith.constant 3 : index
    %c0_255 = arith.constant 0 : index
    %c0_256 = arith.constant 0 : index
    %234 = vector.load %arg2[%c3_254, %c0_255, %c0_256] : memref<4x12x128xf32, #tpu.memory_space<vmem>>, vector<1x12x128xf32>
    %235 = vector.shape_cast %234 : vector<1x12x128xf32> to vector<12x128xf32>
    %cst_257 = arith.constant dense<0.000000e+00> : vector<8x128xf32>
    %236 = tpu.matmul %233, %235, %cst_257 {dimension_numbers = #tpu.dot_dimension_numbers<[1], [0], [0], [1], [0, 0, 1, 1], [], []>} : vector<8x12xf32>, vector<12x128xf32>, vector<8x128xf32> -> vector<8x128xf32>
    %237 = arith.addf %231, %236 : vector<8x128xf32>
    %238 = vector.broadcast %2 : vector<1x128xf32> to vector<8x128xf32>
    %239 = arith.addf %237, %238 : vector<8x128xf32>
    %cst_258 = arith.constant 0.000000e+00 : f32
    %240 = vector.broadcast %cst_258 : f32 to vector<8x128xf32>
    %241 = arith.cmpf oge, %239, %240 : vector<8x128xf32>
    %cst_259 = arith.constant 2.000000e-01 : f32
    %242 = vector.broadcast %cst_259 : f32 to vector<8x128xf32>
    %243 = arith.mulf %242, %239 : vector<8x128xf32>
    %244 = arith.select %241, %239, %243 : vector<8x128xi1>, vector<8x128xf32>
    %c7_260 = arith.constant 7 : index
    %c1_261 = arith.constant 1 : index
    %c0_262 = arith.constant 0 : index
    %245 = vector.load %arg7[%c7_260, %c1_261, %c0_262] : memref<10x10x128xf32, #tpu.memory_space<vmem>>, vector<1x8x128xf32>
    %246 = vector.shape_cast %245 : vector<1x8x128xf32> to vector<8x128xf32>
    %247 = vector.shape_cast %244 : vector<8x128xf32> to vector<1x8x128xf32>
    tpu.vector_store %arg7[%c7_260, %c1_261, %c0_262], %247 {strides = array<i32>} : memref<10x10x128xf32, #tpu.memory_space<vmem>>, vector<1x8x128xf32>,
    %cst_263 = arith.constant 0.000000e+00 : f32
    %248 = vector.broadcast %cst_263 : f32 to vector<8x128xf32>
    %c0_264 = arith.constant 0 : index
    %c7_265 = arith.constant 7 : index
    %c0_266 = arith.constant 0 : index
    %c0_267 = arith.constant 0 : index
    %249 = vector.load %arg1[%c0_264, %c7_265, %c0_266, %c0_267] : memref<1x9x9x12xf32, #tpu.memory_space<vmem>>, vector<1x1x8x12xf32>
    %250 = vector.shape_cast %249 : vector<1x1x8x12xf32> to vector<8x12xf32>
    %c0_268 = arith.constant 0 : index
    %c0_269 = arith.constant 0 : index
    %c0_270 = arith.constant 0 : index
    %251 = vector.load %arg2[%c0_268, %c0_269, %c0_270] : memref<4x12x128xf32, #tpu.memory_space<vmem>>, vector<1x12x128xf32>
    %252 = vector.shape_cast %251 : vector<1x12x128xf32> to vector<12x128xf32>
    %cst_271 = arith.constant dense<0.000000e+00> : vector<8x128xf32>
    %253 = tpu.matmul %250, %252, %cst_271 {dimension_numbers = #tpu.dot_dimension_numbers<[1], [0], [0], [1], [0, 0, 1, 1], [], []>} : vector<8x12xf32>, vector<12x128xf32>, vector<8x128xf32> -> vector<8x128xf32>
    %254 = arith.addf %248, %253 : vector<8x128xf32>
    %c0_272 = arith.constant 0 : index
    %c7_273 = arith.constant 7 : index
    %c1_274 = arith.constant 1 : index
    %c0_275 = arith.constant 0 : index
    %255 = vector.load %arg1[%c0_272, %c7_273, %c1_274, %c0_275] : memref<1x9x9x12xf32, #tpu.memory_space<vmem>>, vector<1x1x8x12xf32>
    %256 = vector.shape_cast %255 : vector<1x1x8x12xf32> to vector<8x12xf32>
    %c1_276 = arith.constant 1 : index
    %c0_277 = arith.constant 0 : index
    %c0_278 = arith.constant 0 : index
    %257 = vector.load %arg2[%c1_276, %c0_277, %c0_278] : memref<4x12x128xf32, #tpu.memory_space<vmem>>, vector<1x12x128xf32>
    %258 = vector.shape_cast %257 : vector<1x12x128xf32> to vector<12x128xf32>
    %cst_279 = arith.constant dense<0.000000e+00> : vector<8x128xf32>
    %259 = tpu.matmul %256, %258, %cst_279 {dimension_numbers = #tpu.dot_dimension_numbers<[1], [0], [0], [1], [0, 0, 1, 1], [], []>} : vector<8x12xf32>, vector<12x128xf32>, vector<8x128xf32> -> vector<8x128xf32>
    %260 = arith.addf %254, %259 : vector<8x128xf32>
    %c0_280 = arith.constant 0 : index
    %c8 = arith.constant 8 : index
    %c0_281 = arith.constant 0 : index
    %c0_282 = arith.constant 0 : index
    %261 = vector.load %arg1[%c0_280, %c8, %c0_281, %c0_282] : memref<1x9x9x12xf32, #tpu.memory_space<vmem>>, vector<1x1x8x12xf32>
    %262 = vector.shape_cast %261 : vector<1x1x8x12xf32> to vector<8x12xf32>
    %c2_283 = arith.constant 2 : index
    %c0_284 = arith.constant 0 : index
    %c0_285 = arith.constant 0 : index
    %263 = vector.load %arg2[%c2_283, %c0_284, %c0_285] : memref<4x12x128xf32, #tpu.memory_space<vmem>>, vector<1x12x128xf32>
    %264 = vector.shape_cast %263 : vector<1x12x128xf32> to vector<12x128xf32>
    %cst_286 = arith.constant dense<0.000000e+00> : vector<8x128xf32>
    %265 = tpu.matmul %262, %264, %cst_286 {dimension_numbers = #tpu.dot_dimension_numbers<[1], [0], [0], [1], [0, 0, 1, 1], [], []>} : vector<8x12xf32>, vector<12x128xf32>, vector<8x128xf32> -> vector<8x128xf32>
    %266 = arith.addf %260, %265 : vector<8x128xf32>
    %c0_287 = arith.constant 0 : index
    %c8_288 = arith.constant 8 : index
    %c1_289 = arith.constant 1 : index
    %c0_290 = arith.constant 0 : index
    %267 = vector.load %arg1[%c0_287, %c8_288, %c1_289, %c0_290] : memref<1x9x9x12xf32, #tpu.memory_space<vmem>>, vector<1x1x8x12xf32>
    %268 = vector.shape_cast %267 : vector<1x1x8x12xf32> to vector<8x12xf32>
    %c3_291 = arith.constant 3 : index
    %c0_292 = arith.constant 0 : index
    %c0_293 = arith.constant 0 : index
    %269 = vector.load %arg2[%c3_291, %c0_292, %c0_293] : memref<4x12x128xf32, #tpu.memory_space<vmem>>, vector<1x12x128xf32>
    %270 = vector.shape_cast %269 : vector<1x12x128xf32> to vector<12x128xf32>
    %cst_294 = arith.constant dense<0.000000e+00> : vector<8x128xf32>
    %271 = tpu.matmul %268, %270, %cst_294 {dimension_numbers = #tpu.dot_dimension_numbers<[1], [0], [0], [1], [0, 0, 1, 1], [], []>} : vector<8x12xf32>, vector<12x128xf32>, vector<8x128xf32> -> vector<8x128xf32>
    %272 = arith.addf %266, %271 : vector<8x128xf32>
    %273 = vector.broadcast %2 : vector<1x128xf32> to vector<8x128xf32>
    %274 = arith.addf %272, %273 : vector<8x128xf32>
    %cst_295 = arith.constant 0.000000e+00 : f32
    %275 = vector.broadcast %cst_295 : f32 to vector<8x128xf32>
    %276 = arith.cmpf oge, %274, %275 : vector<8x128xf32>
    %cst_296 = arith.constant 2.000000e-01 : f32
    %277 = vector.broadcast %cst_296 : f32 to vector<8x128xf32>
    %278 = arith.mulf %277, %274 : vector<8x128xf32>
    %279 = arith.select %276, %274, %278 : vector<8x128xi1>, vector<8x128xf32>
    %c8_297 = arith.constant 8 : index
    %c1_298 = arith.constant 1 : index
    %c0_299 = arith.constant 0 : index
    %280 = vector.load %arg7[%c8_297, %c1_298, %c0_299] : memref<10x10x128xf32, #tpu.memory_space<vmem>>, vector<1x8x128xf32>
    %281 = vector.shape_cast %280 : vector<1x8x128xf32> to vector<8x128xf32>
    %282 = vector.shape_cast %279 : vector<8x128xf32> to vector<1x8x128xf32>
    tpu.vector_store %arg7[%c8_297, %c1_298, %c0_299], %282 {strides = array<i32>} : memref<10x10x128xf32, #tpu.memory_space<vmem>>, vector<1x8x128xf32>,
    %c0_300 = arith.constant 0 : index
    %c0_301 = arith.constant 0 : index
    %c0_302 = arith.constant 0 : index
    %283 = vector.load %arg4[%c0_300, %c0_301, %c0_302] : memref<4x4x128xf32, #tpu.memory_space<vmem>>, vector<4x4x128xf32>
    %c0_303 = arith.constant 0 : index
    %284 = memref.load %arg5[%c0_303] : memref<1xf32, #tpu.memory_space<smem>>
    %c0_304 = arith.constant 0 : index
    %c0_305 = arith.constant 0 : index
    %c0_306 = arith.constant 0 : index
    %285 = vector.load %arg7[%c0_304, %c0_305, %c0_306] : memref<10x10x128xf32, #tpu.memory_space<vmem>>, vector<4x4x128xf32>
    %286 = arith.mulf %285, %283 : vector<4x4x128xf32>
    %287 = vector.shape_cast %286 : vector<4x4x128xf32> to vector<1x4x4x128xf32>
    %cst_307 = arith.constant dense<0.000000e+00> : vector<1xf32>
    %288 = vector.multi_reduction <add>, %287, %cst_307 [1, 2, 3] : vector<1x4x4x128xf32> to vector<1xf32>
    %289 = vector.shape_cast %288 : vector<1xf32> to vector<1x1x1x1xf32>
    %290 = vector.extract %289[0, 0, 0, 0] : f32 from vector<1x1x1x1xf32>
    %291 = vector.broadcast %290 : f32 to vector<1x1xf32>
    %292 = vector.broadcast %284 : f32 to vector<1x1xf32>
    %293 = arith.addf %291, %292 : vector<1x1xf32>
    %294 = arith.negf %293 : vector<1x1xf32>
    %295 = math.exp %294 : vector<1x1xf32>
    %cst_308 = arith.constant 1.000000e+00 : f32
    %296 = vector.broadcast %cst_308 : f32 to vector<1x1xf32>
    %297 = arith.addf %296, %295 : vector<1x1xf32>
    %298 = arith.divf %296, %297 : vector<1x1xf32>
    %c0_309 = arith.constant 0 : index
    %c0_310 = arith.constant 0 : index
    %c0_311 = arith.constant 0 : index
    %c0_312 = arith.constant 0 : index
    %299 = vector.load %arg6[%c0_309, %c0_310, %c0_311, %c0_312] : memref<1x1x4x4xf32, #tpu.memory_space<vmem>>, vector<1x1x1x1xf32>
    %300 = vector.shape_cast %299 : vector<1x1x1x1xf32> to vector<1x1xf32>
    %301 = vector.shape_cast %298 : vector<1x1xf32> to vector<1x1x1x1xf32>
    tpu.vector_store %arg6[%c0_309, %c0_310, %c0_311, %c0_312], %301 {strides = array<i32>} : memref<1x1x4x4xf32, #tpu.memory_space<vmem>>, vector<1x1x1x1xf32>,
    %c0_313 = arith.constant 0 : index
    %c2_314 = arith.constant 2 : index
    %c0_315 = arith.constant 0 : index
    %302 = vector.load %arg7[%c0_313, %c2_314, %c0_315] : memref<10x10x128xf32, #tpu.memory_space<vmem>>, vector<4x4x128xf32>
    %303 = arith.mulf %302, %283 : vector<4x4x128xf32>
    %304 = vector.shape_cast %303 : vector<4x4x128xf32> to vector<1x4x4x128xf32>
    %cst_316 = arith.constant dense<0.000000e+00> : vector<1xf32>
    %305 = vector.multi_reduction <add>, %304, %cst_316 [1, 2, 3] : vector<1x4x4x128xf32> to vector<1xf32>
    %306 = vector.shape_cast %305 : vector<1xf32> to vector<1x1x1x1xf32>
    %307 = vector.extract %306[0, 0, 0, 0] : f32 from vector<1x1x1x1xf32>
    %308 = vector.broadcast %307 : f32 to vector<1x1xf32>
    %309 = vector.broadcast %284 : f32 to vector<1x1xf32>
    %310 = arith.addf %308, %309 : vector<1x1xf32>
    %311 = arith.negf %310 : vector<1x1xf32>
    %312 = math.exp %311 : vector<1x1xf32>
    %cst_317 = arith.constant 1.000000e+00 : f32
    %313 = vector.broadcast %cst_317 : f32 to vector<1x1xf32>
    %314 = arith.addf %313, %312 : vector<1x1xf32>
    %315 = arith.divf %313, %314 : vector<1x1xf32>
    %c0_318 = arith.constant 0 : index
    %c0_319 = arith.constant 0 : index
    %c0_320 = arith.constant 0 : index
    %c1_321 = arith.constant 1 : index
    %316 = vector.load %arg6[%c0_318, %c0_319, %c0_320, %c1_321] : memref<1x1x4x4xf32, #tpu.memory_space<vmem>>, vector<1x1x1x1xf32>
    %317 = vector.shape_cast %316 : vector<1x1x1x1xf32> to vector<1x1xf32>
    %318 = vector.shape_cast %315 : vector<1x1xf32> to vector<1x1x1x1xf32>
    tpu.vector_store %arg6[%c0_318, %c0_319, %c0_320, %c1_321], %318 {strides = array<i32>} : memref<1x1x4x4xf32, #tpu.memory_space<vmem>>, vector<1x1x1x1xf32>,
    %c0_322 = arith.constant 0 : index
    %c4_323 = arith.constant 4 : index
    %c0_324 = arith.constant 0 : index
    %319 = vector.load %arg7[%c0_322, %c4_323, %c0_324] : memref<10x10x128xf32, #tpu.memory_space<vmem>>, vector<4x4x128xf32>
    %320 = arith.mulf %319, %283 : vector<4x4x128xf32>
    %321 = vector.shape_cast %320 : vector<4x4x128xf32> to vector<1x4x4x128xf32>
    %cst_325 = arith.constant dense<0.000000e+00> : vector<1xf32>
    %322 = vector.multi_reduction <add>, %321, %cst_325 [1, 2, 3] : vector<1x4x4x128xf32> to vector<1xf32>
    %323 = vector.shape_cast %322 : vector<1xf32> to vector<1x1x1x1xf32>
    %324 = vector.extract %323[0, 0, 0, 0] : f32 from vector<1x1x1x1xf32>
    %325 = vector.broadcast %324 : f32 to vector<1x1xf32>
    %326 = vector.broadcast %284 : f32 to vector<1x1xf32>
    %327 = arith.addf %325, %326 : vector<1x1xf32>
    %328 = arith.negf %327 : vector<1x1xf32>
    %329 = math.exp %328 : vector<1x1xf32>
    %cst_326 = arith.constant 1.000000e+00 : f32
    %330 = vector.broadcast %cst_326 : f32 to vector<1x1xf32>
    %331 = arith.addf %330, %329 : vector<1x1xf32>
    %332 = arith.divf %330, %331 : vector<1x1xf32>
    %c0_327 = arith.constant 0 : index
    %c0_328 = arith.constant 0 : index
    %c0_329 = arith.constant 0 : index
    %c2_330 = arith.constant 2 : index
    %333 = vector.load %arg6[%c0_327, %c0_328, %c0_329, %c2_330] : memref<1x1x4x4xf32, #tpu.memory_space<vmem>>, vector<1x1x1x1xf32>
    %334 = vector.shape_cast %333 : vector<1x1x1x1xf32> to vector<1x1xf32>
    %335 = vector.shape_cast %332 : vector<1x1xf32> to vector<1x1x1x1xf32>
    tpu.vector_store %arg6[%c0_327, %c0_328, %c0_329, %c2_330], %335 {strides = array<i32>} : memref<1x1x4x4xf32, #tpu.memory_space<vmem>>, vector<1x1x1x1xf32>,
    %c0_331 = arith.constant 0 : index
    %c6_332 = arith.constant 6 : index
    %c0_333 = arith.constant 0 : index
    %336 = vector.load %arg7[%c0_331, %c6_332, %c0_333] : memref<10x10x128xf32, #tpu.memory_space<vmem>>, vector<4x4x128xf32>
    %337 = arith.mulf %336, %283 : vector<4x4x128xf32>
    %338 = vector.shape_cast %337 : vector<4x4x128xf32> to vector<1x4x4x128xf32>
    %cst_334 = arith.constant dense<0.000000e+00> : vector<1xf32>
    %339 = vector.multi_reduction <add>, %338, %cst_334 [1, 2, 3] : vector<1x4x4x128xf32> to vector<1xf32>
    %340 = vector.shape_cast %339 : vector<1xf32> to vector<1x1x1x1xf32>
    %341 = vector.extract %340[0, 0, 0, 0] : f32 from vector<1x1x1x1xf32>
    %342 = vector.broadcast %341 : f32 to vector<1x1xf32>
    %343 = vector.broadcast %284 : f32 to vector<1x1xf32>
    %344 = arith.addf %342, %343 : vector<1x1xf32>
    %345 = arith.negf %344 : vector<1x1xf32>
    %346 = math.exp %345 : vector<1x1xf32>
    %cst_335 = arith.constant 1.000000e+00 : f32
    %347 = vector.broadcast %cst_335 : f32 to vector<1x1xf32>
    %348 = arith.addf %347, %346 : vector<1x1xf32>
    %349 = arith.divf %347, %348 : vector<1x1xf32>
    %c0_336 = arith.constant 0 : index
    %c0_337 = arith.constant 0 : index
    %c0_338 = arith.constant 0 : index
    %c3_339 = arith.constant 3 : index
    %350 = vector.load %arg6[%c0_336, %c0_337, %c0_338, %c3_339] : memref<1x1x4x4xf32, #tpu.memory_space<vmem>>, vector<1x1x1x1xf32>
    %351 = vector.shape_cast %350 : vector<1x1x1x1xf32> to vector<1x1xf32>
    %352 = vector.shape_cast %349 : vector<1x1xf32> to vector<1x1x1x1xf32>
    tpu.vector_store %arg6[%c0_336, %c0_337, %c0_338, %c3_339], %352 {strides = array<i32>} : memref<1x1x4x4xf32, #tpu.memory_space<vmem>>, vector<1x1x1x1xf32>,
    %c2_340 = arith.constant 2 : index
    %c0_341 = arith.constant 0 : index
    %c0_342 = arith.constant 0 : index
    %353 = vector.load %arg7[%c2_340, %c0_341, %c0_342] : memref<10x10x128xf32, #tpu.memory_space<vmem>>, vector<4x4x128xf32>
    %354 = arith.mulf %353, %283 : vector<4x4x128xf32>
    %355 = vector.shape_cast %354 : vector<4x4x128xf32> to vector<1x4x4x128xf32>
    %cst_343 = arith.constant dense<0.000000e+00> : vector<1xf32>
    %356 = vector.multi_reduction <add>, %355, %cst_343 [1, 2, 3] : vector<1x4x4x128xf32> to vector<1xf32>
    %357 = vector.shape_cast %356 : vector<1xf32> to vector<1x1x1x1xf32>
    %358 = vector.extract %357[0, 0, 0, 0] : f32 from vector<1x1x1x1xf32>
    %359 = vector.broadcast %358 : f32 to vector<1x1xf32>
    %360 = vector.broadcast %284 : f32 to vector<1x1xf32>
    %361 = arith.addf %359, %360 : vector<1x1xf32>
    %362 = arith.negf %361 : vector<1x1xf32>
    %363 = math.exp %362 : vector<1x1xf32>
    %cst_344 = arith.constant 1.000000e+00 : f32
    %364 = vector.broadcast %cst_344 : f32 to vector<1x1xf32>
    %365 = arith.addf %364, %363 : vector<1x1xf32>
    %366 = arith.divf %364, %365 : vector<1x1xf32>
    %c0_345 = arith.constant 0 : index
    %c0_346 = arith.constant 0 : index
    %c1_347 = arith.constant 1 : index
    %c0_348 = arith.constant 0 : index
    %367 = vector.load %arg6[%c0_345, %c0_346, %c1_347, %c0_348] : memref<1x1x4x4xf32, #tpu.memory_space<vmem>>, vector<1x1x1x1xf32>
    %368 = vector.shape_cast %367 : vector<1x1x1x1xf32> to vector<1x1xf32>
    %369 = vector.shape_cast %366 : vector<1x1xf32> to vector<1x1x1x1xf32>
    tpu.vector_store %arg6[%c0_345, %c0_346, %c1_347, %c0_348], %369 {strides = array<i32>} : memref<1x1x4x4xf32, #tpu.memory_space<vmem>>, vector<1x1x1x1xf32>,
    %c2_349 = arith.constant 2 : index
    %c2_350 = arith.constant 2 : index
    %c0_351 = arith.constant 0 : index
    %370 = vector.load %arg7[%c2_349, %c2_350, %c0_351] : memref<10x10x128xf32, #tpu.memory_space<vmem>>, vector<4x4x128xf32>
    %371 = arith.mulf %370, %283 : vector<4x4x128xf32>
    %372 = vector.shape_cast %371 : vector<4x4x128xf32> to vector<1x4x4x128xf32>
    %cst_352 = arith.constant dense<0.000000e+00> : vector<1xf32>
    %373 = vector.multi_reduction <add>, %372, %cst_352 [1, 2, 3] : vector<1x4x4x128xf32> to vector<1xf32>
    %374 = vector.shape_cast %373 : vector<1xf32> to vector<1x1x1x1xf32>
    %375 = vector.extract %374[0, 0, 0, 0] : f32 from vector<1x1x1x1xf32>
    %376 = vector.broadcast %375 : f32 to vector<1x1xf32>
    %377 = vector.broadcast %284 : f32 to vector<1x1xf32>
    %378 = arith.addf %376, %377 : vector<1x1xf32>
    %379 = arith.negf %378 : vector<1x1xf32>
    %380 = math.exp %379 : vector<1x1xf32>
    %cst_353 = arith.constant 1.000000e+00 : f32
    %381 = vector.broadcast %cst_353 : f32 to vector<1x1xf32>
    %382 = arith.addf %381, %380 : vector<1x1xf32>
    %383 = arith.divf %381, %382 : vector<1x1xf32>
    %c0_354 = arith.constant 0 : index
    %c0_355 = arith.constant 0 : index
    %c1_356 = arith.constant 1 : index
    %c1_357 = arith.constant 1 : index
    %384 = vector.load %arg6[%c0_354, %c0_355, %c1_356, %c1_357] : memref<1x1x4x4xf32, #tpu.memory_space<vmem>>, vector<1x1x1x1xf32>
    %385 = vector.shape_cast %384 : vector<1x1x1x1xf32> to vector<1x1xf32>
    %386 = vector.shape_cast %383 : vector<1x1xf32> to vector<1x1x1x1xf32>
    tpu.vector_store %arg6[%c0_354, %c0_355, %c1_356, %c1_357], %386 {strides = array<i32>} : memref<1x1x4x4xf32, #tpu.memory_space<vmem>>, vector<1x1x1x1xf32>,
    %c2_358 = arith.constant 2 : index
    %c4_359 = arith.constant 4 : index
    %c0_360 = arith.constant 0 : index
    %387 = vector.load %arg7[%c2_358, %c4_359, %c0_360] : memref<10x10x128xf32, #tpu.memory_space<vmem>>, vector<4x4x128xf32>
    %388 = arith.mulf %387, %283 : vector<4x4x128xf32>
    %389 = vector.shape_cast %388 : vector<4x4x128xf32> to vector<1x4x4x128xf32>
    %cst_361 = arith.constant dense<0.000000e+00> : vector<1xf32>
    %390 = vector.multi_reduction <add>, %389, %cst_361 [1, 2, 3] : vector<1x4x4x128xf32> to vector<1xf32>
    %391 = vector.shape_cast %390 : vector<1xf32> to vector<1x1x1x1xf32>
    %392 = vector.extract %391[0, 0, 0, 0] : f32 from vector<1x1x1x1xf32>
    %393 = vector.broadcast %392 : f32 to vector<1x1xf32>
    %394 = vector.broadcast %284 : f32 to vector<1x1xf32>
    %395 = arith.addf %393, %394 : vector<1x1xf32>
    %396 = arith.negf %395 : vector<1x1xf32>
    %397 = math.exp %396 : vector<1x1xf32>
    %cst_362 = arith.constant 1.000000e+00 : f32
    %398 = vector.broadcast %cst_362 : f32 to vector<1x1xf32>
    %399 = arith.addf %398, %397 : vector<1x1xf32>
    %400 = arith.divf %398, %399 : vector<1x1xf32>
    %c0_363 = arith.constant 0 : index
    %c0_364 = arith.constant 0 : index
    %c1_365 = arith.constant 1 : index
    %c2_366 = arith.constant 2 : index
    %401 = vector.load %arg6[%c0_363, %c0_364, %c1_365, %c2_366] : memref<1x1x4x4xf32, #tpu.memory_space<vmem>>, vector<1x1x1x1xf32>
    %402 = vector.shape_cast %401 : vector<1x1x1x1xf32> to vector<1x1xf32>
    %403 = vector.shape_cast %400 : vector<1x1xf32> to vector<1x1x1x1xf32>
    tpu.vector_store %arg6[%c0_363, %c0_364, %c1_365, %c2_366], %403 {strides = array<i32>} : memref<1x1x4x4xf32, #tpu.memory_space<vmem>>, vector<1x1x1x1xf32>,
    %c2_367 = arith.constant 2 : index
    %c6_368 = arith.constant 6 : index
    %c0_369 = arith.constant 0 : index
    %404 = vector.load %arg7[%c2_367, %c6_368, %c0_369] : memref<10x10x128xf32, #tpu.memory_space<vmem>>, vector<4x4x128xf32>
    %405 = arith.mulf %404, %283 : vector<4x4x128xf32>
    %406 = vector.shape_cast %405 : vector<4x4x128xf32> to vector<1x4x4x128xf32>
    %cst_370 = arith.constant dense<0.000000e+00> : vector<1xf32>
    %407 = vector.multi_reduction <add>, %406, %cst_370 [1, 2, 3] : vector<1x4x4x128xf32> to vector<1xf32>
    %408 = vector.shape_cast %407 : vector<1xf32> to vector<1x1x1x1xf32>
    %409 = vector.extract %408[0, 0, 0, 0] : f32 from vector<1x1x1x1xf32>
    %410 = vector.broadcast %409 : f32 to vector<1x1xf32>
    %411 = vector.broadcast %284 : f32 to vector<1x1xf32>
    %412 = arith.addf %410, %411 : vector<1x1xf32>
    %413 = arith.negf %412 : vector<1x1xf32>
    %414 = math.exp %413 : vector<1x1xf32>
    %cst_371 = arith.constant 1.000000e+00 : f32
    %415 = vector.broadcast %cst_371 : f32 to vector<1x1xf32>
    %416 = arith.addf %415, %414 : vector<1x1xf32>
    %417 = arith.divf %415, %416 : vector<1x1xf32>
    %c0_372 = arith.constant 0 : index
    %c0_373 = arith.constant 0 : index
    %c1_374 = arith.constant 1 : index
    %c3_375 = arith.constant 3 : index
    %418 = vector.load %arg6[%c0_372, %c0_373, %c1_374, %c3_375] : memref<1x1x4x4xf32, #tpu.memory_space<vmem>>, vector<1x1x1x1xf32>
    %419 = vector.shape_cast %418 : vector<1x1x1x1xf32> to vector<1x1xf32>
    %420 = vector.shape_cast %417 : vector<1x1xf32> to vector<1x1x1x1xf32>
    tpu.vector_store %arg6[%c0_372, %c0_373, %c1_374, %c3_375], %420 {strides = array<i32>} : memref<1x1x4x4xf32, #tpu.memory_space<vmem>>, vector<1x1x1x1xf32>,
    %c4_376 = arith.constant 4 : index
    %c0_377 = arith.constant 0 : index
    %c0_378 = arith.constant 0 : index
    %421 = vector.load %arg7[%c4_376, %c0_377, %c0_378] : memref<10x10x128xf32, #tpu.memory_space<vmem>>, vector<4x4x128xf32>
    %422 = arith.mulf %421, %283 : vector<4x4x128xf32>
    %423 = vector.shape_cast %422 : vector<4x4x128xf32> to vector<1x4x4x128xf32>
    %cst_379 = arith.constant dense<0.000000e+00> : vector<1xf32>
    %424 = vector.multi_reduction <add>, %423, %cst_379 [1, 2, 3] : vector<1x4x4x128xf32> to vector<1xf32>
    %425 = vector.shape_cast %424 : vector<1xf32> to vector<1x1x1x1xf32>
    %426 = vector.extract %425[0, 0, 0, 0] : f32 from vector<1x1x1x1xf32>
    %427 = vector.broadcast %426 : f32 to vector<1x1xf32>
    %428 = vector.broadcast %284 : f32 to vector<1x1xf32>
    %429 = arith.addf %427, %428 : vector<1x1xf32>
    %430 = arith.negf %429 : vector<1x1xf32>
    %431 = math.exp %430 : vector<1x1xf32>
    %cst_380 = arith.constant 1.000000e+00 : f32
    %432 = vector.broadcast %cst_380 : f32 to vector<1x1xf32>
    %433 = arith.addf %432, %431 : vector<1x1xf32>
    %434 = arith.divf %432, %433 : vector<1x1xf32>
    %c0_381 = arith.constant 0 : index
    %c0_382 = arith.constant 0 : index
    %c2_383 = arith.constant 2 : index
    %c0_384 = arith.constant 0 : index
    %435 = vector.load %arg6[%c0_381, %c0_382, %c2_383, %c0_384] : memref<1x1x4x4xf32, #tpu.memory_space<vmem>>, vector<1x1x1x1xf32>
    %436 = vector.shape_cast %435 : vector<1x1x1x1xf32> to vector<1x1xf32>
    %437 = vector.shape_cast %434 : vector<1x1xf32> to vector<1x1x1x1xf32>
    tpu.vector_store %arg6[%c0_381, %c0_382, %c2_383, %c0_384], %437 {strides = array<i32>} : memref<1x1x4x4xf32, #tpu.memory_space<vmem>>, vector<1x1x1x1xf32>,
    %c4_385 = arith.constant 4 : index
    %c2_386 = arith.constant 2 : index
    %c0_387 = arith.constant 0 : index
    %438 = vector.load %arg7[%c4_385, %c2_386, %c0_387] : memref<10x10x128xf32, #tpu.memory_space<vmem>>, vector<4x4x128xf32>
    %439 = arith.mulf %438, %283 : vector<4x4x128xf32>
    %440 = vector.shape_cast %439 : vector<4x4x128xf32> to vector<1x4x4x128xf32>
    %cst_388 = arith.constant dense<0.000000e+00> : vector<1xf32>
    %441 = vector.multi_reduction <add>, %440, %cst_388 [1, 2, 3] : vector<1x4x4x128xf32> to vector<1xf32>
    %442 = vector.shape_cast %441 : vector<1xf32> to vector<1x1x1x1xf32>
    %443 = vector.extract %442[0, 0, 0, 0] : f32 from vector<1x1x1x1xf32>
    %444 = vector.broadcast %443 : f32 to vector<1x1xf32>
    %445 = vector.broadcast %284 : f32 to vector<1x1xf32>
    %446 = arith.addf %444, %445 : vector<1x1xf32>
    %447 = arith.negf %446 : vector<1x1xf32>
    %448 = math.exp %447 : vector<1x1xf32>
    %cst_389 = arith.constant 1.000000e+00 : f32
    %449 = vector.broadcast %cst_389 : f32 to vector<1x1xf32>
    %450 = arith.addf %449, %448 : vector<1x1xf32>
    %451 = arith.divf %449, %450 : vector<1x1xf32>
    %c0_390 = arith.constant 0 : index
    %c0_391 = arith.constant 0 : index
    %c2_392 = arith.constant 2 : index
    %c1_393 = arith.constant 1 : index
    %452 = vector.load %arg6[%c0_390, %c0_391, %c2_392, %c1_393] : memref<1x1x4x4xf32, #tpu.memory_space<vmem>>, vector<1x1x1x1xf32>
    %453 = vector.shape_cast %452 : vector<1x1x1x1xf32> to vector<1x1xf32>
    %454 = vector.shape_cast %451 : vector<1x1xf32> to vector<1x1x1x1xf32>
    tpu.vector_store %arg6[%c0_390, %c0_391, %c2_392, %c1_393], %454 {strides = array<i32>} : memref<1x1x4x4xf32, #tpu.memory_space<vmem>>, vector<1x1x1x1xf32>,
    %c4_394 = arith.constant 4 : index
    %c4_395 = arith.constant 4 : index
    %c0_396 = arith.constant 0 : index
    %455 = vector.load %arg7[%c4_394, %c4_395, %c0_396] : memref<10x10x128xf32, #tpu.memory_space<vmem>>, vector<4x4x128xf32>
    %456 = arith.mulf %455, %283 : vector<4x4x128xf32>
    %457 = vector.shape_cast %456 : vector<4x4x128xf32> to vector<1x4x4x128xf32>
    %cst_397 = arith.constant dense<0.000000e+00> : vector<1xf32>
    %458 = vector.multi_reduction <add>, %457, %cst_397 [1, 2, 3] : vector<1x4x4x128xf32> to vector<1xf32>
    %459 = vector.shape_cast %458 : vector<1xf32> to vector<1x1x1x1xf32>
    %460 = vector.extract %459[0, 0, 0, 0] : f32 from vector<1x1x1x1xf32>
    %461 = vector.broadcast %460 : f32 to vector<1x1xf32>
    %462 = vector.broadcast %284 : f32 to vector<1x1xf32>
    %463 = arith.addf %461, %462 : vector<1x1xf32>
    %464 = arith.negf %463 : vector<1x1xf32>
    %465 = math.exp %464 : vector<1x1xf32>
    %cst_398 = arith.constant 1.000000e+00 : f32
    %466 = vector.broadcast %cst_398 : f32 to vector<1x1xf32>
    %467 = arith.addf %466, %465 : vector<1x1xf32>
    %468 = arith.divf %466, %467 : vector<1x1xf32>
    %c0_399 = arith.constant 0 : index
    %c0_400 = arith.constant 0 : index
    %c2_401 = arith.constant 2 : index
    %c2_402 = arith.constant 2 : index
    %469 = vector.load %arg6[%c0_399, %c0_400, %c2_401, %c2_402] : memref<1x1x4x4xf32, #tpu.memory_space<vmem>>, vector<1x1x1x1xf32>
    %470 = vector.shape_cast %469 : vector<1x1x1x1xf32> to vector<1x1xf32>
    %471 = vector.shape_cast %468 : vector<1x1xf32> to vector<1x1x1x1xf32>
    tpu.vector_store %arg6[%c0_399, %c0_400, %c2_401, %c2_402], %471 {strides = array<i32>} : memref<1x1x4x4xf32, #tpu.memory_space<vmem>>, vector<1x1x1x1xf32>,
    %c4_403 = arith.constant 4 : index
    %c6_404 = arith.constant 6 : index
    %c0_405 = arith.constant 0 : index
    %472 = vector.load %arg7[%c4_403, %c6_404, %c0_405] : memref<10x10x128xf32, #tpu.memory_space<vmem>>, vector<4x4x128xf32>
    %473 = arith.mulf %472, %283 : vector<4x4x128xf32>
    %474 = vector.shape_cast %473 : vector<4x4x128xf32> to vector<1x4x4x128xf32>
    %cst_406 = arith.constant dense<0.000000e+00> : vector<1xf32>
    %475 = vector.multi_reduction <add>, %474, %cst_406 [1, 2, 3] : vector<1x4x4x128xf32> to vector<1xf32>
    %476 = vector.shape_cast %475 : vector<1xf32> to vector<1x1x1x1xf32>
    %477 = vector.extract %476[0, 0, 0, 0] : f32 from vector<1x1x1x1xf32>
    %478 = vector.broadcast %477 : f32 to vector<1x1xf32>
    %479 = vector.broadcast %284 : f32 to vector<1x1xf32>
    %480 = arith.addf %478, %479 : vector<1x1xf32>
    %481 = arith.negf %480 : vector<1x1xf32>
    %482 = math.exp %481 : vector<1x1xf32>
    %cst_407 = arith.constant 1.000000e+00 : f32
    %483 = vector.broadcast %cst_407 : f32 to vector<1x1xf32>
    %484 = arith.addf %483, %482 : vector<1x1xf32>
    %485 = arith.divf %483, %484 : vector<1x1xf32>
    %c0_408 = arith.constant 0 : index
    %c0_409 = arith.constant 0 : index
    %c2_410 = arith.constant 2 : index
    %c3_411 = arith.constant 3 : index
    %486 = vector.load %arg6[%c0_408, %c0_409, %c2_410, %c3_411] : memref<1x1x4x4xf32, #tpu.memory_space<vmem>>, vector<1x1x1x1xf32>
    %487 = vector.shape_cast %486 : vector<1x1x1x1xf32> to vector<1x1xf32>
    %488 = vector.shape_cast %485 : vector<1x1xf32> to vector<1x1x1x1xf32>
    tpu.vector_store %arg6[%c0_408, %c0_409, %c2_410, %c3_411], %488 {strides = array<i32>} : memref<1x1x4x4xf32, #tpu.memory_space<vmem>>, vector<1x1x1x1xf32>,
    %c6_412 = arith.constant 6 : index
    %c0_413 = arith.constant 0 : index
    %c0_414 = arith.constant 0 : index
    %489 = vector.load %arg7[%c6_412, %c0_413, %c0_414] : memref<10x10x128xf32, #tpu.memory_space<vmem>>, vector<4x4x128xf32>
    %490 = arith.mulf %489, %283 : vector<4x4x128xf32>
    %491 = vector.shape_cast %490 : vector<4x4x128xf32> to vector<1x4x4x128xf32>
    %cst_415 = arith.constant dense<0.000000e+00> : vector<1xf32>
    %492 = vector.multi_reduction <add>, %491, %cst_415 [1, 2, 3] : vector<1x4x4x128xf32> to vector<1xf32>
    %493 = vector.shape_cast %492 : vector<1xf32> to vector<1x1x1x1xf32>
    %494 = vector.extract %493[0, 0, 0, 0] : f32 from vector<1x1x1x1xf32>
    %495 = vector.broadcast %494 : f32 to vector<1x1xf32>
    %496 = vector.broadcast %284 : f32 to vector<1x1xf32>
    %497 = arith.addf %495, %496 : vector<1x1xf32>
    %498 = arith.negf %497 : vector<1x1xf32>
    %499 = math.exp %498 : vector<1x1xf32>
    %cst_416 = arith.constant 1.000000e+00 : f32
    %500 = vector.broadcast %cst_416 : f32 to vector<1x1xf32>
    %501 = arith.addf %500, %499 : vector<1x1xf32>
    %502 = arith.divf %500, %501 : vector<1x1xf32>
    %c0_417 = arith.constant 0 : index
    %c0_418 = arith.constant 0 : index
    %c3_419 = arith.constant 3 : index
    %c0_420 = arith.constant 0 : index
    %503 = vector.load %arg6[%c0_417, %c0_418, %c3_419, %c0_420] : memref<1x1x4x4xf32, #tpu.memory_space<vmem>>, vector<1x1x1x1xf32>
    %504 = vector.shape_cast %503 : vector<1x1x1x1xf32> to vector<1x1xf32>
    %505 = vector.shape_cast %502 : vector<1x1xf32> to vector<1x1x1x1xf32>
    tpu.vector_store %arg6[%c0_417, %c0_418, %c3_419, %c0_420], %505 {strides = array<i32>} : memref<1x1x4x4xf32, #tpu.memory_space<vmem>>, vector<1x1x1x1xf32>,
    %c6_421 = arith.constant 6 : index
    %c2_422 = arith.constant 2 : index
    %c0_423 = arith.constant 0 : index
    %506 = vector.load %arg7[%c6_421, %c2_422, %c0_423] : memref<10x10x128xf32, #tpu.memory_space<vmem>>, vector<4x4x128xf32>
    %507 = arith.mulf %506, %283 : vector<4x4x128xf32>
    %508 = vector.shape_cast %507 : vector<4x4x128xf32> to vector<1x4x4x128xf32>
    %cst_424 = arith.constant dense<0.000000e+00> : vector<1xf32>
    %509 = vector.multi_reduction <add>, %508, %cst_424 [1, 2, 3] : vector<1x4x4x128xf32> to vector<1xf32>
    %510 = vector.shape_cast %509 : vector<1xf32> to vector<1x1x1x1xf32>
    %511 = vector.extract %510[0, 0, 0, 0] : f32 from vector<1x1x1x1xf32>
    %512 = vector.broadcast %511 : f32 to vector<1x1xf32>
    %513 = vector.broadcast %284 : f32 to vector<1x1xf32>
    %514 = arith.addf %512, %513 : vector<1x1xf32>
    %515 = arith.negf %514 : vector<1x1xf32>
    %516 = math.exp %515 : vector<1x1xf32>
    %cst_425 = arith.constant 1.000000e+00 : f32
    %517 = vector.broadcast %cst_425 : f32 to vector<1x1xf32>
    %518 = arith.addf %517, %516 : vector<1x1xf32>
    %519 = arith.divf %517, %518 : vector<1x1xf32>
    %c0_426 = arith.constant 0 : index
    %c0_427 = arith.constant 0 : index
    %c3_428 = arith.constant 3 : index
    %c1_429 = arith.constant 1 : index
    %520 = vector.load %arg6[%c0_426, %c0_427, %c3_428, %c1_429] : memref<1x1x4x4xf32, #tpu.memory_space<vmem>>, vector<1x1x1x1xf32>
    %521 = vector.shape_cast %520 : vector<1x1x1x1xf32> to vector<1x1xf32>
    %522 = vector.shape_cast %519 : vector<1x1xf32> to vector<1x1x1x1xf32>
    tpu.vector_store %arg6[%c0_426, %c0_427, %c3_428, %c1_429], %522 {strides = array<i32>} : memref<1x1x4x4xf32, #tpu.memory_space<vmem>>, vector<1x1x1x1xf32>,
    %c6_430 = arith.constant 6 : index
    %c4_431 = arith.constant 4 : index
    %c0_432 = arith.constant 0 : index
    %523 = vector.load %arg7[%c6_430, %c4_431, %c0_432] : memref<10x10x128xf32, #tpu.memory_space<vmem>>, vector<4x4x128xf32>
    %524 = arith.mulf %523, %283 : vector<4x4x128xf32>
    %525 = vector.shape_cast %524 : vector<4x4x128xf32> to vector<1x4x4x128xf32>
    %cst_433 = arith.constant dense<0.000000e+00> : vector<1xf32>
    %526 = vector.multi_reduction <add>, %525, %cst_433 [1, 2, 3] : vector<1x4x4x128xf32> to vector<1xf32>
    %527 = vector.shape_cast %526 : vector<1xf32> to vector<1x1x1x1xf32>
    %528 = vector.extract %527[0, 0, 0, 0] : f32 from vector<1x1x1x1xf32>
    %529 = vector.broadcast %528 : f32 to vector<1x1xf32>
    %530 = vector.broadcast %284 : f32 to vector<1x1xf32>
    %531 = arith.addf %529, %530 : vector<1x1xf32>
    %532 = arith.negf %531 : vector<1x1xf32>
    %533 = math.exp %532 : vector<1x1xf32>
    %cst_434 = arith.constant 1.000000e+00 : f32
    %534 = vector.broadcast %cst_434 : f32 to vector<1x1xf32>
    %535 = arith.addf %534, %533 : vector<1x1xf32>
    %536 = arith.divf %534, %535 : vector<1x1xf32>
    %c0_435 = arith.constant 0 : index
    %c0_436 = arith.constant 0 : index
    %c3_437 = arith.constant 3 : index
    %c2_438 = arith.constant 2 : index
    %537 = vector.load %arg6[%c0_435, %c0_436, %c3_437, %c2_438] : memref<1x1x4x4xf32, #tpu.memory_space<vmem>>, vector<1x1x1x1xf32>
    %538 = vector.shape_cast %537 : vector<1x1x1x1xf32> to vector<1x1xf32>
    %539 = vector.shape_cast %536 : vector<1x1xf32> to vector<1x1x1x1xf32>
    tpu.vector_store %arg6[%c0_435, %c0_436, %c3_437, %c2_438], %539 {strides = array<i32>} : memref<1x1x4x4xf32, #tpu.memory_space<vmem>>, vector<1x1x1x1xf32>,
    %c6_439 = arith.constant 6 : index
    %c6_440 = arith.constant 6 : index
    %c0_441 = arith.constant 0 : index
    %540 = vector.load %arg7[%c6_439, %c6_440, %c0_441] : memref<10x10x128xf32, #tpu.memory_space<vmem>>, vector<4x4x128xf32>
    %541 = arith.mulf %540, %283 : vector<4x4x128xf32>
    %542 = vector.shape_cast %541 : vector<4x4x128xf32> to vector<1x4x4x128xf32>
    %cst_442 = arith.constant dense<0.000000e+00> : vector<1xf32>
    %543 = vector.multi_reduction <add>, %542, %cst_442 [1, 2, 3] : vector<1x4x4x128xf32> to vector<1xf32>
    %544 = vector.shape_cast %543 : vector<1xf32> to vector<1x1x1x1xf32>
    %545 = vector.extract %544[0, 0, 0, 0] : f32 from vector<1x1x1x1xf32>
    %546 = vector.broadcast %545 : f32 to vector<1x1xf32>
    %547 = vector.broadcast %284 : f32 to vector<1x1xf32>
    %548 = arith.addf %546, %547 : vector<1x1xf32>
    %549 = arith.negf %548 : vector<1x1xf32>
    %550 = math.exp %549 : vector<1x1xf32>
    %cst_443 = arith.constant 1.000000e+00 : f32
    %551 = vector.broadcast %cst_443 : f32 to vector<1x1xf32>
    %552 = arith.addf %551, %550 : vector<1x1xf32>
    %553 = arith.divf %551, %552 : vector<1x1xf32>
    %c0_444 = arith.constant 0 : index
    %c0_445 = arith.constant 0 : index
    %c3_446 = arith.constant 3 : index
    %c3_447 = arith.constant 3 : index
    %554 = vector.load %arg6[%c0_444, %c0_445, %c3_446, %c3_447] : memref<1x1x4x4xf32, #tpu.memory_space<vmem>>, vector<1x1x1x1xf32>
    %555 = vector.shape_cast %554 : vector<1x1x1x1xf32> to vector<1x1xf32>
    %556 = vector.shape_cast %553 : vector<1x1xf32> to vector<1x1x1x1xf32>
    tpu.vector_store %arg6[%c0_444, %c0_445, %c3_446, %c3_447], %556 {strides = array<i32>} : memref<1x1x4x4xf32, #tpu.memory_space<vmem>>, vector<1x1x1x1xf32>,
    return
  }
  func.func @transform_0(%arg0: i32) -> (i32, i32, i32, i32) {
    %c0_i32 = arith.constant 0 : i32
    %c0_i32_0 = arith.constant 0 : i32
    %c0_i32_1 = arith.constant 0 : i32
    %c0_i32_2 = arith.constant 0 : i32
    return %arg0, %c0_i32, %c0_i32_0, %c0_i32_1 : i32, i32, i32, i32
  }
  func.func @transform_1(%arg0: i32) -> (i32, i32, i32) {
    %c0_i32 = arith.constant 0 : i32
    %c0_i32_0 = arith.constant 0 : i32
    %c0_i32_1 = arith.constant 0 : i32
    %c0_i32_2 = arith.constant 0 : i32
    return %c0_i32, %c0_i32_0, %c0_i32_1 : i32, i32, i32
  }
  func.func @transform_2(%arg0: i32) -> (i32, i32) {
    %c0_i32 = arith.constant 0 : i32
    %c0_i32_0 = arith.constant 0 : i32
    %c0_i32_1 = arith.constant 0 : i32
    return %c0_i32, %c0_i32_0 : i32, i32
  }
  func.func @transform_3(%arg0: i32) -> (i32, i32, i32) {
    %c0_i32 = arith.constant 0 : i32
    %c0_i32_0 = arith.constant 0 : i32
    %c0_i32_1 = arith.constant 0 : i32
    %c0_i32_2 = arith.constant 0 : i32
    return %c0_i32, %c0_i32_0, %c0_i32_1 : i32, i32, i32
  }
  func.func @transform_4(%arg0: i32) -> i32 {
    %c0_i32 = arith.constant 0 : i32
    %c0_i32_0 = arith.constant 0 : i32
    return %c0_i32 : i32
  }
  func.func @transform_5(%arg0: i32) -> (i32, i32, i32, i32) {
    %c0_i32 = arith.constant 0 : i32
    %c0_i32_0 = arith.constant 0 : i32
    %c0_i32_1 = arith.constant 0 : i32
    %c0_i32_2 = arith.constant 0 : i32
    return %arg0, %c0_i32, %c0_i32_0, %c0_i32_1 : i32, i32, i32, i32
  }
}

</mosaic_0001>

<bundles_post_ra>
// kernel: discriminator_forward.1
= control target key start
LH: loop header
LB: loop body
LE: loop exit
PB: predicated region body
PF: predicated region fallthrough
CT: control target
= control target key end

     0   :  { %s5037_s0 = inlined_call_operand.vmem [shape: f32[2,9,9,12], index: 0, kind: input, shape index: {}]   ;;  %s5038_s1 = inlined_call_operand.vmem [shape: f32[4,12,128], index: 1, kind: input, shape index: {}]   ;;  %s5039_s2 = inlined_call_operand.vmem [shape: f32[1,128], index: 2, kind: input, shape index: {}]   ;;  %s5040_s3 = inlined_call_operand.vmem [shape: f32[4,4,128], index: 3, kind: input, shape index: {}]   ;;  %s5041_s4 = inlined_call_operand.<no memory space> [shape: f32[1], index: 4, kind: input, shape index: {}]   ;;  %s5042_s5 = inlined_call_operand.hbm [shape: f32[2,1,4,4], index: 5, kind: output, shape index: {}]  }
   0x1   :  { %10 = sst [smem:[#allocation3]] %s5041_s4 }
   0x2   :  { %11 = vsyncpa [#allocation5], 0 }
   0x3   :  { %13 = vsyncpa [#allocation5 + $0x1], 0  ;;  %s4326_s20 = smov 0   ;;  %s4328_s21 = smov 0  }
   0x4   :  { %s4330_s22 = smov 0   ;;  %s4332_s23 = smov 0  }
   0x5 LB: > { %s4347_s4 = sadd.s32 4294967295, %s4286_s23   ;;  %s3467_s24 = sadd.s32 4294967294, %s4286_s23   ;;  %s4286_s23 = sphi %s4332_s23, %s5050_s23   ;;  %s4282_s22 = sphi %s4330_s22, %s5049_s22   ;;  %s4278_s21 = sphi %s4328_s21, %s5048_s21   ;;  %s4274_s20 = sphi %s4326_s20, %s5047_s20  }
   0x6   : > { %s4351_s25 = sadd.s32 1, %s4286_s23   ;;  %s136_s26 = sadd.s32 1, %s4282_s22 }
   0x7   : > { %s133_s27 = ssub.s32 %s4286_s23, %s4351_s25  ;;  %p146_p0 = scmp.ne.s32.totalorder %s4282_s22, %s4278_s21 }
   0x8   : > { %p134_p1 = scmp.eq.s32.totalorder %s133_s27, 0  ;;  %p147_p2 = scmp.eq.s32.totalorder %s4347_s4, 1 }
   0x9   : > { %p152_p3 = scmp.ne.s32.totalorder %s4278_s21, %s4274_s20  ;;  %p153_p4 = scmp.eq.s32.totalorder %s3467_s24, 1 }
   0xa   : > { %s4362_s28 = scalar_select %p134_p1, %s4282_s22, %s136_s26  }
   0xb   : > { %p4364_p5 = por %p147_p2, %p146_p0  ;;  %p4368_p6 = por %p153_p4, %p152_p3 }
   0xc   : > { %p3470_p7 = scmp.ge.s32.totalorder %s4286_s23, 1  ;;  %p191_p8 = scmp.lt.s32.totalorder %s4286_s23, 3 }
   0xe   : > { %p192_p9 = pnand %p3470_p7, %p191_p8 }
   0xf   : > { %v4377_v0 = vld [vmem:[%s5038_s1 + $0x10] sm:$0xff] (!%p192_p9)  ;;  %v3474_v1 = vld [vmem:[%s5038_s1 + $0x18] sm:$0xf] (!%p192_p9)  ;;  %vm256_vm0 = vcmask (!%p192_p9), 1043456   ;;  %v4288_v2 = vmov (!%p192_p9), 0.0|0.0   ;;  %vm4289_vm1 = vmmov (!%p192_p9), 1  }
  0x10   : > { %195 = sbr.rel (%p192_p9) target bundleno = 578 (0x242), region = 40  ;;  %3956 = vmatprep.subr.bf16.mxu0 (!%p192_p9), %v4288_v2  ;;  %v3957_v3 = vpack.c.bf16 (!%p192_p9), %v3474_v1, %v4377_v0  ;;  %vm4385_vm2 = vmpackc.low (!%p192_p9), %vm256_vm0, %vm4289_vm1  ;;  %3960 = vmatprep.subr.bf16.mxu1 (!%p192_p9), %v4288_v2  ;;  %v4393_v5 = vld [vmem:[%s5038_s1] sm:$0xff] (!%p192_p9)  ;;  %v247_v6 = vld [vmem:[%s5038_s1 + $0x8] sm:$0xf] (!%p192_p9)  ;;  %p219_p10 = scmp.lt.s32.totalorder (!%p192_p9), %s4347_s4, 1  ;;  %vm4290_vm3 = vmmov (!%p192_p9), 0  }
  0x11   : > { %v3961_v7 = vpack.c.bf16 (!%p192_p9), %v247_v6, %v4393_v5  ;;  %v4291_v8 = vmov (!%p192_p9), 0.0   ;;  %v4427_v9 = vld [vmem:[%s5038_s1 + $0x20] sm:$0xff] (!%p192_p9)  ;;  %v3481_v10 = vld [vmem:[%s5038_s1 + $0x28] sm:$0xf] (!%p192_p9)  ;;  %v4440_v11 = vld [vmem:[%s5038_s1 + $0x30] sm:$0xff] (!%p192_p9)  ;;  %vm252_vm4 = vcmask (!%p192_p9), 97280  }
  0x12   : > { %3736 = vmatprep.mubr.msk.f32.mxu0 (!%p192_p9), %vm4290_vm3, %v4291_v8  ;;  %224 = vst [vmem:[#allocation2] sm:$0xff] (!%p192_p9), %v4291_v8  ;;  %225 = vst [vmem:[#allocation2 + $0x8] sm:$0x3] (!%p192_p9), %v4291_v8  ;;  %3743 = vmatprep.mubr.msk.f32.mxu1 (!%p192_p9), %vm4290_vm3, %v4291_v8  ;;  %v3486_v12 = vld [vmem:[%s5038_s1 + $0x38] sm:$0xf] (!%p192_p9)  ;;  %v3965_v13 = vpack.c.bf16 (!%p192_p9), %v3481_v10, %v4427_v9  ;;  %s2860_s11 = sld [smem:[#allocation3]] (!%p192_p9) }
  0x13   : > { %226 = vst [vmem:[#allocation2 + $0x10] sm:$0xff] (!%p192_p9), %v4291_v8  ;;  %227 = vst [vmem:[#allocation2 + $0x18] sm:$0x3] (!%p192_p9), %v4291_v8  ;;  %3959 = vmatpush3.bf16.msk.msra.mxu0 (!%p192_p9), %vm4385_vm2, %v3957_v3  ;;  %3963 = vmatpush3.bf16.msk.msra.mxu1 (!%p192_p9), %vm4385_vm2, %v3961_v7  ;;  %v3969_v14 = vpack.c.bf16 (!%p192_p9), %v3486_v12, %v4440_v11  ;;  %v3493_v15 = vld [vmem:[%s5038_s1 + $0x18] sm:$0xf] (!%p192_p9)  ;;  %s216_s19 = sand.u32 (!%p192_p9), 1, %s4278_s21  }
  0x14   : > { %228 = vst [vmem:[#allocation2 + $0x20] sm:$0xff] (!%p192_p9), %v4291_v8  ;;  %229 = vst [vmem:[#allocation2 + $0x28] sm:$0x3] (!%p192_p9), %v4291_v8  ;;  %3964 = vmatprep.subr.bf16.mxu0 (!%p192_p9), %v4288_v2  ;;  %3968 = vmatprep.subr.bf16.mxu1 (!%p192_p9), %v4288_v2  ;;  %v583_v16 = vld [vmem:[%s5038_s1 + $0x8] sm:$0xf] (!%p192_p9)  ;;  %v3973_v21 = vpack.c.bf16 (!%p192_p9), %v3493_v15, %v4377_v0  ;;  %s3471_s24 = sshll.u32 (!%p192_p9), %s216_s19, 2 }
  0x15   : > { %230 = vst [vmem:[#allocation2 + $0x30] sm:$0xff] (!%p192_p9), %v4291_v8  ;;  %231 = vst [vmem:[#allocation2 + $0x38] sm:$0x3] (!%p192_p9), %v4291_v8  ;;  %v3977_v22 = vpack.c.bf16 (!%p192_p9), %v583_v16, %v4393_v5  ;;  %v3500_v23 = vld [vmem:[%s5038_s1 + $0x28] sm:$0xf] (!%p192_p9)  ;;  %vm2894_vm13 = vcmask (!%p192_p9), 0  }
  0x16   : > { %232 = vst [vmem:[#allocation2 + $0x40] sm:$0xff] (!%p192_p9), %v4291_v8  ;;  %233 = vst [vmem:[#allocation2 + $0x48] sm:$0x3] (!%p192_p9), %v4291_v8  ;;  %v3505_v24 = vld [vmem:[%s5038_s1 + $0x38] sm:$0xf] (!%p192_p9)  ;;  %v3981_v25 = vpack.c.bf16 (!%p192_p9), %v3500_v23, %v4427_v9  ;;  %s4946_s26 = scalar_lea.vmem (!%p192_p9), [#allocation4], %s3471_s24 }
  0x17   : > { %234 = vst [vmem:[#allocation2 + $0x50] sm:$0xff] %v4291_v8  ;;  %235 = vst [vmem:[#allocation2 + $0x58] sm:$0x3] %v4291_v8  ;;  %s220_s16 = scalar_select %p219_p10, %s4347_s4, 1  ;;  %v3985_v26 = vpack.c.bf16 %v3505_v24, %v4440_v11  ;;  %v3511_v27 = vld [vmem:[%s5038_s1 + $0x18] sm:$0xf] }
  0x18   : > { %236 = vst [vmem:[#allocation2 + $0x60] sm:$0xff] %v4291_v8  ;;  %237 = vst [vmem:[#allocation2 + $0x68] sm:$0x3] %v4291_v8  ;;  %v908_v28 = vld [vmem:[%s5038_s1 + $0x8] sm:$0xf]  ;;  %v3989_v31 = vpack.c.bf16 %v3511_v27, %v4377_v0  ;;  %vm2928_vm14 = vcmask 8200  }
  0x19   : > { %238 = vst [vmem:[#allocation2 + $0x70] sm:$0xff] %v4291_v8  ;;  %239 = vst [vmem:[#allocation2 + $0x78] sm:$0x3] %v4291_v8  ;;  %s4084_s6 = smul.u32 144, %s220_s16  ;;  %v3993_v32 = vpack.c.bf16 %v908_v28, %v4393_v5  ;;  %v3518_v33 = vld [vmem:[%s5038_s1 + $0x28] sm:$0xf] }
  0x1a   : > { %240 = vst [vmem:[#allocation2 + $0x80] sm:$0xff] %v4291_v8  ;;  %241 = vst [vmem:[#allocation2 + $0x88] sm:$0x3] %v4291_v8  ;;  %v3523_v34 = vld [vmem:[%s5038_s1 + $0x38] sm:$0xf]  ;;  %v3997_v35 = vpack.c.bf16 %v3518_v33, %v4427_v9  ;;  %vm2962_vm15 = vcmask 16400  }
  0x1b   : > { %242 = vst [vmem:[#allocation2 + $0x90] sm:$0xff] %v4291_v8  ;;  %243 = vst [vmem:[#allocation2 + $0x98] sm:$0x3] %v4291_v8  ;;  %s4454_s9 = scalar_lea.vmem %s5037_s0, %s4084_s6  ;;  %v4001_v36 = vpack.c.bf16 %v3523_v34, %v4440_v11  ;;  %v3529_v37 = vld [vmem:[%s5038_s1 + $0x18] sm:$0xf]  ;;  %s4292_s24 = smov [#allocation4]  }
  0x1c   : > { %v248_v17 = vld [vmem:[%s4454_s9 + $0x1] sm:$0xff]  ;;  %v3479_v19 = vld [vmem:[%s4454_s9 + $0x10] sm:$0xff]  ;;  %v4005_v41 = vpack.c.bf16 %v3529_v37, %v4377_v0  ;;  %v3541_v44 = vld [vmem:[%s5038_s1 + $0x38] sm:$0xf] }
  0x1d   : > { %v245_v18 = vld [vmem:[%s4454_s9] sm:$0xff]  ;;  %3737 = vmatmul.mubr.msk.f32.vlgmr.msra.gmra.mrb[0].mxu0 %vm252_vm4, %v248_v17  ;;  %v3484_v20 = vld [vmem:[%s4454_s9 + $0x11] sm:$0xff]  ;;  %v1233_v38 = vld [vmem:[%s5038_s1 + $0x8] sm:$0xf]  ;;  %v4017_v46 = vpack.c.bf16 %v3541_v44, %v4440_v11 }
  0x1e   : > { %3744 = vmatmul.mubr.msk.f32.vlgmr.msra.gmra.mrb[0].mxu1 %vm252_vm4, %v245_v18  ;;  %3967 = vmatpush3.bf16.msk.msra.mxu0 %vm4385_vm2, %v3965_v13  ;;  %v3498_v29 = vld [vmem:[%s4454_s9 + $0x20] sm:$0xff]  ;;  %v3516_v39 = vld [vmem:[%s4454_s9 + $0x30] sm:$0xff]  ;;  %v4009_v42 = vpack.c.bf16 %v1233_v38, %v4393_v5  ;;  %v3536_v43 = vld [vmem:[%s5038_s1 + $0x28] sm:$0xf] }
  0x1f   : > { %3971 = vmatpush3.bf16.msk.msra.mxu1 %vm4385_vm2, %v3969_v14  ;;  %3750 = vmatprep.mubr.msk.f32.mxu0 %vm4290_vm3, %v4291_v8  ;;  %v3503_v30 = vld [vmem:[%s4454_s9 + $0x21] sm:$0xff]  ;;  %v3521_v40 = vld [vmem:[%s4454_s9 + $0x31] sm:$0xff]  ;;  %v4013_v45 = vpack.c.bf16 %v3536_v43, %v4427_v9 }
  0x20   : > { %3757 = vmatprep.mubr.msk.f32.mxu1 %vm4290_vm3, %v4291_v8  ;;  %3972 = vmatprep.subr.bf16.mxu0 %v4288_v2  ;;  %v3547_v47 = vld [vmem:[%s5038_s1 + $0x18] sm:$0xf]  ;;  %v1558_v48 = vld [vmem:[%s5038_s1 + $0x8] sm:$0xf]  ;;  %v3534_v49 = vld [vmem:[%s4454_s9 + $0x40] sm:$0xff] }
  0x21   : > { %3976 = vmatprep.subr.bf16.mxu1 %v4288_v2  ;;  %3751 = vmatmul.mubr.msk.f32.vlgmr.msra.gmra.mrb[2].mxu0 %vm252_vm4, %v3479_v19  ;;  %v3539_v50 = vld [vmem:[%s4454_s9 + $0x41] sm:$0xff]  ;;  %v4021_v51 = vpack.c.bf16 %v3547_v47, %v4377_v0  ;;  %v4025_v52 = vpack.c.bf16 %v1558_v48, %v4393_v5  ;;  %v3559_v54 = vld [vmem:[%s5038_s1 + $0x38] sm:$0xf]  ;;  %v3552_v59 = vld [vmem:[%s4454_s9 + $0x50] sm:$0xff] }
  0x22   : > { %3758 = vmatmul.mubr.msk.f32.vlgmr.msra.gmra.mrb[2].mxu1 %vm252_vm4, %v3484_v20  ;;  %3975 = vmatpush3.bf16.msk.msra.mxu0 %vm4385_vm2, %v3973_v21  ;;  %v3554_v53 = vld [vmem:[%s5038_s1 + $0x28] sm:$0xf]  ;;  %v4033_v56 = vpack.c.bf16 %v3559_v54, %v4440_v11  ;;  %v3565_v57 = vld [vmem:[%s5038_s1 + $0x18] sm:$0xf]  ;;  %v3570_v12 = vld [vmem:[%s4454_s9 + $0x60] sm:$0xff] }
  0x23   : > { %3979 = vmatpush3.bf16.msk.msra.mxu1 %vm4385_vm2, %v3977_v22  ;;  %3764 = vmatprep.mubr.msk.f32.mxu0 %vm4290_vm3, %v4291_v8  ;;  %v4029_v55 = vpack.c.bf16 %v3554_v53, %v4427_v9  ;;  %v1883_v58 = vld [vmem:[%s5038_s1 + $0x8] sm:$0xf]  ;;  %v3557_v60 = vld [vmem:[%s4454_s9 + $0x51] sm:$0xff]  ;;  %v4037_v61 = vpack.c.bf16 %v3565_v57, %v4377_v0 }
  0x24   : > { %3771 = vmatprep.mubr.msk.f32.mxu1 %vm4290_vm3, %v4291_v8  ;;  %3980 = vmatprep.subr.bf16.mxu0 %v4288_v2  ;;  %v4041_v62 = vpack.c.bf16 %v1883_v58, %v4393_v5  ;;  %v3572_v63 = vld [vmem:[%s5038_s1 + $0x28] sm:$0xf]  ;;  %v3577_v1 = vld [vmem:[%s5038_s1 + $0x38] sm:$0xf]  ;;  %v3588_v22 = vld [vmem:[%s4454_s9 + $0x70] sm:$0xff] }
  0x25   : > { %3984 = vmatprep.subr.bf16.mxu1 %v4288_v2  ;;  %3765 = vmatmul.mubr.msk.f32.vlgmr.msra.gmra.mrb[4].mxu0 %vm252_vm4, %v3484_v20  ;;  %v4045_v3 = vpack.c.bf16 %v3572_v63, %v4427_v9  ;;  %v4049_v6 = vpack.c.bf16 %v3577_v1, %v4440_v11  ;;  %v3583_v7 = vld [vmem:[%s5038_s1 + $0x18] sm:$0xf]  ;;  %v2208_v10 = vld [vmem:[%s5038_s1 + $0x8] sm:$0xf] }
  0x26   : > { %3772 = vmatmul.mubr.msk.f32.vlgmr.msra.gmra.mrb[4].mxu1 %vm252_vm4, %v3479_v19  ;;  %3983 = vmatpush3.bf16.msk.msra.mxu0 %vm4385_vm2, %v3981_v25  ;;  %v3575_v13 = vld [vmem:[%s4454_s9 + $0x61] sm:$0xff]  ;;  %v4053_v14 = vpack.c.bf16 %v3583_v7, %v4377_v0  ;;  %v4057_v15 = vpack.c.bf16 %v2208_v10, %v4393_v5  ;;  %v3595_v17 = vld [vmem:[%s5038_s1 + $0x38] sm:$0xf] }
  0x27   : > { %3987 = vmatpush3.bf16.msk.msra.mxu1 %vm4385_vm2, %v3985_v26  ;;  %3778 = vmatprep.mubr.msk.f32.mxu0 %vm4290_vm3, %v4291_v8  ;;  %v3590_v16 = vld [vmem:[%s5038_s1 + $0x28] sm:$0xf]  ;;  %v4065_v19 = vpack.c.bf16 %v3595_v17, %v4440_v11  ;;  %v3601_v20 = vld [vmem:[%s5038_s1 + $0x18] sm:$0xf] }
  0x28   : > { %3785 = vmatprep.mubr.msk.f32.mxu1 %vm4290_vm3, %v4291_v8  ;;  %3988 = vmatprep.subr.bf16.mxu0 %v4288_v2  ;;  %v4061_v18 = vpack.c.bf16 %v3590_v16, %v4427_v9  ;;  %v2533_v21 = vld [vmem:[%s5038_s1 + $0x8] sm:$0xf]  ;;  %v3593_v23 = vld [vmem:[%s4454_s9 + $0x71] sm:$0xff]  ;;  %v4069_v24 = vpack.c.bf16 %v3601_v20, %v4377_v0 }
  0x29   : > { %3992 = vmatprep.subr.bf16.mxu1 %v4288_v2  ;;  %3779 = vmatmul.mubr.msk.f32.vlgmr.msra.gmra.mrb[6].mxu0 %vm252_vm4, %v3498_v29  ;;  %v4073_v25 = vpack.c.bf16 %v2533_v21, %v4393_v5  ;;  %v3608_v26 = vld [vmem:[%s5038_s1 + $0x28] sm:$0xf]  ;;  %v3613_v27 = vld [vmem:[%s5038_s1 + $0x38] sm:$0xf] }
  0x2a   : > { %3786 = vmatmul.mubr.msk.f32.vlgmr.msra.gmra.mrb[6].mxu1 %vm252_vm4, %v3503_v30  ;;  %3991 = vmatpush3.bf16.msk.msra.mxu0 %vm4385_vm2, %v3989_v31  ;;  %v4077_v0 = vpack.c.bf16 %v3608_v26, %v4427_v9  ;;  %v4081_v5 = vpack.c.bf16 %v3613_v27, %v4440_v11  ;;  %v3606_v9 = vld [vmem:[%s4454_s9 + $0x80] sm:$0xff] }
  0x2b   : > { %3995 = vmatpush3.bf16.msk.msra.mxu1 %vm4385_vm2, %v3993_v32  ;;  %3792 = vmatprep.mubr.msk.f32.mxu0 %vm4290_vm3, %v4291_v8  ;;  %v3611_v11 = vld [vmem:[%s4454_s9 + $0x81] sm:$0xff] }
  0x2c   : > { %3799 = vmatprep.mubr.msk.f32.mxu1 %vm4290_vm3, %v4291_v8  ;;  %3996 = vmatprep.subr.bf16.mxu0 %v4288_v2  ;;  %v2964_v20 = vld [vmem:[#allocation2 + $0x6] sm:$0xf] }
  0x2d   : > { %4000 = vmatprep.subr.bf16.mxu1 %v4288_v2  ;;  %3793 = vmatmul.mubr.msk.f32.vlgmr.msra.gmra.mrb[8].mxu0 %vm252_vm4, %v3503_v30 }
  0x2e   : > { %3800 = vmatmul.mubr.msk.f32.vlgmr.msra.gmra.mrb[8].mxu1 %vm252_vm4, %v3498_v29  ;;  %3999 = vmatpush3.bf16.msk.msra.mxu0 %vm4385_vm2, %v3997_v35 }
  0x2f   : > { %4003 = vmatpush3.bf16.msk.msra.mxu1 %vm4385_vm2, %v4001_v36  ;;  %3806 = vmatprep.mubr.msk.f32.mxu0 %vm4290_vm3, %v4291_v8  ;;  %v4769_v36 = vld [vmem:[%s5039_s2] ss:$0 sm:$0xff] }
  0x30   : > { %3813 = vmatprep.mubr.msk.f32.mxu1 %vm4290_vm3, %v4291_v8  ;;  %4004 = vmatprep.subr.bf16.mxu0 %v4288_v2 }
  0x31   : > { %4008 = vmatprep.subr.bf16.mxu1 %v4288_v2  ;;  %3807 = vmatmul.mubr.msk.f32.vlgmr.msra.gmra.mrb[10].mxu0 %vm252_vm4, %v3516_v39 }
  0x32   : > { %3814 = vmatmul.mubr.msk.f32.vlgmr.msra.gmra.mrb[10].mxu1 %vm252_vm4, %v3521_v40  ;;  %4007 = vmatpush3.bf16.msk.msra.mxu0 %vm4385_vm2, %v4005_v41 }
  0x33   : > { %4011 = vmatpush3.bf16.msk.msra.mxu1 %vm4385_vm2, %v4009_v42  ;;  %3820 = vmatprep.mubr.msk.f32.mxu0 %vm4290_vm3, %v4291_v8 }
  0x34   : > { %3827 = vmatprep.mubr.msk.f32.mxu1 %vm4290_vm3, %v4291_v8  ;;  %4012 = vmatprep.subr.bf16.mxu0 %v4288_v2 }
  0x35   : > { %4016 = vmatprep.subr.bf16.mxu1 %v4288_v2  ;;  %3821 = vmatmul.mubr.msk.f32.vlgmr.msra.gmra.mrb[12].mxu0 %vm252_vm4, %v3521_v40 }
  0x36   : > { %3828 = vmatmul.mubr.msk.f32.vlgmr.msra.gmra.mrb[12].mxu1 %vm252_vm4, %v3516_v39  ;;  %4015 = vmatpush3.bf16.msk.msra.mxu0 %vm4385_vm2, %v4013_v45 }
  0x37   : > { %4019 = vmatpush3.bf16.msk.msra.mxu1 %vm4385_vm2, %v4017_v46  ;;  %3834 = vmatprep.mubr.msk.f32.mxu0 %vm4290_vm3, %v4291_v8 }
  0x38   : > { %3841 = vmatprep.mubr.msk.f32.mxu1 %vm4290_vm3, %v4291_v8  ;;  %4020 = vmatprep.subr.bf16.mxu0 %v4288_v2 }
  0x39   : > { %4024 = vmatprep.subr.bf16.mxu1 %v4288_v2  ;;  %3835 = vmatmul.mubr.msk.f32.vlgmr.msra.gmra.mrb[14].mxu0 %vm252_vm4, %v3534_v49 }
  0x3a   : > { %3842 = vmatmul.mubr.msk.f32.vlgmr.msra.gmra.mrb[14].mxu1 %vm252_vm4, %v3539_v50  ;;  %4023 = vmatpush3.bf16.msk.msra.mxu0 %vm4385_vm2, %v4021_v51 }
  0x3b   : > { %4027 = vmatpush3.bf16.msk.msra.mxu1 %vm4385_vm2, %v4025_v52  ;;  %3848 = vmatprep.mubr.msk.f32.mxu0 %vm4290_vm3, %v4291_v8 }
  0x3c   : > { %3855 = vmatprep.mubr.msk.f32.mxu1 %vm4290_vm3, %v4291_v8  ;;  %4028 = vmatprep.subr.bf16.mxu0 %v4288_v2 }
  0x3d   : > { %4032 = vmatprep.subr.bf16.mxu1 %v4288_v2  ;;  %3849 = vmatmul.mubr.msk.f32.vlgmr.msra.gmra.mrb[16].mxu0 %vm252_vm4, %v3539_v50 }
  0x3e   : > { %3856 = vmatmul.mubr.msk.f32.vlgmr.msra.gmra.mrb[16].mxu1 %vm252_vm4, %v3534_v49  ;;  %4031 = vmatpush3.bf16.msk.msra.mxu0 %vm4385_vm2, %v4029_v55 }
  0x3f   : > { %4035 = vmatpush3.bf16.msk.msra.mxu1 %vm4385_vm2, %v4033_v56  ;;  %3862 = vmatprep.mubr.msk.f32.mxu0 %vm4290_vm3, %v4291_v8 }
  0x40   : > { %3869 = vmatprep.mubr.msk.f32.mxu1 %vm4290_vm3, %v4291_v8  ;;  %4036 = vmatprep.subr.bf16.mxu0 %v4288_v2 }
  0x41   : > { %4040 = vmatprep.subr.bf16.mxu1 %v4288_v2  ;;  %3863 = vmatmul.mubr.msk.f32.vlgmr.msra.gmra.mrb[18].mxu0 %vm252_vm4, %v3552_v59 }
  0x42   : > { %3870 = vmatmul.mubr.msk.f32.vlgmr.msra.gmra.mrb[18].mxu1 %vm252_vm4, %v3557_v60  ;;  %4039 = vmatpush3.bf16.msk.msra.mxu0 %vm4385_vm2, %v4037_v61 }
  0x43   : > { %4043 = vmatpush3.bf16.msk.msra.mxu1 %vm4385_vm2, %v4041_v62  ;;  %3876 = vmatprep.mubr.msk.f32.mxu0 %vm4290_vm3, %v4291_v8 }
  0x44   : > { %3883 = vmatprep.mubr.msk.f32.mxu1 %vm4290_vm3, %v4291_v8  ;;  %4044 = vmatprep.subr.bf16.mxu0 %v4288_v2 }
  0x45   : > { %4048 = vmatprep.subr.bf16.mxu1 %v4288_v2  ;;  %3877 = vmatmul.mubr.msk.f32.vlgmr.msra.gmra.mrb[20].mxu0 %vm252_vm4, %v3557_v60 }
  0x46   : > { %3884 = vmatmul.mubr.msk.f32.vlgmr.msra.gmra.mrb[20].mxu1 %vm252_vm4, %v3552_v59  ;;  %4047 = vmatpush3.bf16.msk.msra.mxu0 %vm4385_vm2, %v4045_v3  ;;  %v4776_v3 = vld [vmem:[%s5040_s3] sm:$0xf] }
  0x47   : > { %4051 = vmatpush3.bf16.msk.msra.mxu1 %vm4385_vm2, %v4049_v6  ;;  %3890 = vmatprep.mubr.msk.f32.mxu0 %vm4290_vm3, %v4291_v8  ;;  %v4781_v6 = vld [vmem:[%s5040_s3 + $0x4] sm:$0xf] }
  0x48   : > { %3897 = vmatprep.mubr.msk.f32.mxu1 %vm4290_vm3, %v4291_v8  ;;  %4052 = vmatprep.subr.bf16.mxu0 %v4288_v2 }
  0x49   : > { %4056 = vmatprep.subr.bf16.mxu1 %v4288_v2  ;;  %3891 = vmatmul.mubr.msk.f32.vlgmr.msra.gmra.mrb[22].mxu0 %vm252_vm4, %v3570_v12 }
  0x4a   : > { %3898 = vmatmul.mubr.msk.f32.vlgmr.msra.gmra.mrb[22].mxu1 %vm252_vm4, %v3575_v13  ;;  %4055 = vmatpush3.bf16.msk.msra.mxu0 %vm4385_vm2, %v4053_v14 }
  0x4b   : > { %4059 = vmatpush3.bf16.msk.msra.mxu1 %vm4385_vm2, %v4057_v15  ;;  %3904 = vmatprep.mubr.msk.f32.mxu0 %vm4290_vm3, %v4291_v8 }
  0x4c   : > { %3911 = vmatprep.mubr.msk.f32.mxu1 %vm4290_vm3, %v4291_v8  ;;  %4060 = vmatprep.subr.bf16.mxu0 %v4288_v2 }
  0x4d   : > { %4064 = vmatprep.subr.bf16.mxu1 %v4288_v2  ;;  %3905 = vmatmul.mubr.msk.f32.vlgmr.msra.gmra.mrb[24].mxu0 %vm252_vm4, %v3575_v13 }
  0x4e   : > { %3912 = vmatmul.mubr.msk.f32.vlgmr.msra.gmra.mrb[24].mxu1 %vm252_vm4, %v3570_v12  ;;  %4063 = vmatpush3.bf16.msk.msra.mxu0 %vm4385_vm2, %v4061_v18  ;;  %v2930_v12 = vld [vmem:[#allocation2 + $0x4] sm:$0xf]  ;;  %v2861_v18 = vld [vmem:[#allocation2] sm:$0xf] }
  0x4f   : > { %4067 = vmatpush3.bf16.msk.msra.mxu1 %vm4385_vm2, %v4065_v19  ;;  %3918 = vmatprep.mubr.msk.f32.mxu0 %vm4290_vm3, %v4291_v8 }
  0x50   : > { %3925 = vmatprep.mubr.msk.f32.mxu1 %vm4290_vm3, %v4291_v8  ;;  %4068 = vmatprep.subr.bf16.mxu0 %v4288_v2 }
  0x51   : > { %4072 = vmatprep.subr.bf16.mxu1 %v4288_v2  ;;  %3919 = vmatmul.mubr.msk.f32.vlgmr.msra.gmra.mrb[26].mxu0 %vm252_vm4, %v3588_v22 }
  0x52   : > { %3926 = vmatmul.mubr.msk.f32.vlgmr.msra.gmra.mrb[26].mxu1 %vm252_vm4, %v3593_v23  ;;  %4071 = vmatpush3.bf16.msk.msra.mxu0 %vm4385_vm2, %v4069_v24 }
  0x53   : > { %4075 = vmatpush3.bf16.msk.msra.mxu1 %vm4385_vm2, %v4073_v25  ;;  %3932 = vmatprep.mubr.msk.f32.mxu0 %vm4290_vm3, %v4291_v8  ;;  %v2896_v25 = vld [vmem:[#allocation2 + $0x2] sm:$0xf] }
  0x54   : > { %3939 = vmatprep.mubr.msk.f32.mxu1 %vm4290_vm3, %v4291_v8  ;;  %4076 = vmatprep.subr.bf16.mxu0 %v4288_v2 }
  0x55   : > { %4080 = vmatprep.subr.bf16.mxu1 %v4288_v2  ;;  %3933 = vmatmul.mubr.msk.f32.vlgmr.msra.gmra.mrb[28].mxu0 %vm252_vm4, %v3593_v23  ;;  %v2934_v23 = vmul.f32 %v2930_v12, %v4776_v3 }
  0x56   : > { %3940 = vmatmul.mubr.msk.f32.vlgmr.msra.gmra.mrb[28].mxu1 %vm252_vm4, %v3588_v22  ;;  %4079 = vmatpush3.bf16.msk.msra.mxu0 %vm4385_vm2, %v4077_v0  ;;  %v4787_v22 = vld [vmem:[%s5040_s3 + $0x8] sm:$0xf] }
  0x57   : > { %4083 = vmatpush3.bf16.msk.msra.mxu1 %vm4385_vm2, %v4081_v5  ;;  %3946 = vmatprep.mubr.msk.f32.mxu0 %vm4290_vm3, %v4291_v8 }
  0x58   : > { %3953 = vmatprep.mubr.msk.f32.mxu1 %vm4290_vm3, %v4291_v8 }
  0x59   : > { %3947 = vmatmul.mubr.msk.f32.vlgmr.msra.gmra.mrb[30].mxu0 %vm252_vm4, %v3606_v9 }
  0x5a   : > { %3954 = vmatmul.mubr.msk.f32.vlgmr.msra.gmra.mrb[30].mxu1 %vm252_vm4, %v3611_v11 }
  0xf0   : > { %v326_v2 = vpop.f32.mrb[0].mxu0 }
  0xf1   : > { %v402_v28 = vpop.f32.mrb[0].mxu1  ;;  %v3738_v30 = vpop.f32.mrb[1].mxu0 }
  0xf2   : > { %v403_v29 = vadd.f32 %v402_v28, %v326_v2  ;;  %v3745_v31 = vpop.f32.mrb[1].mxu1 }
  0xf3   : > { %v2865_v31 = vmul.f32 %v2861_v18, %v4776_v3 }
  0xf4   : > { %v483_v32 = vpop.f32.mrb[2].mxu0 }
  0xf5   : > { %v564_v4 = vpop.f32.mrb[2].mxu1  ;;  %v487_v33 = vadd.f32 %v483_v32, %v403_v29  ;;  %v3752_v34 = vpop.f32.mrb[3].mxu0 }
  0xf6   : > { %v3759_v35 = vpop.f32.mrb[3].mxu1 }
  0xf7   : > { %v568_v8 = vadd.f32 %v564_v4, %v487_v33  ;;  %v2968_v33 = vmul.f32 %v2964_v20, %v4776_v3  ;;  %v2938_v35 = vsel %vm256_vm0, %v2934_v23, 0.0 }
  0xf8   : > { %v659_v37 = vpop.f32.mrb[4].mxu0 }
  0xf9   : > { %v735_v38 = vpop.f32.mrb[4].mxu1  ;;  %v575_v39 = vadd.f32 %v4769_v36, %v568_v8  ;;  %v3766_v41 = vpop.f32.mrb[5].mxu0 }
  0xfa   : > { %v736_v40 = vadd.f32 %v735_v38, %v659_v37  ;;  %v3773_v42 = vpop.f32.mrb[5].mxu1 }
  0xfb   : > { %vm576_vm5 = vcmp.ge.f32.partialorder %v575_v39, 0.0  ;;  %v577_v43 = vmul.f32 0.2, %v575_v39 }
  0xfc   : > { %v815_v44 = vpop.f32.mrb[6].mxu0 }
  0xfd   : > { %v895_v45 = vpop.f32.mrb[6].mxu1  ;;  %v578_v46 = vsel %vm576_vm5, %v575_v39, %v577_v43  ;;  %v819_v47 = vadd.f32 %v815_v44, %v736_v40  ;;  %v3780_v48 = vpop.f32.mrb[7].mxu0  ;;  %v2900_v43 = vmul.f32 %v2896_v25, %v4776_v3 }
  0xfe   : > { %v3787_v49 = vpop.f32.mrb[7].mxu1  ;;  %580 = vst [vmem:[#allocation2 + $0x11] sm:$0xff] %v578_v46 }
  0xff   : > { %v899_v50 = vadd.f32 %v895_v45, %v819_v47  ;;  %v2869_v49 = vsel %vm256_vm0, %v2865_v31, 0.0 }
 0x100   : > { %v984_v51 = vpop.f32.mrb[8].mxu0 }
 0x101   : > { %v1060_v52 = vpop.f32.mrb[8].mxu1  ;;  %v900_v53 = vadd.f32 %v4769_v36, %v899_v50  ;;  %v3794_v55 = vpop.f32.mrb[9].mxu0 }
 0x102   : > { %v1061_v54 = vadd.f32 %v1060_v52, %v984_v51  ;;  %v3801_v56 = vpop.f32.mrb[9].mxu1 }
 0x103   : > { %vm901_vm6 = vcmp.ge.f32.partialorder %v900_v53, 0.0  ;;  %v902_v57 = vmul.f32 0.2, %v900_v53  ;;  %v4810_v56 = vld [vmem:[%s5040_s3 + $0xc] sm:$0xf] }
 0x104   : > { %v1140_v58 = vpop.f32.mrb[10].mxu0 }
 0x105   : > { %v1220_v59 = vpop.f32.mrb[10].mxu1  ;;  %v903_v60 = vsel %vm901_vm6, %v900_v53, %v902_v57  ;;  %v1144_v61 = vadd.f32 %v1140_v58, %v1061_v54  ;;  %v3808_v62 = vpop.f32.mrb[11].mxu0  ;;  %v2931_v13 = vld [vmem:[#allocation2 + $0x14] sm:$0xf]  ;;  %v2862_v19 = vld [vmem:[#allocation2 + $0x10] sm:$0xf] }
 0x106   : > { %v3815_v63 = vpop.f32.mrb[11].mxu1  ;;  %905 = vst [vmem:[#allocation2 + $0x21] sm:$0xff] %v903_v60  ;;  %v2935_v24 = vmul.f32 %v2931_v13, %v4781_v6  ;;  %v2965_v0 = vld [vmem:[#allocation2 + $0x16] sm:$0xf]  ;;  %v2897_v5 = vld [vmem:[#allocation2 + $0x12] sm:$0xf]  ;;  %v2866_v32 = vmul.f32 %v2862_v19, %v4781_v6 }
 0x107   : > { %v1224_v1 = vadd.f32 %v1220_v59, %v1144_v61  ;;  %v2969_v41 = vmul.f32 %v2965_v0, %v4781_v6  ;;  %v2901_v44 = vmul.f32 %v2897_v5, %v4781_v6  ;;  %v2972_v54 = vsel %vm256_vm0, %v2968_v33, 0.0 }
 0x108   : > { %v1309_v7 = vpop.f32.mrb[12].mxu0  ;;  %v2939_v8 = vsel %vm256_vm0, %v2935_v24, 0.0  ;;  %v2870_v50 = vsel %vm256_vm0, %v2866_v32, 0.0  ;;  %v2904_v63 = vsel %vm256_vm0, %v2900_v43, 0.0 }
 0x109   : > { %v1385_v10 = vpop.f32.mrb[12].mxu1  ;;  %v1225_v14 = vadd.f32 %v4769_v36, %v1224_v1  ;;  %v3822_v16 = vpop.f32.mrb[13].mxu0  ;;  %v2940_v51 = vadd.f32 %v2939_v8, %v2938_v35  ;;  %v2871_v61 = vadd.f32 %v2870_v50, %v2869_v49  ;;  %v2973_v62 = vsel %vm256_vm0, %v2969_v41, 0.0 }
 0x10a   : > { %v1386_v15 = vadd.f32 %v1385_v10, %v1309_v7  ;;  %v3829_v17 = vpop.f32.mrb[13].mxu1  ;;  %v2905_v1 = vsel %vm256_vm0, %v2901_v44, 0.0 }
 0x10b   : > { %vm1226_vm7 = vcmp.ge.f32.partialorder %v1225_v14, 0.0  ;;  %v1227_v21 = vmul.f32 0.2, %v1225_v14 }
 0x10c   : > { %v1465_v26 = vpop.f32.mrb[14].mxu0 }
 0x10d   : > { %v1545_v27 = vpop.f32.mrb[14].mxu1  ;;  %v1228_v9 = vsel %vm1226_vm7, %v1225_v14, %v1227_v21  ;;  %v1469_v11 = vadd.f32 %v1465_v26, %v1386_v15  ;;  %v3836_v2 = vpop.f32.mrb[15].mxu0  ;;  %v2932_v29 = vld [vmem:[#allocation2 + $0x24] sm:$0xf]  ;;  %v2863_v30 = vld [vmem:[#allocation2 + $0x20] sm:$0xf] }
 0x10e   : > { %v3843_v28 = vpop.f32.mrb[15].mxu1  ;;  %1230 = vst [vmem:[#allocation2 + $0x31] sm:$0xff] %v1228_v9  ;;  %v2936_v4 = vmul.f32 %v2932_v29, %v4787_v22  ;;  %v2867_v37 = vmul.f32 %v2863_v30, %v4787_v22  ;;  %v2966_v38 = vld [vmem:[#allocation2 + $0x26] sm:$0xf]  ;;  %v2898_v42 = vld [vmem:[#allocation2 + $0x22] sm:$0xf]  ;;  %v2974_v2 = vadd.f32 %v2973_v62, %v2972_v54 }
 0x10f   : > { %v1549_v34 = vadd.f32 %v1545_v27, %v1469_v11  ;;  %v2970_v53 = vmul.f32 %v2966_v38, %v4787_v22  ;;  %v2902_v58 = vmul.f32 %v2898_v42, %v4787_v22  ;;  %v2906_v28 = vadd.f32 %v2905_v1, %v2904_v63  ;;  %v3031_v35 = vld [vmem:[#allocation2 + $0x22] sm:$0xf]  ;;  %v3097_v41 = vld [vmem:[#allocation2 + $0x26] sm:$0xf] }
 0x110   : > { %v1634_v39 = vpop.f32.mrb[16].mxu0  ;;  %v2941_v52 = vsel %vm256_vm0, %v2936_v4, 0.0  ;;  %v2872_v57 = vsel %vm256_vm0, %v2867_v37, 0.0  ;;  %v2998_v8 = vld [vmem:[#allocation2 + $0x20] sm:$0xf]  ;;  %v3101_v62 = vmul.f32 %v3097_v41, %v4776_v3 }
 0x111   : > { %v1710_v40 = vpop.f32.mrb[16].mxu1  ;;  %v1550_v45 = vadd.f32 %v4769_v36, %v1549_v34  ;;  %v3850_v47 = vpop.f32.mrb[17].mxu0  ;;  %v2942_v15 = vadd.f32 %v2941_v52, %v2940_v51  ;;  %v2873_v19 = vadd.f32 %v2872_v57, %v2871_v61  ;;  %v2975_v21 = vsel %vm256_vm0, %v2970_v53, 0.0  ;;  %v3064_v50 = vld [vmem:[#allocation2 + $0x24] sm:$0xf] }
 0x112   : > { %v1711_v46 = vadd.f32 %v1710_v40, %v1634_v39  ;;  %v3857_v48 = vpop.f32.mrb[17].mxu1  ;;  %v2907_v27 = vsel %vm256_vm0, %v2902_v58, 0.0  ;;  %v2976_v37 = vadd.f32 %v2975_v21, %v2974_v2  ;;  %v3002_v49 = vmul.f32 %v2998_v8, %v4776_v3 }
 0x113   : > { %vm1551_vm8 = vcmp.ge.f32.partialorder %v1550_v45, 0.0  ;;  %v1552_v55 = vmul.f32 0.2, %v1550_v45  ;;  %v2908_v43 = vadd.f32 %v2907_v27, %v2906_v28  ;;  %v3035_v48 = vmul.f32 %v3031_v35, %v4776_v3 }
 0x114   : > { %v1790_v59 = vpop.f32.mrb[18].mxu0 }
 0x115   : > { %v1870_v60 = vpop.f32.mrb[18].mxu1  ;;  %v1553_v7 = vsel %vm1551_vm8, %v1550_v45, %v1552_v55  ;;  %v1794_v10 = vadd.f32 %v1790_v59, %v1711_v46  ;;  %v3864_v12 = vpop.f32.mrb[19].mxu0  ;;  %v2933_v14 = vld [vmem:[#allocation2 + $0x34] sm:$0xf]  ;;  %v2864_v16 = vld [vmem:[#allocation2 + $0x30] sm:$0xf] }
 0x116   : > { %v3871_v13 = vpop.f32.mrb[19].mxu1  ;;  %1555 = vst [vmem:[#allocation2 + $0x41] sm:$0xff] %v1553_v7  ;;  %v2937_v17 = vmul.f32 %v2933_v14, %v4810_v56  ;;  %v2868_v18 = vmul.f32 %v2864_v16, %v4810_v56  ;;  %v2967_v20 = vld [vmem:[#allocation2 + $0x36] sm:$0xf]  ;;  %v2899_v23 = vld [vmem:[#allocation2 + $0x32] sm:$0xf] }
 0x117   : > { %v1874_v24 = vadd.f32 %v1870_v60, %v1794_v10  ;;  %v2971_v25 = vmul.f32 %v2967_v20, %v4810_v56  ;;  %v2903_v26 = vmul.f32 %v2899_v23, %v4810_v56  ;;  %v3032_v29 = vld [vmem:[#allocation2 + $0x32] sm:$0xf]  ;;  %v3098_v45 = vld [vmem:[#allocation2 + $0x36] sm:$0xf] }
 0x118   : > { %v1959_v0 = vpop.f32.mrb[20].mxu0  ;;  %v2943_v9 = vsel %vm256_vm0, %v2937_v17, 0.0  ;;  %v2874_v11 = vsel %vm256_vm0, %v2868_v18, 0.0  ;;  %v2999_v40 = vld [vmem:[#allocation2 + $0x30] sm:$0xf]  ;;  %v3036_v44 = vmul.f32 %v3032_v29, %v4781_v6  ;;  %v3102_v63 = vmul.f32 %v3098_v45, %v4781_v6 }
 0x119   : > { %v2035_v5 = vpop.f32.mrb[20].mxu1  ;;  %v1875_v30 = vadd.f32 %v4769_v36, %v1874_v24  ;;  %v3878_v32 = vpop.f32.mrb[21].mxu0  ;;  %v2944_v33 = vadd.f32 %v2943_v9, %v2942_v15  ;;  %v2875_v34 = vadd.f32 %v2874_v11, %v2873_v19  ;;  %v2977_v38 = vsel %vm256_vm0, %v2971_v25, 0.0  ;;  %v3065_v51 = vld [vmem:[#allocation2 + $0x34] sm:$0xf] }
 0x11a   : > { %v2036_v31 = vadd.f32 %v2035_v5, %v1959_v0  ;;  %v3885_v4 = vpop.f32.mrb[21].mxu1  ;;  %v2909_v39 = vsel %vm256_vm0, %v2903_v26, 0.0  ;;  %v2978_v57 = vadd.f32 %v2977_v38, %v2976_v37  ;;  %v3003_v61 = vmul.f32 %v2999_v40, %v4781_v6 }
 0x11b   : > { %vm1876_vm9 = vcmp.ge.f32.partialorder %v1875_v30, 0.0  ;;  %v1877_v42 = vmul.f32 0.2, %v1875_v30  ;;  %2945 = vadd.xlane.f32.xlu1 %v2944_v33  ;;  %2876 = vadd.xlane.f32.xlu0 %v2875_v34  ;;  %v2910_v58 = vadd.f32 %v2909_v39, %v2908_v43  ;;  %v3040_v10 = vsel %vm256_vm0, %v3036_v44, 0.0 }
 0x11c   : > { %v2115_v46 = vpop.f32.mrb[22].mxu0  ;;  %v3069_v12 = vmul.f32 %v3065_v51, %v4781_v6  ;;  %v3039_v15 = vsel %vm256_vm0, %v3035_v48, 0.0  ;;  %v3006_v17 = vsel %vm256_vm0, %v3002_v49, 0.0  ;;  %v3068_v18 = vmul.f32 %v3064_v50, %v4776_v3 }
 0x11d   : > { %v2195_v47 = vpop.f32.mrb[22].mxu1  ;;  %v1878_v52 = vsel %vm1876_vm9, %v1875_v30, %v1877_v42  ;;  %v2119_v53 = vadd.f32 %v2115_v46, %v2036_v31  ;;  %v3892_v54 = vpop.f32.mrb[23].mxu0  ;;  %v3033_v59 = vld [vmem:[#allocation2 + $0x42] sm:$0xf]  ;;  %v3099_v24 = vld [vmem:[#allocation2 + $0x46] sm:$0xf]  ;;  %v3041_v26 = vadd.f32 %v3040_v10, %v3039_v15 }
 0x11e   : > { %v3899_v55 = vpop.f32.mrb[23].mxu1  ;;  %v3000_v60 = vld [vmem:[#allocation2 + $0x40] sm:$0xf]  ;;  %1880 = vst [vmem:[#allocation2 + $0x51] sm:$0xff] %v1878_v52  ;;  %v3037_v7 = vmul.f32 %v3033_v59, %v4787_v22  ;;  %v3066_v25 = vld [vmem:[#allocation2 + $0x44] sm:$0xf]  ;;  %v3103_v31 = vmul.f32 %v3099_v24, %v4787_v22 }
 0x11f   : > { %v2199_v1 = vadd.f32 %v2195_v47, %v2119_v53  ;;  %2979 = vadd.xlane.f32.xlu1 %v2978_v57  ;;  %2911 = vadd.xlane.f32.xlu0 %v2910_v58  ;;  %v3004_v16 = vmul.f32 %v3000_v60, %v4787_v22  ;;  %v3007_v27 = vsel %vm256_vm0, %v3003_v61, 0.0  ;;  %v3105_v0 = vsel %vm256_vm0, %v3101_v62, 0.0  ;;  %v3298_v47 = vld [vmem:[#allocation2 + $0x92] sm:$0xf]  ;;  %v3163_v52 = vld [vmem:[#allocation2 + $0x42] sm:$0xf] }
 0x120   : > { %v2284_v13 = vpop.f32.mrb[24].mxu0  ;;  %v3106_v5 = vsel %vm256_vm0, %v3102_v63, 0.0  ;;  %v3042_v11 = vsel %vm256_vm0, %v3037_v7, 0.0  ;;  %v3073_v2 = vsel %vm256_vm0, %v3069_v12, 0.0  ;;  %v3070_v32 = vmul.f32 %v3066_v25, %v4787_v22  ;;  %v3130_v54 = vld [vmem:[#allocation2 + $0x40] sm:$0xf] }
 0x121   : > { %v2360_v14 = vpop.f32.mrb[24].mxu1  ;;  %v2200_v19 = vadd.f32 %v4769_v36, %v2199_v1  ;;  %v3906_v21 = vpop.f32.mrb[25].mxu0  ;;  %v3009_v30 = vsel %vm256_vm0, %v3004_v16, 0.0  ;;  %v3072_v4 = vsel %vm256_vm0, %v3068_v18, 0.0  ;;  %v3008_v39 = vadd.f32 %v3007_v27, %v3006_v17  ;;  %v3196_v18 = vld [vmem:[#allocation2 + $0x44] sm:$0xf] }
 0x122   : > { %v2361_v20 = vadd.f32 %v2360_v14, %v2284_v13  ;;  %v3913_v23 = vpop.f32.mrb[25].mxu1  ;;  %v3107_v40 = vadd.f32 %v3106_v5, %v3105_v0  ;;  %v3043_v42 = vadd.f32 %v3042_v11, %v3041_v26  ;;  %v3074_v46 = vadd.f32 %v3073_v2, %v3072_v4  ;;  %v3229_v14 = vld [vmem:[#allocation2 + $0x46] sm:$0xf] }
 0x123   : > { %vm2201_vm10 = vcmp.ge.f32.partialorder %v2200_v19, 0.0  ;;  %v2202_v9 = vmul.f32 0.2, %v2200_v19  ;;  %v3010_v49 = vadd.f32 %v3009_v30, %v3008_v39  ;;  %v3108_v60 = vsel %vm256_vm0, %v3103_v31, 0.0 }
 0x124   : > { %v2440_v28 = vpop.f32.mrb[26].mxu0  ;;  %v3075_v61 = vsel %vm256_vm0, %v3070_v32, 0.0  ;;  %v3109_v21 = vadd.f32 %v3108_v60, %v3107_v40  ;;  %v3167_v27 = vmul.f32 %v3163_v52, %v4776_v3  ;;  %v3134_v0 = vmul.f32 %v3130_v54, %v4776_v3 }
 0x125   : > { %v2520_v29 = vpop.f32.mrb[26].mxu1  ;;  %v2203_v33 = vsel %vm2201_vm10, %v2200_v19, %v2202_v9  ;;  %v2444_v34 = vadd.f32 %v2440_v28, %v2361_v20  ;;  %v3920_v35 = vpop.f32.mrb[27].mxu0  ;;  %v3034_v37 = vld [vmem:[#allocation2 + $0x52] sm:$0xf]  ;;  %v3100_v44 = vld [vmem:[#allocation2 + $0x56] sm:$0xf]  ;;  %v3302_v19 = vmul.f32 %v3298_v47, %v4810_v56  ;;  %v3076_v23 = vadd.f32 %v3075_v61, %v3074_v46 }
 0x126   : > { %v3927_v8 = vpop.f32.mrb[27].mxu1  ;;  %v3001_v38 = vld [vmem:[#allocation2 + $0x50] sm:$0xf]  ;;  %2205 = vst [vmem:[#allocation2 + $0x61] sm:$0xff] %v2203_v33  ;;  %v3038_v41 = vmul.f32 %v3034_v37, %v4810_v56  ;;  %v3067_v45 = vld [vmem:[#allocation2 + $0x54] sm:$0xf]  ;;  %v3104_v50 = vmul.f32 %v3100_v44, %v4810_v56  ;;  %v3233_v9 = vmul.f32 %v3229_v14, %v4776_v3  ;;  %v3200_v39 = vmul.f32 %v3196_v18, %v4776_v3 }
 0x127   : > { %v3005_v43 = vmul.f32 %v3001_v38, %v4810_v56  ;;  %v2524_v48 = vadd.f32 %v2520_v29, %v2444_v34  ;;  %v3071_v51 = vmul.f32 %v3067_v45, %v4810_v56  ;;  %v3164_v53 = vld [vmem:[#allocation2 + $0x52] sm:$0xf]  ;;  %v3230_v24 = vld [vmem:[#allocation2 + $0x56] sm:$0xf]  ;;  %v4878_v46 = vsel %vm256_vm0, %v3302_v19, 0.0 }
 0x128   : > { %v2609_v55 = vpop.f32.mrb[28].mxu0  ;;  %v3044_v58 = vsel %vm256_vm0, %v3038_v41, 0.0  ;;  %v3131_v13 = vld [vmem:[#allocation2 + $0x50] sm:$0xf]  ;;  %v3110_v15 = vsel %vm256_vm0, %v3104_v50, 0.0  ;;  %v3168_v17 = vmul.f32 %v3164_v53, %v4781_v6  ;;  %v3234_v37 = vmul.f32 %v3230_v24, %v4781_v6 }
 0x129   : > { %v2685_v57 = vpop.f32.mrb[28].mxu1  ;;  %v3011_v59 = vsel %vm256_vm0, %v3005_v43, 0.0  ;;  %v2525_v62 = vadd.f32 %v4769_v36, %v2524_v48  ;;  %v3934_v1 = vpop.f32.mrb[29].mxu0  ;;  %v3045_v10 = vadd.f32 %v3044_v58, %v3043_v42  ;;  %v3077_v16 = vsel %vm256_vm0, %v3071_v51, 0.0  ;;  %v3197_v11 = vld [vmem:[#allocation2 + $0x54] sm:$0xf] }
 0x12a   : > { %v2686_v63 = vadd.f32 %v2685_v57, %v2609_v55  ;;  %v3941_v7 = vpop.f32.mrb[29].mxu1  ;;  %v3012_v12 = vadd.f32 %v3011_v59, %v3010_v49  ;;  %v3135_v5 = vmul.f32 %v3131_v13, %v4781_v6  ;;  %v3111_v31 = vadd.f32 %v3110_v15, %v3109_v21  ;;  %v3265_v51 = vld [vmem:[#allocation2 + $0x90] sm:$0xf] }
 0x12b   : > { %vm2526_vm11 = vcmp.ge.f32.partialorder %v2525_v62, 0.0  ;;  %v2527_v20 = vmul.f32 0.2, %v2525_v62  ;;  %3046 = vadd.xlane.f32.xlu1 %v3045_v10  ;;  %v3078_v32 = vadd.f32 %v3077_v16, %v3076_v23  ;;  %v3172_v35 = vsel %vm256_vm0, %v3168_v17, 0.0  ;;  %v3364_v10 = vld [vmem:[#allocation2 + $0x96] sm:$0xf] }
 0x12c   : > { %3013 = vadd.xlane.f32.xlu0 %v3012_v12  ;;  %v2765_v25 = vpop.f32.mrb[30].mxu0  ;;  %v3201_v42 = vmul.f32 %v3197_v11, %v4781_v6  ;;  %v3171_v43 = vsel %vm256_vm0, %v3167_v27, 0.0  ;;  %v3138_v49 = vsel %vm256_vm0, %v3134_v0, 0.0  ;;  %v3139_v50 = vsel %vm256_vm0, %v3135_v5, 0.0 }
 0x12d   : > { %v2845_v26 = vpop.f32.mrb[30].mxu1  ;;  %v2528_v2 = vsel %vm2526_vm11, %v2525_v62, %v2527_v20  ;;  %v2769_v28 = vadd.f32 %v2765_v25, %v2686_v63  ;;  %v3948_v29 = vpop.f32.mrb[31].mxu0  ;;  %v3165_v4 = vld [vmem:[#allocation2 + $0x62] sm:$0xf]  ;;  %v3231_v8 = vld [vmem:[#allocation2 + $0x66] sm:$0xf]  ;;  %v3173_v48 = vadd.f32 %v3172_v35, %v3171_v43  ;;  %v3140_v60 = vadd.f32 %v3139_v50, %v3138_v49 }
 0x12e   : > { %v3955_v30 = vpop.f32.mrb[31].mxu1  ;;  %v3132_v33 = vld [vmem:[#allocation2 + $0x60] sm:$0xf]  ;;  %2530 = vst [vmem:[#allocation2 + $0x71] sm:$0xff] %v2528_v2  ;;  %v3169_v34 = vmul.f32 %v3165_v4, %v4787_v22  ;;  %v3198_v38 = vld [vmem:[#allocation2 + $0x64] sm:$0xf]  ;;  %v3235_v44 = vmul.f32 %v3231_v8, %v4787_v22  ;;  %v4892_v1 = vmul.f32 %v3265_v51, %v4810_v56 }
 0x12f   : > { %v2849_v40 = vadd.f32 %v2845_v26, %v2769_v28  ;;  %3112 = vadd.xlane.f32.xlu1 %v3111_v31  ;;  %v3136_v41 = vmul.f32 %v3132_v33, %v4787_v22  ;;  %v3202_v45 = vmul.f32 %v3198_v38, %v4787_v22  ;;  %v3237_v53 = vsel %vm256_vm0, %v3233_v9, 0.0  ;;  %v3295_v57 = vld [vmem:[#allocation2 + $0x62] sm:$0xf]  ;;  %v3361_v7 = vld [vmem:[#allocation2 + $0x66] sm:$0xf] }
 0x130   : > { %3079 = vadd.xlane.f32.xlu0 %v3078_v32  ;;  %v3174_v52 = vsel %vm256_vm0, %v3169_v34, 0.0  ;;  %v3238_v54 = vsel %vm256_vm0, %v3234_v37, 0.0  ;;  %v3204_v55 = vsel %vm256_vm0, %v3200_v39, 0.0  ;;  %v3240_v61 = vsel %vm256_vm0, %v3235_v44, 0.0  ;;  %v3262_v63 = vld [vmem:[#allocation2 + $0x60] sm:$0xf] }
 0x131   : > { %v2850_v47 = vadd.f32 %v4769_v36, %v2849_v40  ;;  %v3141_v59 = vsel %vm256_vm0, %v3136_v41, 0.0  ;;  %v3205_v36 = vsel %vm256_vm0, %v3201_v42, 0.0  ;;  %v3207_v62 = vsel %vm256_vm0, %v3202_v45, 0.0  ;;  %v3328_v31 = vld [vmem:[#allocation2 + $0x64] sm:$0xf] }
 0x132   : > { %v3175_v14 = vadd.f32 %v3174_v52, %v3173_v48  ;;  %v3239_v17 = vadd.f32 %v3238_v54, %v3237_v53  ;;  %v3299_v18 = vmul.f32 %v3295_v57, %v4776_v3  ;;  %v3142_v21 = vadd.f32 %v3141_v59, %v3140_v60  ;;  %v3331_v40 = vld [vmem:[#allocation2 + $0x94] sm:$0xf] }
 0x133   : > { %vm2851_vm12 = vcmp.ge.f32.partialorder %v2850_v47, 0.0  ;;  %v2852_v58 = vmul.f32 0.2, %v2850_v47  ;;  %v3266_v5 = vmul.f32 %v3262_v63, %v4776_v3  ;;  %v3365_v11 = vmul.f32 %v3361_v7, %v4776_v3 }
 0x134   : > { %v3206_v33 = vadd.f32 %v3205_v36, %v3204_v55  ;;  %v3368_v34 = vmul.f32 %v3364_v10, %v4810_v56  ;;  %v3241_v8 = vadd.f32 %v3240_v61, %v3239_v17  ;;  %v3303_v42 = vsel %vm256_vm0, %v3299_v18, 0.0 }
 0x135   : > { %v2853_v12 = vsel %vm2851_vm12, %v2850_v47, %v2852_v58  ;;  %v3166_v13 = vld [vmem:[#allocation2 + $0x72] sm:$0xf]  ;;  %v3232_v16 = vld [vmem:[#allocation2 + $0x76] sm:$0xf]  ;;  %v3270_v43 = vsel %vm256_vm0, %v3266_v5, 0.0  ;;  %v3332_v44 = vmul.f32 %v3328_v31, %v4776_v3  ;;  %v3369_v47 = vsel %vm256_vm0, %v3365_v11, 0.0 }
 0x136   : > { %v3133_v15 = vld [vmem:[#allocation2 + $0x70] sm:$0xf]  ;;  %2855 = vst [vmem:[#allocation2 + $0x81] sm:$0xff] %v2853_v12  ;;  %v3170_v19 = vmul.f32 %v3166_v13, %v4810_v56  ;;  %v3236_v23 = vmul.f32 %v3232_v16, %v4810_v56  ;;  %v3199_v24 = vld [vmem:[#allocation2 + $0x74] sm:$0xf]  ;;  %v3208_v41 = vadd.f32 %v3207_v62, %v3206_v33  ;;  %v3335_v57 = vmul.f32 %v3331_v40, %v4810_v56 }
 0x137   : > { %v3137_v20 = vmul.f32 %v3133_v15, %v4810_v56  ;;  %v3296_v25 = vld [vmem:[#allocation2 + $0x72] sm:$0xf]  ;;  %v3203_v27 = vmul.f32 %v3199_v24, %v4810_v56  ;;  %v3362_v9 = vld [vmem:[#allocation2 + $0x76] sm:$0xf]  ;;  %v3275_v61 = vsel %vm256_vm0, %v4892_v1, 0.0  ;;  %v3336_v12 = vsel %vm256_vm0, %v3332_v44, 0.0 }
 0x138   : > { %v3263_v26 = vld [vmem:[#allocation2 + $0x70] sm:$0xf]  ;;  %v3300_v0 = vmul.f32 %v3296_v25, %v4781_v6  ;;  %v3176_v2 = vsel %vm256_vm0, %v3170_v19, 0.0  ;;  %v3366_v30 = vmul.f32 %v3362_v9, %v4781_v6  ;;  %v3329_v35 = vld [vmem:[#allocation2 + $0x74] sm:$0xf]  ;;  %v3242_v37 = vsel %vm256_vm0, %v3236_v23, 0.0 }
 0x139   : > { %v3143_v28 = vsel %vm256_vm0, %v3137_v20, 0.0  ;;  %v3267_v29 = vmul.f32 %v3263_v26, %v4781_v6  ;;  %v3177_v32 = vadd.f32 %v3176_v2, %v3175_v14  ;;  %v3209_v38 = vsel %vm256_vm0, %v3203_v27, 0.0 }
 0x13a   : > { %v3144_v4 = vadd.f32 %v3143_v28, %v3142_v21  ;;  %v3304_v39 = vsel %vm256_vm0, %v3300_v0, 0.0  ;;  %v3370_v48 = vsel %vm256_vm0, %v3366_v30, 0.0  ;;  %v3333_v49 = vmul.f32 %v3329_v35, %v4781_v6 }
 0x13b   : > { %3178 = vadd.xlane.f32.xlu1 %v3177_v32  ;;  %v3271_v45 = vsel %vm256_vm0, %v3267_v29, 0.0  ;;  %v3243_v50 = vadd.f32 %v3242_v37, %v3241_v8  ;;  %v3210_v51 = vadd.f32 %v3209_v38, %v3208_v41  ;;  %v3305_v53 = vadd.f32 %v3304_v39, %v3303_v42 }
 0x13c   : > { %3145 = vadd.xlane.f32.xlu0 %v3144_v4  ;;  %v3337_v60 = vsel %vm256_vm0, %v3333_v49, 0.0  ;;  %v3272_v6 = vadd.f32 %v3271_v45, %v3270_v43  ;;  %v3371_v62 = vadd.f32 %v3370_v48, %v3369_v47  ;;  %v3341_v20 = vsel %vm256_vm0, %v3335_v57, 0.0 }
 0x13d   : > { %v3297_v52 = vld [vmem:[#allocation2 + $0x82] sm:$0xf]  ;;  %v3363_v55 = vld [vmem:[#allocation2 + $0x86] sm:$0xf]  ;;  %v3338_v15 = vadd.f32 %v3337_v60, %v3336_v12 }
 0x13e   : > { %v3264_v54 = vld [vmem:[#allocation2 + $0x80] sm:$0xf]  ;;  %v3301_v58 = vmul.f32 %v3297_v52, %v4787_v22  ;;  %v3367_v59 = vmul.f32 %v3363_v55, %v4787_v22  ;;  %v3330_v36 = vld [vmem:[#allocation2 + $0x84] sm:$0xf] }
 0x13f   : > { %v3268_v3 = vmul.f32 %v3264_v54, %v4787_v22  ;;  %3244 = vadd.xlane.f32.xlu1 %v3243_v50  ;;  %v3334_v63 = vmul.f32 %v3330_v36, %v4787_v22  ;;  %v3374_v22 = vsel %vm256_vm0, %v3368_v34, 0.0 }
 0x140   : > { %3211 = vadd.xlane.f32.xlu0 %v3210_v51  ;;  %v3306_v56 = vsel %vm256_vm0, %v3301_v58, 0.0  ;;  %v3372_v10 = vsel %vm256_vm0, %v3367_v59, 0.0 }
 0x141   : > { %v3273_v7 = vsel %vm256_vm0, %v3268_v3, 0.0  ;;  %v3307_v13 = vadd.f32 %v3306_v56, %v3305_v53  ;;  %v3339_v16 = vsel %vm256_vm0, %v3334_v63, 0.0  ;;  %v3373_v1 = vadd.f32 %v3372_v10, %v3371_v62 }
 0x142   : > { %v3274_v14 = vadd.f32 %v3273_v7, %v3272_v6  ;;  %v3340_v19 = vadd.f32 %v3339_v16, %v3338_v15  ;;  %vm2996_vm0 = vcmask 24600  }
 0x143   : > { %v3309_v17 = vadd.f32 %v4878_v46, %v3307_v13  ;;  %v3375_v21 = vadd.f32 %v3374_v22, %v3373_v1 }
 0x144   : > { %v3276_v18 = vadd.f32 %v3275_v61, %v3274_v14  ;;  %v3342_v23 = vadd.f32 %v3341_v20, %v3340_v19 }
 0x145   : > { %3310 = vadd.xlane.f32.xlu1 %v3309_v17 }
 0x146   : > { %3277 = vadd.xlane.f32.xlu0 %v3276_v18 }
 0x149   : > { %3376 = vadd.xlane.f32.xlu1 %v3375_v21 }
 0x14a   : > { %3343 = vadd.xlane.f32.xlu0 %v3342_v23 }
 0x1a8   : > { %v2946_v24 = vpop.xlane.xlu1 %2945  ;;  %v2877_v25 = vpop.xlane.xlu0 %2876 }
 0x1a9   : > { %v2947_v26 = vrot.slane %v2946_v24, 4  ;;  %v2878_v27 = vrot.slane %v2877_v25, 4 }
 0x1ab   : > { %v2948_v0 = vadd.f32 %v2947_v26, %v2946_v24  ;;  %v2879_v5 = vadd.f32 %v2878_v27, %v2877_v25 }
 0x1ac   : > { %v2980_v46 = vpop.xlane.xlu1 %2979  ;;  %v2912_v9 = vpop.xlane.xlu0 %2911 }
 0x1ad   : > { %v2949_v11 = vrot.slane %v2948_v0, 2  ;;  %v2880_v2 = vrot.slane %v2879_v5, 2  ;;  %v2981_v28 = vrot.slane %v2980_v46, 4  ;;  %v2913_v29 = vrot.slane %v2912_v9, 4 }
 0x1af   : > { %v2982_v30 = vadd.f32 %v2981_v28, %v2980_v46  ;;  %v2914_v31 = vadd.f32 %v2913_v29, %v2912_v9  ;;  %v2881_v32 = vadd.f32 %v2880_v2, %v2879_v5  ;;  %v2950_v4 = vadd.f32 %v2949_v11, %v2948_v0 }
 0x1b1   : > { %v2983_v33 = vrot.slane %v2982_v30, 2  ;;  %v2915_v34 = vrot.slane %v2914_v31, 2  ;;  %v2882_v35 = vrot.slane %v2881_v32, 1  ;;  %v2951_v39 = vrot.slane %v2950_v4, 1 }
 0x1b3   : > { %v2883_v8 = vadd.f32 %v2882_v35, %v2881_v32  ;;  %v2916_v37 = vadd.f32 %v2915_v34, %v2914_v31  ;;  %v2984_v38 = vadd.f32 %v2983_v33, %v2982_v30  ;;  %v2952_v47 = vadd.f32 %v2951_v39, %v2950_v4 }
 0x1b5   : > { %4085 = vpush %v2883_v8  ;;  %v2917_v40 = vrot.slane %v2916_v37, 1  ;;  %v2985_v41 = vrot.slane %v2984_v38, 1 }
 0x1b7   : > { %v2918_v42 = vadd.f32 %v2917_v40, %v2916_v37  ;;  %v2986_v43 = vadd.f32 %v2985_v41, %v2984_v38 }
 0x1b8   : > { %v3047_v44 = vpop.xlane.xlu1 %3046 }
 0x1b9   : > { %v3014_v45 = vpop.xlane.xlu0 %3013  ;;  %v3048_v48 = vrot.slane %v3047_v44, 4  ;;  %4087 = vpush %v2918_v42 }
 0x1ba   : > { %v3015_v49 = vrot.slane %v3014_v45, 4  ;;  %4089 = vpush %v2952_v47 }
 0x1bb   : > { %v3049_v50 = vadd.f32 %v3048_v48, %v3047_v44  ;;  %4091 = vpush %v2986_v43 }
 0x1bc   : > { %v3016_v51 = vadd.f32 %v3015_v49, %v3014_v45  ;;  %v3113_v52 = vpop.xlane.xlu1 %3112 }
 0x1bd   : > { %v3080_v53 = vpop.xlane.xlu0 %3079  ;;  %v3050_v54 = vrot.slane %v3049_v50, 2  ;;  %v3114_v57 = vrot.slane %v3113_v52, 4 }
 0x1be   : > { %v3017_v55 = vrot.slane %v3016_v51, 2  ;;  %v3081_v58 = vrot.slane %v3080_v53, 4 }
 0x1bf   : > { %v3115_v3 = vadd.f32 %v3114_v57, %v3113_v52  ;;  %v3051_v60 = vadd.f32 %v3050_v54, %v3049_v50 }
 0x1c0   : > { %v3082_v59 = vadd.f32 %v3081_v58, %v3080_v53  ;;  %v3018_v36 = vadd.f32 %v3017_v55, %v3016_v51 }
 0x1c1   : > { %v3116_v6 = vrot.slane %v3115_v3, 2  ;;  %v3052_v63 = vrot.slane %v3051_v60, 1 }
 0x1c2   : > { %v3083_v61 = vrot.slane %v3082_v59, 2  ;;  %v3019_v62 = vrot.slane %v3018_v36, 1 }
 0x1c3   : > { %v3053_v7 = vadd.f32 %v3052_v63, %v3051_v60  ;;  %v3117_v12 = vadd.f32 %v3116_v6, %v3115_v3 }
 0x1c4   : > { %v3020_v56 = vadd.f32 %v3019_v62, %v3018_v36  ;;  %v3084_v10 = vadd.f32 %v3083_v61, %v3082_v59 }
 0x1c5   : > { %v3118_v14 = vrot.slane %v3117_v12, 1 }
 0x1c6   : > { %4093 = vpush %v3020_v56  ;;  %v3085_v13 = vrot.slane %v3084_v10, 1  ;;  %v4933_v56 = vstv %s2860_s11 }
 0x1c7   : > { %4095 = vpush %v3053_v7  ;;  %v3119_v16 = vadd.f32 %v3118_v14, %v3117_v12 }
 0x1c8   : > { %v3086_v15 = vadd.f32 %v3085_v13, %v3084_v10  ;;  %v3179_v17 = vpop.xlane.xlu1 %3178 }
 0x1c9   : > { %v3146_v18 = vpop.xlane.xlu0 %3145  ;;  %v3180_v1 = vrot.slane %v3179_v17, 4 }
 0x1ca   : > { %v3147_v19 = vrot.slane %v3146_v18, 4  ;;  %4097 = vpush %v3086_v15 }
 0x1cb   : > { %4099 = vpush %v3119_v16  ;;  %v3181_v22 = vadd.f32 %v3180_v1, %v3179_v17 }
 0x1cc   : > { %v3148_v20 = vadd.f32 %v3147_v19, %v3146_v18  ;;  %v3245_v21 = vpop.xlane.xlu1 %3244 }
 0x1cd   : > { %v3212_v23 = vpop.xlane.xlu0 %3211  ;;  %v3182_v24 = vrot.slane %v3181_v22, 2  ;;  %v3246_v26 = vrot.slane %v3245_v21, 4 }
 0x1ce   : > { %v3149_v25 = vrot.slane %v3148_v20, 2  ;;  %v3213_v27 = vrot.slane %v3212_v23, 4 }
 0x1cf   : > { %v3247_v0 = vadd.f32 %v3246_v26, %v3245_v21  ;;  %v3183_v9 = vadd.f32 %v3182_v24, %v3181_v22 }
 0x1d0   : > { %v3214_v5 = vadd.f32 %v3213_v27, %v3212_v23  ;;  %v3150_v46 = vadd.f32 %v3149_v25, %v3148_v20 }
 0x1d1   : > { %v3248_v11 = vrot.slane %v3247_v0, 2  ;;  %v3184_v29 = vrot.slane %v3183_v9, 1 }
 0x1d2   : > { %v3215_v2 = vrot.slane %v3214_v5, 2  ;;  %v3151_v28 = vrot.slane %v3150_v46, 1  ;;  %v3311_v30 = vpop.xlane.xlu1 %3310 }
 0x1d3   : > { %v3278_v31 = vpop.xlane.xlu0 %3277  ;;  %v3312_v32 = vrot.slane %v3311_v30, 4  ;;  %v3185_v34 = vadd.f32 %v3184_v29, %v3183_v9  ;;  %v3249_v8 = vadd.f32 %v3248_v11, %v3247_v0 }
 0x1d4   : > { %v3279_v4 = vrot.slane %v3278_v31, 4  ;;  %v3152_v33 = vadd.f32 %v3151_v28, %v3150_v46  ;;  %v3216_v35 = vadd.f32 %v3215_v2, %v3214_v5 }
 0x1d5   : > { %v3313_v37 = vadd.f32 %v3312_v32, %v3311_v30  ;;  %v3250_v42 = vrot.slane %v3249_v8, 1 }
 0x1d6   : > { %v3280_v38 = vadd.f32 %v3279_v4, %v3278_v31  ;;  %4101 = vpush %v3152_v33  ;;  %v3377_v39 = vpop.xlane.xlu1 %3376  ;;  %v3217_v41 = vrot.slane %v3216_v35, 1 }
 0x1d7   : > { %4103 = vpush %v3185_v34  ;;  %v3344_v40 = vpop.xlane.xlu0 %3343  ;;  %v3314_v43 = vrot.slane %v3313_v37, 2  ;;  %v3378_v45 = vrot.slane %v3377_v39, 4  ;;  %v3251_v49 = vadd.f32 %v3250_v42, %v3249_v8 }
 0x1d8   : > { %v3281_v44 = vrot.slane %v3280_v38, 2  ;;  %v3345_v47 = vrot.slane %v3344_v40, 4  ;;  %v3218_v48 = vadd.f32 %v3217_v41, %v3216_v35 }
 0x1d9   : > { %v3379_v50 = vadd.f32 %v3378_v45, %v3377_v39  ;;  %v3315_v53 = vadd.f32 %v3314_v43, %v3313_v37 }
 0x1da   : > { %v3346_v51 = vadd.f32 %v3345_v47, %v3344_v40  ;;  %v3282_v52 = vadd.f32 %v3281_v44, %v3280_v38  ;;  %4105 = vpush %v3218_v48 }
 0x1db   : > { %v3380_v54 = vrot.slane %v3379_v50, 2  ;;  %4107 = vpush %v3251_v49  ;;  %v3316_v58 = vrot.slane %v3315_v53, 1 }
 0x1dc   : > { %v3347_v55 = vrot.slane %v3346_v51, 2  ;;  %v3283_v57 = vrot.slane %v3282_v52, 1 }
 0x1dd   : > { %v3381_v3 = vadd.f32 %v3380_v54, %v3379_v50  ;;  %v3317_v60 = vadd.f32 %v3316_v58, %v3315_v53 }
 0x1de   : > { %v3348_v59 = vadd.f32 %v3347_v55, %v3346_v51  ;;  %v3284_v36 = vadd.f32 %v3283_v57, %v3282_v52 }
 0x1df   : > { %v3382_v61 = vrot.slane %v3381_v3, 1 }
 0x1e0   : > { %4109 = vpush %v3284_v36  ;;  %v3349_v6 = vrot.slane %v3348_v59, 1 }
 0x1e1   : > { %4111 = vpush %v3317_v60  ;;  %v3383_v63 = vadd.f32 %v3382_v61, %v3381_v3 }
 0x1e2   : > { %v3350_v62 = vadd.f32 %v3349_v6, %v3348_v59 }
 0x1e4   : > { %4113 = vpush %v3350_v62 }
 0x1e5   : > { %4115 = vpush %v3383_v63 }
 0x1e6   : > { %s4086_s12 = spop %4085 }
 0x1e7   : > { %v2885_v7 = vstv %s4086_s12 }
 0x1e8   : > { %v2887_v10 = vadd.f32 %v4933_v56, %v2885_v7 }
 0x1ea   : > { %v3616_v12 = vmul.f32 -1.442695, %v2887_v10  ;;  %s4088_s13 = spop %4087 }
 0x1eb   : > { %v2920_v13 = vstv %s4088_s13  ;;  %s4090_s14 = spop %4089 }
 0x1ec   : > { %4160 = vpow2.f32 %v3616_v12  ;;  %v2921_v14 = vadd.f32 %v2920_v13, %v4933_v56  ;;  %v2954_v15 = vstv %s4090_s14  ;;  %s4092_s15 = spop %4091  ;;  %s3633_s14 = sshll.u32 %s4347_s4, 6 }
 0x1ed   : > { %v2955_v16 = vadd.f32 %v2954_v15, %v4933_v56  ;;  %v2988_v17 = vstv %s4092_s15  ;;  %s3408_s15 = sshll.u32 %s4946_s26, 4  ;;  %s3395_s4 = scalar_lea.sflag [#allocation5], %s216_s19  ;;  %s4991_s15 = int_to_ptr.vmem [resolvable:$true] %s3408_s15 }
 0x1ee   : > { %v3617_v18 = vmul.f32 -1.442695, %v2921_v14  ;;  %v2989_v1 = vadd.f32 %v2988_v17, %v4933_v56 }
 0x1ef   : > { %v3618_v19 = vmul.f32 -1.442695, %v2955_v16 }
 0x1f0   : > { %4162 = vpow2.f32 %v3617_v18  ;;  %v3619_v22 = vmul.f32 -1.442695, %v2989_v1 }
 0x1f1   : > { %4164 = vpow2.f32 %v3618_v19 }
 0x1f2   : > { %4166 = vpow2.f32 %v3619_v22 }
 0x1f6   : > { %v4161_v20 = vpop.eup %4160 }
 0x1f7   : > { %s4094_s16 = spop %4093  ;;  %v2891_v21 = vadd.f32 1.0, %v4161_v20 }
 0x1f8   : > { %v3022_v23 = vstv %s4094_s16  ;;  %s4096_s17 = spop %4095 }
 0x1f9   : > { %v3023_v24 = vadd.f32 %v3022_v23, %v4933_v56  ;;  %v3055_v25 = vstv %s4096_s17  ;;  %4168 = vrcp.f32 %v2891_v21 }
 0x1fa   : > { %v3056_v26 = vadd.f32 %v3055_v25, %v4933_v56  ;;  %v4163_v27 = vpop.eup %4162 }
 0x1fb   : > { %v3620_v0 = vmul.f32 -1.442695, %v3023_v24  ;;  %s4098_s9 = spop %4097  ;;  %v4165_v5 = vpop.eup %4164  ;;  %v2925_v46 = vadd.f32 1.0, %v4163_v27 }
 0x1fc   : > { %v3621_v9 = vmul.f32 -1.442695, %v3056_v26  ;;  %v3088_v11 = vstv %s4098_s9  ;;  %s4100_s18 = spop %4099  ;;  %v4167_v2 = vpop.eup %4166  ;;  %v2959_v28 = vadd.f32 1.0, %v4165_v5  ;;  %s4989_s9 = scalar_lea.hbm %s5042_s5, %s3633_s14 }
 0x1fd   : > { %4170 = vpow2.f32 %v3620_v0  ;;  %v3089_v29 = vadd.f32 %v3088_v11, %v4933_v56  ;;  %v3121_v30 = vstv %s4100_s18  ;;  %v2993_v31 = vadd.f32 1.0, %v4167_v2  ;;  %s4224_s18 = scalar_lea.vmem %s4991_s15, 64 }
 0x1fe   : > { %4172 = vrcp.f32 %v2925_v46  ;;  %v3122_v32 = vadd.f32 %v3121_v30, %v4933_v56  ;;  %p4225_p11 = scmp.ne.s32.totalorder %s4991_s15, %s4224_s18 }
 0x1ff   : > { %4174 = vrcp.f32 %v2959_v28  ;;  %v3622_v4 = vmul.f32 -1.442695, %v3089_v29 }
 0x200   : > { %4176 = vrcp.f32 %v2993_v31  ;;  %v3623_v33 = vmul.f32 -1.442695, %v3122_v32  ;;  %p4226_p12 = pnand %p4225_p11, %p4364_p5 }
 0x201   : > { %4178 = vpow2.f32 %v3621_v9 }
 0x202   : > { %4180 = vpow2.f32 %v3622_v4  ;;  %p4227_p13 = pneg %p4226_p12 }
 0x203   : > { %4182 = vpow2.f32 %v3623_v33  ;;  %v4169_v34 = vpop.eup %4168 }
 0x204   : > { %2895 = vst.msk [vmem:[%s4946_s26] sm:$0x1] %vm2894_vm13, %v4169_v34 }
 0x207   : > { %v4171_v35 = vpop.eup %4170  ;;  %s4102_s27 = spop %4101 }
 0x208   : > { %v4173_v8 = vpop.eup %4172  ;;  %v3027_v37 = vadd.f32 1.0, %v4171_v35  ;;  %v3154_v38 = vstv %s4102_s27  ;;  %s4104_s6 = spop %4103  ;;  %s4228_s27 = sshll.u32 %s4292_s24, 4  ;;  %s4229_s27 = int_to_ptr.vmem [resolvable:$false] %s4228_s27 }
 0x209   : > { %v4175_v39 = vpop.eup %4174  ;;  %v3155_v40 = vadd.f32 %v3154_v38, %v4933_v56  ;;  %v3187_v41 = vstv %s4104_s6  ;;  %2929 = vst.msk [vmem:[%s4946_s26] sm:$0x1] %vm2928_vm14, %v4173_v8  ;;  %s4230_s6 = scalar_lea.vmem %s4229_s27, 128  ;;  %p4231_p0 = scmp.lt.s32.totalorder %s4991_s15, %s4229_s27 }
 0x20a   : > { %v4177_v42 = vpop.eup %4176  ;;  %4184 = vrcp.f32 %v3027_v37  ;;  %v3188_v43 = vadd.f32 %v3187_v41, %v4933_v56  ;;  %2963 = vst.msk [vmem:[%s4946_s26] sm:$0x1] %vm2962_vm15, %v4175_v39  ;;  %p4232_p1 = scmp.lt.s32.totalorder %s4230_s6, %s4224_s18 }
 0x20b   : > { %v4179_v44 = vpop.eup %4178  ;;  %v3624_v45 = vmul.f32 -1.442695, %v3155_v40  ;;  %2997 = vst.msk [vmem:[%s4946_s26] sm:$0x1] %vm2996_vm0, %v4177_v42  ;;  %s4106_s7 = spop %4105 }
 0x20c   : > { %v4181_v47 = vpop.eup %4180  ;;  %v3060_v48 = vadd.f32 1.0, %v4179_v44  ;;  %v3625_v51 = vmul.f32 -1.442695, %v3188_v43  ;;  %v3220_v52 = vstv %s4106_s7  ;;  %s4108_s8 = spop %4107  ;;  %p4233_p2 = por %p4232_p1, %p4231_p0 }
 0x20d   : > { %v4183_v49 = vpop.eup %4182  ;;  %v3093_v50 = vadd.f32 1.0, %v4181_v47  ;;  %4186 = vpow2.f32 %v3624_v45  ;;  %v3221_v54 = vadd.f32 %v3220_v52, %v4933_v56  ;;  %v3253_v55 = vstv %s4108_s8 }
 0x20e   : > { %4188 = vrcp.f32 %v3060_v48  ;;  %v3126_v53 = vadd.f32 1.0, %v4183_v49  ;;  %v3254_v57 = vadd.f32 %v3253_v55, %v4933_v56  ;;  %p4234_p3 = pnand %p4233_p2, %p4227_p13 }
 0x20f   : > { %4190 = vrcp.f32 %v3093_v50  ;;  %v3626_v58 = vmul.f32 -1.442695, %v3221_v54 }
 0x210   : > { %4192 = vrcp.f32 %v3126_v53  ;;  %v3627_v3 = vmul.f32 -1.442695, %v3254_v57 }
 0x211   : > { %4194 = vpow2.f32 %v3625_v51  ;;  %s4110_s10 = spop %4109 }
 0x212   : > { %4196 = vpow2.f32 %v3626_v58  ;;  %v3286_v59 = vstv %s4110_s10  ;;  %s4112_s11 = spop %4111 }
 0x213   : > { %4198 = vpow2.f32 %v3627_v3  ;;  %v3287_v36 = vadd.f32 %v3286_v59, %v4933_v56  ;;  %v3319_v60 = vstv %s4112_s11 }
 0x214   : > { %v4185_v6 = vpop.eup %4184  ;;  %v3320_v61 = vadd.f32 %v3319_v60, %v4933_v56 }
 0x215   : > { %v3628_v62 = vmul.f32 -1.442695, %v3287_v36  ;;  %s4114_s12 = spop %4113  ;;  %3030 = vst.msk [vmem:[%s4946_s26 + $0x1] sm:$0x1] %vm2894_vm13, %v4185_v6 }
 0x216   : > { %v3629_v63 = vmul.f32 -1.442695, %v3320_v61  ;;  %v3352_v7 = vstv %s4114_s12  ;;  %s4116_s13 = spop %4115 }
 0x217   : > { %v4187_v10 = vpop.eup %4186  ;;  %4200 = vpow2.f32 %v3628_v62  ;;  %v3353_v12 = vadd.f32 %v3352_v7, %v4933_v56  ;;  %v3385_v13 = vstv %s4116_s13 }
 0x218   : > { %v4189_v14 = vpop.eup %4188  ;;  %v3159_v15 = vadd.f32 1.0, %v4187_v10  ;;  %4202 = vpow2.f32 %v3629_v63  ;;  %v3386_v16 = vadd.f32 %v3385_v13, %v4933_v56 }
 0x219   : > { %v4191_v17 = vpop.eup %4190  ;;  %v3630_v18 = vmul.f32 -1.442695, %v3353_v12  ;;  %3063 = vst.msk [vmem:[%s4946_s26 + $0x1] sm:$0x1] %vm2928_vm14, %v4189_v14 }
 0x21a   : > { %v4193_v1 = vpop.eup %4192  ;;  %4204 = vrcp.f32 %v3159_v15  ;;  %v3631_v19 = vmul.f32 -1.442695, %v3386_v16  ;;  %3096 = vst.msk [vmem:[%s4946_s26 + $0x1] sm:$0x1] %vm2962_vm15, %v4191_v17 }
 0x21b   : > { %v4195_v22 = vpop.eup %4194  ;;  %4206 = vpow2.f32 %v3630_v18  ;;  %3129 = vst.msk [vmem:[%s4946_s26 + $0x1] sm:$0x1] %vm2996_vm0, %v4193_v1 }
 0x21c   : > { %v4197_v20 = vpop.eup %4196  ;;  %v3192_v21 = vadd.f32 1.0, %v4195_v22  ;;  %4208 = vpow2.f32 %v3631_v19 }
 0x21d   : > { %v4199_v23 = vpop.eup %4198  ;;  %v3225_v24 = vadd.f32 1.0, %v4197_v20 }
 0x21e   : > { %4210 = vrcp.f32 %v3192_v21  ;;  %v3258_v56 = vadd.f32 1.0, %v4199_v23 }
 0x21f   : > { %4212 = vrcp.f32 %v3225_v24 }
 0x220   : > { %4214 = vrcp.f32 %v3258_v56 }
 0x221   : > { %v4201_v25 = vpop.eup %4200 }
 0x222   : > { %v4203_v26 = vpop.eup %4202  ;;  %v3291_v27 = vadd.f32 1.0, %v4201_v25 }
 0x223   : > { %v3324_v0 = vadd.f32 1.0, %v4203_v26 }
 0x224   : > { %v4205_v5 = vpop.eup %4204  ;;  %4216 = vrcp.f32 %v3291_v27 }
 0x225   : > { %v4207_v46 = vpop.eup %4206  ;;  %4218 = vrcp.f32 %v3324_v0  ;;  %3162 = vst.msk [vmem:[%s4946_s26 + $0x2] sm:$0x1] %vm2894_vm13, %v4205_v5 }
 0x226   : > { %v4209_v9 = vpop.eup %4208  ;;  %v3357_v11 = vadd.f32 1.0, %v4207_v46 }
 0x227   : > { %v3390_v2 = vadd.f32 1.0, %v4209_v9 }
 0x228   : > { %v4211_v28 = vpop.eup %4210  ;;  %4220 = vrcp.f32 %v3357_v11 }
 0x229   : > { %v4213_v29 = vpop.eup %4212  ;;  %4222 = vrcp.f32 %v3390_v2  ;;  %3195 = vst.msk [vmem:[%s4946_s26 + $0x2] sm:$0x1] %vm2928_vm14, %v4211_v28 }
 0x22a   : > { %v4215_v30 = vpop.eup %4214  ;;  %3228 = vst.msk [vmem:[%s4946_s26 + $0x2] sm:$0x1] %vm2962_vm15, %v4213_v29 }
 0x22b   : > { %3261 = vst.msk [vmem:[%s4946_s26 + $0x2] sm:$0x1] %vm2996_vm0, %v4215_v30 }
 0x22e   : > { %v4217_v31 = vpop.eup %4216 }
 0x22f   : > { %v4219_v32 = vpop.eup %4218  ;;  %3294 = vst.msk [vmem:[%s4946_s26 + $0x3] sm:$0x1] %vm2894_vm13, %v4217_v31 }
 0x230   : > { %3327 = vst.msk [vmem:[%s4946_s26 + $0x3] sm:$0x1] %vm2928_vm14, %v4219_v32 }
 0x232   : > { %v4221_v4 = vpop.eup %4220 }
 0x233   : > { %v4223_v33 = vpop.eup %4222  ;;  %3360 = vst.msk [vmem:[%s4946_s26 + $0x3] sm:$0x1] %vm2962_vm15, %v4221_v4 }
 0x234   : > { %3393 = vst.msk [vmem:[%s4946_s26 + $0x3] sm:$0x1] %vm2996_vm0, %v4223_v33 }
 0x235   : > { %4237 = shalt.err (!%p4234_p3)
}
 0x236   : > { %s4238_s19 = scalar_lea.hbm %s4989_s9, 64  ;;  %s4242_s8 = scalar_lea.hbm %s5042_s5, 128 }
 0x237   : > { %p4239_p4 = scmp.ne.s32.totalorder %s4989_s9, %s4238_s19  ;;  %p4243_p9 = scmp.lt.u32.totalorder %s4989_s9, %s5042_s5 }
 0x238   : > { %p4244_p10 = scmp.lt.u32.totalorder %s4242_s8, %s4238_s19  ;;  %p4246_p12 = scmp.lt.u32.totalorder %s4238_s19, %s4989_s9 }
 0x239   : > { %p4240_p7 = pnand %p4239_p4, %p4364_p5 }
 0x23a   : > { %p4245_p11 = por %p4244_p10, %p4243_p9 }
 0x23b   : > { %p4241_p8 = pneg %p4240_p7 }
 0x23c   : > { %p4247_p13 = por %p4246_p12, %p4245_p11 }
 0x23e   : > { %p4248_p0 = pnand %p4247_p13, %p4241_p8 }
 0x240   : > { %4251 = shalt.err (!%p4248_p0)
}
 0x241   : > { %4117 = dma.vmem_to_hbm [thread:$0]  (%p4364_p5), %s4991_s15, 64, %s4989_s9, %s3395_s4  }
 0x242 PF: > { %p4123_p1 = scmp.ge.s32.totalorder %s4286_s23, 2  ;;  %s3420_s12 = sand.u32 1, %s4274_s20  }
 0x243   : > { %s3421_s13 = scalar_lea.sflag [#allocation5], %s3420_s12 }
 0x244   : > { %p4120_p2 = pnand %p4123_p1, %p4368_p6 }
 0x246   : > { %4269 = dma.done.wait (!%p4120_p2), %s3421_s13, 64  }
 0x247   : > { %4271 = vsyncadd (!%p4120_p2), %s3421_s13, 4294967232  ;;  %p16_p3 = scmp.ge.s32.totalorder %s4351_s25, 4   ;;  %s5047_s20 = smov %s4278_s21 }
 0x248   : > { %s5048_s21 = smov %s4282_s22  ;;  %s5049_s22 = smov %s4362_s28 }
 0x249   : > { %s5050_s23 = smov %s4351_s25  ;;  %18 = sbr.rel (!%p16_p3) target bundleno = 5 (0x5), region = 94 }
 0x250   :  { %3426 = vsyncpa [#allocation5], 1 }
 0x251   :  { %3428 = vsyncpa [#allocation5 + $0x1], 1 }

</bundles_post_ra>
